<compile_context>
chip_gen: v7x
topology: tpu7x:2x2x1
jax: 0.10.0
libtpu: 0.0.40
codegen_flags: <defaults>
</compile_context>

<pallas_src>
import functools

import jax
import jax.numpy as jnp
from jax.experimental import pallas as pl
from jax.experimental.pallas import tpu as pltpu

BN_EPS = 1e-5
LEAKY_SLOPE = 0.2


def _cbr3c1_kernel(x_ref, w1_ref, b1_ref, w2_ref, b2_ref, o_ref, *, H, W, C):
    # x_ref : (bb, C, Lp)  VMEM; flattened zero-padded image + 2 tail zeros,
    #                      Lp = (H+2)*(W+2)+2.  Lanes = flat padded spatial.
    # w1_ref: (C*9*C,)     SMEM; BN-folded 3x3 weights, idx = (co*9+tap)*C+ci
    # b1_ref: (C,)         SMEM; BN-folded bias  (beta - mean*gamma*rsqrt(var+eps))
    # w2_ref: (C,)         SMEM; 1x1 conv weight
    # b2_ref: (1,)         SMEM; 1x1 conv bias
    # o_ref : (bb, H*(W+2)) VMEM; lane-dense output (2 garbage cols per row,
    #                      stripped in the wrapper).
    Wp = W + 2
    span = H * Wp
    bb = x_ref.shape[0]

    # conv1 (3x3, BN folded): 9*C*C scalar-broadcast VPU FMAs on lane-shifted
    # rows.  Tap (dy,dx) of output lane q reads input lane q + dy*Wp + dx.
    acc = [jnp.zeros((bb, span), jnp.float32) for _ in range(C)]
    for dy in range(3):
        for dx in range(3):
            tap = dy * 3 + dx
            base = dy * Wp + dx
            for c_in in range(C):
                xs = x_ref[:, c_in, base:base + span]        # (bb, span)
                for c_out in range(C):
                    w = w1_ref[(c_out * 9 + tap) * C + c_in]  # SMEM scalar
                    acc[c_out] = acc[c_out] + w * xs

    # bias + LeakyReLU(0.2), then conv2 (1x1, C->1) as a C-term VPU reduction.
    out = jnp.zeros((bb, span), jnp.float32)
    for c_out in range(C):
        y = acc[c_out] + b1_ref[c_out]
        y = jnp.where(y >= 0, y, LEAKY_SLOPE * y)
        out = out + w2_ref[c_out] * y

    o_ref[...] = jax.nn.sigmoid(out + b2_ref[0])


@functools.partial(jax.jit, static_argnames=("batch_block",))
def cbr3c1_confidence(x_nchw, w1_torch, w2_torch, b2, gamma, beta,
                      running_mean, running_var, *, batch_block=None):
    """x_nchw: (B, C, H, W).  PyTorch-layout params:
       w1_torch (C, C, 3, 3), w2_torch (1, C, 1, 1), b2 (1,),
       BN gamma/beta/running_mean/running_var (C,).
       batch_block: images per grid step.  None -> whole batch in one step
       (best on v5e/v6e); pass B//2 on v7x to use both TensorCores."""
    B, C, H, W = x_nchw.shape
    bb = B if batch_block is None else batch_block
    assert B % bb == 0, "batch_block must divide batch"

    Hp, Wp = H + 2, W + 2
    span = H * Wp                 # per-image output lanes (incl. 2 garbage cols/row)
    Lp = Hp * Wp + 2              # +2 so the (dy=2,dx=2) tap slice stays in bounds

    # ---- glue (plain JAX): pad + flatten spatial, fold BN into conv1 ----
    x = x_nchw.astype(jnp.float32)
    x_pad = jnp.pad(x, ((0, 0), (0, 0), (1, 1), (1, 1)))       # (B, C, Hp, Wp)
    x_flat = x_pad.reshape(B, C, Hp * Wp)
    x_flat = jnp.pad(x_flat, ((0, 0), (0, 0), (0, Lp - Hp * Wp)))  # (B, C, Lp)

    scale = gamma.astype(jnp.float32) * jax.lax.rsqrt(
        running_var.astype(jnp.float32) + BN_EPS)               # (C,)
    # (C_out, C_in, 3, 3) -> (C_out, 3, 3, C_in) -> flat (C_out, tap, C_in); fold BN.
    w1 = jnp.transpose(w1_torch.astype(jnp.float32), (0, 2, 3, 1)).reshape(C, 9, C)
    w1 = (w1 * scale[:, None, None]).reshape(C * 9 * C)
    bias1 = beta.astype(jnp.float32) - running_mean.astype(jnp.float32) * scale
    w2 = w2_torch.astype(jnp.float32).reshape(C)
    b2_s = b2.astype(jnp.float32).reshape(1)

    kernel = functools.partial(_cbr3c1_kernel, H=H, W=W, C=C)
    smem = pl.BlockSpec(memory_space=pltpu.MemorySpace.SMEM)

    out = pl.pallas_call(
        kernel,
        out_shape=jax.ShapeDtypeStruct((B, span), jnp.float32),
        grid_spec=pltpu.PrefetchScalarGridSpec(
            num_scalar_prefetch=0,
            grid=(B // bb,),
            in_specs=[
                pl.BlockSpec((bb, C, Lp), lambda b: (b, 0, 0)),  # contiguous DMA
                smem,   # w1 (folded, flat)
                smem,   # bias1 (folded)
                smem,   # w2
                smem,   # b2
            ],
            out_specs=pl.BlockSpec((bb, span), lambda b: (b, 0)),
        ),
        compiler_params=pltpu.CompilerParams(
            dimension_semantics=("parallel",)),
    )(x_flat, w1, bias1, w2, b2_s)

    # Strip the 2 garbage columns per row and view as NCHW -- free reshapes.
    out = out.reshape(B, H, Wp)[:, :, :W]
    return out.reshape(B, 1, H, W)


def _reference(x_nchw, w1_torch, w2_torch, b2, gamma, beta, mean, var):
    """Pure-JAX reference (NCHW, lax.conv) for validation."""
    y = jax.lax.conv_general_dilated(
        x_nchw, w1_torch, window_strides=(1, 1), padding="SAME",
        dimension_numbers=("NCHW", "OIHW", "NCHW"))
    inv = jax.lax.rsqrt(var + BN_EPS)
    y = (y - mean[None, :, None, None]) * (gamma * inv)[None, :, None, None] \
        + beta[None, :, None, None]
    y = jnp.where(y >= 0, y, LEAKY_SLOPE * y)
    y = jax.lax.conv_general_dilated(
        y, w2_torch, window_strides=(1, 1), padding="VALID",
        dimension_numbers=("NCHW", "OIHW", "NCHW")) + b2[None, :, None, None]
    return jax.nn.sigmoid(y)


if __name__ == "__main__":
    B, C, H, W = 2, 4, 16, 16

    key = jax.random.PRNGKey(0)
    kx, kw1, kw2 = jax.random.split(key, 3)

    x = jax.random.normal(kx, (B, C, H, W), dtype=jnp.float32)

    # init_weights: conv weights ~ N(0, 0.02), conv2 bias = 0, BN gamma=1 beta=0.
    w1 = 0.02 * jax.random.normal(kw1, (C, C, 3, 3), dtype=jnp.float32)
    w2 = 0.02 * jax.random.normal(kw2, (1, C, 1, 1), dtype=jnp.float32)
    b2 = jnp.zeros((1,), jnp.float32)
    gamma = jnp.ones((C,), jnp.float32)
    beta = jnp.zeros((C,), jnp.float32)
    running_mean = jnp.zeros((C,), jnp.float32)
    running_var = jnp.ones((C,), jnp.float32)

    out = cbr3c1_confidence(x, w1, w2, b2, gamma, beta,
                            running_mean, running_var)
    out = jax.block_until_ready(out)

    ref = _reference(x, w1, w2, b2, gamma, beta, running_mean, running_var)
    assert out.shape == (B, 1, H, W), out.shape
    assert jnp.allclose(out, ref, atol=1e-5, rtol=1e-5), \
        float(jnp.max(jnp.abs(out - ref)))

    print("KERNEL_OK")
</pallas_src>

<mosaic_0001>
module attributes {stable_mosaic.version = 11 : i64} {
  func.func @_cbr3c1_kernel(%arg0: i32, %arg1: memref<2x4x326xf32, #tpu.memory_space<vmem>>, %arg2: memref<144xf32, #tpu.memory_space<smem>>, %arg3: memref<4xf32, #tpu.memory_space<smem>>, %arg4: memref<4xf32, #tpu.memory_space<smem>>, %arg5: memref<1xf32, #tpu.memory_space<smem>>, %arg6: memref<2x288xf32, #tpu.memory_space<vmem>>) attributes {dimension_semantics = [#tpu.dimension_semantics<parallel>], iteration_bounds = array<i64: 1>, scalar_prefetch = 0 : i64, scratch_operands = 0 : i64, tpu.core_type = #tpu.core_type<tc>, window_params = [{transform_indices = @transform_0, window_bounds = array<i64: 2, 4, 326>}, {transform_indices = @transform_1, window_bounds = array<i64: 144>}, {transform_indices = @transform_2, window_bounds = array<i64: 4>}, {transform_indices = @transform_3, window_bounds = array<i64: 4>}, {transform_indices = @transform_4, window_bounds = array<i64: 1>}, {transform_indices = @transform_5, window_bounds = array<i64: 2, 288>}]} {
    %cst = arith.constant 0.000000e+00 : f32
    %0 = vector.broadcast %cst : f32 to vector<2x288xf32>
    %cst_0 = arith.constant 0.000000e+00 : f32
    %1 = vector.broadcast %cst_0 : f32 to vector<2x288xf32>
    %cst_1 = arith.constant 0.000000e+00 : f32
    %2 = vector.broadcast %cst_1 : f32 to vector<2x288xf32>
    %cst_2 = arith.constant 0.000000e+00 : f32
    %3 = vector.broadcast %cst_2 : f32 to vector<2x288xf32>
    %c0 = arith.constant 0 : index
    %c0_3 = arith.constant 0 : index
    %c0_4 = arith.constant 0 : index
    %4 = vector.load %arg1[%c0, %c0_3, %c0_4] : memref<2x4x326xf32, #tpu.memory_space<vmem>>, vector<2x1x288xf32>
    %5 = vector.shape_cast %4 : vector<2x1x288xf32> to vector<2x288xf32>
    %c0_5 = arith.constant 0 : index
    %6 = memref.load %arg2[%c0_5] : memref<144xf32, #tpu.memory_space<smem>>
    %7 = vector.broadcast %6 : f32 to vector<2x288xf32>
    %8 = arith.mulf %7, %5 : vector<2x288xf32>
    %9 = arith.addf %0, %8 : vector<2x288xf32>
    %c36 = arith.constant 36 : index
    %10 = memref.load %arg2[%c36] : memref<144xf32, #tpu.memory_space<smem>>
    %11 = vector.broadcast %10 : f32 to vector<2x288xf32>
    %12 = arith.mulf %11, %5 : vector<2x288xf32>
    %13 = arith.addf %1, %12 : vector<2x288xf32>
    %c72 = arith.constant 72 : index
    %14 = memref.load %arg2[%c72] : memref<144xf32, #tpu.memory_space<smem>>
    %15 = vector.broadcast %14 : f32 to vector<2x288xf32>
    %16 = arith.mulf %15, %5 : vector<2x288xf32>
    %17 = arith.addf %2, %16 : vector<2x288xf32>
    %c108 = arith.constant 108 : index
    %18 = memref.load %arg2[%c108] : memref<144xf32, #tpu.memory_space<smem>>
    %19 = vector.broadcast %18 : f32 to vector<2x288xf32>
    %20 = arith.mulf %19, %5 : vector<2x288xf32>
    %21 = arith.addf %3, %20 : vector<2x288xf32>
    %c0_6 = arith.constant 0 : index
    %c1 = arith.constant 1 : index
    %c0_7 = arith.constant 0 : index
    %22 = vector.load %arg1[%c0_6, %c1, %c0_7] : memref<2x4x326xf32, #tpu.memory_space<vmem>>, vector<2x1x288xf32>
    %23 = vector.shape_cast %22 : vector<2x1x288xf32> to vector<2x288xf32>
    %c1_8 = arith.constant 1 : index
    %24 = memref.load %arg2[%c1_8] : memref<144xf32, #tpu.memory_space<smem>>
    %25 = vector.broadcast %24 : f32 to vector<2x288xf32>
    %26 = arith.mulf %25, %23 : vector<2x288xf32>
    %27 = arith.addf %9, %26 : vector<2x288xf32>
    %c37 = arith.constant 37 : index
    %28 = memref.load %arg2[%c37] : memref<144xf32, #tpu.memory_space<smem>>
    %29 = vector.broadcast %28 : f32 to vector<2x288xf32>
    %30 = arith.mulf %29, %23 : vector<2x288xf32>
    %31 = arith.addf %13, %30 : vector<2x288xf32>
    %c73 = arith.constant 73 : index
    %32 = memref.load %arg2[%c73] : memref<144xf32, #tpu.memory_space<smem>>
    %33 = vector.broadcast %32 : f32 to vector<2x288xf32>
    %34 = arith.mulf %33, %23 : vector<2x288xf32>
    %35 = arith.addf %17, %34 : vector<2x288xf32>
    %c109 = arith.constant 109 : index
    %36 = memref.load %arg2[%c109] : memref<144xf32, #tpu.memory_space<smem>>
    %37 = vector.broadcast %36 : f32 to vector<2x288xf32>
    %38 = arith.mulf %37, %23 : vector<2x288xf32>
    %39 = arith.addf %21, %38 : vector<2x288xf32>
    %c0_9 = arith.constant 0 : index
    %c2 = arith.constant 2 : index
    %c0_10 = arith.constant 0 : index
    %40 = vector.load %arg1[%c0_9, %c2, %c0_10] : memref<2x4x326xf32, #tpu.memory_space<vmem>>, vector<2x1x288xf32>
    %41 = vector.shape_cast %40 : vector<2x1x288xf32> to vector<2x288xf32>
    %c2_11 = arith.constant 2 : index
    %42 = memref.load %arg2[%c2_11] : memref<144xf32, #tpu.memory_space<smem>>
    %43 = vector.broadcast %42 : f32 to vector<2x288xf32>
    %44 = arith.mulf %43, %41 : vector<2x288xf32>
    %45 = arith.addf %27, %44 : vector<2x288xf32>
    %c38 = arith.constant 38 : index
    %46 = memref.load %arg2[%c38] : memref<144xf32, #tpu.memory_space<smem>>
    %47 = vector.broadcast %46 : f32 to vector<2x288xf32>
    %48 = arith.mulf %47, %41 : vector<2x288xf32>
    %49 = arith.addf %31, %48 : vector<2x288xf32>
    %c74 = arith.constant 74 : index
    %50 = memref.load %arg2[%c74] : memref<144xf32, #tpu.memory_space<smem>>
    %51 = vector.broadcast %50 : f32 to vector<2x288xf32>
    %52 = arith.mulf %51, %41 : vector<2x288xf32>
    %53 = arith.addf %35, %52 : vector<2x288xf32>
    %c110 = arith.constant 110 : index
    %54 = memref.load %arg2[%c110] : memref<144xf32, #tpu.memory_space<smem>>
    %55 = vector.broadcast %54 : f32 to vector<2x288xf32>
    %56 = arith.mulf %55, %41 : vector<2x288xf32>
    %57 = arith.addf %39, %56 : vector<2x288xf32>
    %c0_12 = arith.constant 0 : index
    %c3 = arith.constant 3 : index
    %c0_13 = arith.constant 0 : index
    %58 = vector.load %arg1[%c0_12, %c3, %c0_13] : memref<2x4x326xf32, #tpu.memory_space<vmem>>, vector<2x1x288xf32>
    %59 = vector.shape_cast %58 : vector<2x1x288xf32> to vector<2x288xf32>
    %c3_14 = arith.constant 3 : index
    %60 = memref.load %arg2[%c3_14] : memref<144xf32, #tpu.memory_space<smem>>
    %61 = vector.broadcast %60 : f32 to vector<2x288xf32>
    %62 = arith.mulf %61, %59 : vector<2x288xf32>
    %63 = arith.addf %45, %62 : vector<2x288xf32>
    %c39 = arith.constant 39 : index
    %64 = memref.load %arg2[%c39] : memref<144xf32, #tpu.memory_space<smem>>
    %65 = vector.broadcast %64 : f32 to vector<2x288xf32>
    %66 = arith.mulf %65, %59 : vector<2x288xf32>
    %67 = arith.addf %49, %66 : vector<2x288xf32>
    %c75 = arith.constant 75 : index
    %68 = memref.load %arg2[%c75] : memref<144xf32, #tpu.memory_space<smem>>
    %69 = vector.broadcast %68 : f32 to vector<2x288xf32>
    %70 = arith.mulf %69, %59 : vector<2x288xf32>
    %71 = arith.addf %53, %70 : vector<2x288xf32>
    %c111 = arith.constant 111 : index
    %72 = memref.load %arg2[%c111] : memref<144xf32, #tpu.memory_space<smem>>
    %73 = vector.broadcast %72 : f32 to vector<2x288xf32>
    %74 = arith.mulf %73, %59 : vector<2x288xf32>
    %75 = arith.addf %57, %74 : vector<2x288xf32>
    %c0_15 = arith.constant 0 : index
    %c0_16 = arith.constant 0 : index
    %c1_17 = arith.constant 1 : index
    %76 = vector.load %arg1[%c0_15, %c0_16, %c1_17] : memref<2x4x326xf32, #tpu.memory_space<vmem>>, vector<2x1x288xf32>
    %77 = vector.shape_cast %76 : vector<2x1x288xf32> to vector<2x288xf32>
    %c4 = arith.constant 4 : index
    %78 = memref.load %arg2[%c4] : memref<144xf32, #tpu.memory_space<smem>>
    %79 = vector.broadcast %78 : f32 to vector<2x288xf32>
    %80 = arith.mulf %79, %77 : vector<2x288xf32>
    %81 = arith.addf %63, %80 : vector<2x288xf32>
    %c40 = arith.constant 40 : index
    %82 = memref.load %arg2[%c40] : memref<144xf32, #tpu.memory_space<smem>>
    %83 = vector.broadcast %82 : f32 to vector<2x288xf32>
    %84 = arith.mulf %83, %77 : vector<2x288xf32>
    %85 = arith.addf %67, %84 : vector<2x288xf32>
    %c76 = arith.constant 76 : index
    %86 = memref.load %arg2[%c76] : memref<144xf32, #tpu.memory_space<smem>>
    %87 = vector.broadcast %86 : f32 to vector<2x288xf32>
    %88 = arith.mulf %87, %77 : vector<2x288xf32>
    %89 = arith.addf %71, %88 : vector<2x288xf32>
    %c112 = arith.constant 112 : index
    %90 = memref.load %arg2[%c112] : memref<144xf32, #tpu.memory_space<smem>>
    %91 = vector.broadcast %90 : f32 to vector<2x288xf32>
    %92 = arith.mulf %91, %77 : vector<2x288xf32>
    %93 = arith.addf %75, %92 : vector<2x288xf32>
    %c0_18 = arith.constant 0 : index
    %c1_19 = arith.constant 1 : index
    %c1_20 = arith.constant 1 : index
    %94 = vector.load %arg1[%c0_18, %c1_19, %c1_20] : memref<2x4x326xf32, #tpu.memory_space<vmem>>, vector<2x1x288xf32>
    %95 = vector.shape_cast %94 : vector<2x1x288xf32> to vector<2x288xf32>
    %c5 = arith.constant 5 : index
    %96 = memref.load %arg2[%c5] : memref<144xf32, #tpu.memory_space<smem>>
    %97 = vector.broadcast %96 : f32 to vector<2x288xf32>
    %98 = arith.mulf %97, %95 : vector<2x288xf32>
    %99 = arith.addf %81, %98 : vector<2x288xf32>
    %c41 = arith.constant 41 : index
    %100 = memref.load %arg2[%c41] : memref<144xf32, #tpu.memory_space<smem>>
    %101 = vector.broadcast %100 : f32 to vector<2x288xf32>
    %102 = arith.mulf %101, %95 : vector<2x288xf32>
    %103 = arith.addf %85, %102 : vector<2x288xf32>
    %c77 = arith.constant 77 : index
    %104 = memref.load %arg2[%c77] : memref<144xf32, #tpu.memory_space<smem>>
    %105 = vector.broadcast %104 : f32 to vector<2x288xf32>
    %106 = arith.mulf %105, %95 : vector<2x288xf32>
    %107 = arith.addf %89, %106 : vector<2x288xf32>
    %c113 = arith.constant 113 : index
    %108 = memref.load %arg2[%c113] : memref<144xf32, #tpu.memory_space<smem>>
    %109 = vector.broadcast %108 : f32 to vector<2x288xf32>
    %110 = arith.mulf %109, %95 : vector<2x288xf32>
    %111 = arith.addf %93, %110 : vector<2x288xf32>
    %c0_21 = arith.constant 0 : index
    %c2_22 = arith.constant 2 : index
    %c1_23 = arith.constant 1 : index
    %112 = vector.load %arg1[%c0_21, %c2_22, %c1_23] : memref<2x4x326xf32, #tpu.memory_space<vmem>>, vector<2x1x288xf32>
    %113 = vector.shape_cast %112 : vector<2x1x288xf32> to vector<2x288xf32>
    %c6 = arith.constant 6 : index
    %114 = memref.load %arg2[%c6] : memref<144xf32, #tpu.memory_space<smem>>
    %115 = vector.broadcast %114 : f32 to vector<2x288xf32>
    %116 = arith.mulf %115, %113 : vector<2x288xf32>
    %117 = arith.addf %99, %116 : vector<2x288xf32>
    %c42 = arith.constant 42 : index
    %118 = memref.load %arg2[%c42] : memref<144xf32, #tpu.memory_space<smem>>
    %119 = vector.broadcast %118 : f32 to vector<2x288xf32>
    %120 = arith.mulf %119, %113 : vector<2x288xf32>
    %121 = arith.addf %103, %120 : vector<2x288xf32>
    %c78 = arith.constant 78 : index
    %122 = memref.load %arg2[%c78] : memref<144xf32, #tpu.memory_space<smem>>
    %123 = vector.broadcast %122 : f32 to vector<2x288xf32>
    %124 = arith.mulf %123, %113 : vector<2x288xf32>
    %125 = arith.addf %107, %124 : vector<2x288xf32>
    %c114 = arith.constant 114 : index
    %126 = memref.load %arg2[%c114] : memref<144xf32, #tpu.memory_space<smem>>
    %127 = vector.broadcast %126 : f32 to vector<2x288xf32>
    %128 = arith.mulf %127, %113 : vector<2x288xf32>
    %129 = arith.addf %111, %128 : vector<2x288xf32>
    %c0_24 = arith.constant 0 : index
    %c3_25 = arith.constant 3 : index
    %c1_26 = arith.constant 1 : index
    %130 = vector.load %arg1[%c0_24, %c3_25, %c1_26] : memref<2x4x326xf32, #tpu.memory_space<vmem>>, vector<2x1x288xf32>
    %131 = vector.shape_cast %130 : vector<2x1x288xf32> to vector<2x288xf32>
    %c7 = arith.constant 7 : index
    %132 = memref.load %arg2[%c7] : memref<144xf32, #tpu.memory_space<smem>>
    %133 = vector.broadcast %132 : f32 to vector<2x288xf32>
    %134 = arith.mulf %133, %131 : vector<2x288xf32>
    %135 = arith.addf %117, %134 : vector<2x288xf32>
    %c43 = arith.constant 43 : index
    %136 = memref.load %arg2[%c43] : memref<144xf32, #tpu.memory_space<smem>>
    %137 = vector.broadcast %136 : f32 to vector<2x288xf32>
    %138 = arith.mulf %137, %131 : vector<2x288xf32>
    %139 = arith.addf %121, %138 : vector<2x288xf32>
    %c79 = arith.constant 79 : index
    %140 = memref.load %arg2[%c79] : memref<144xf32, #tpu.memory_space<smem>>
    %141 = vector.broadcast %140 : f32 to vector<2x288xf32>
    %142 = arith.mulf %141, %131 : vector<2x288xf32>
    %143 = arith.addf %125, %142 : vector<2x288xf32>
    %c115 = arith.constant 115 : index
    %144 = memref.load %arg2[%c115] : memref<144xf32, #tpu.memory_space<smem>>
    %145 = vector.broadcast %144 : f32 to vector<2x288xf32>
    %146 = arith.mulf %145, %131 : vector<2x288xf32>
    %147 = arith.addf %129, %146 : vector<2x288xf32>
    %c0_27 = arith.constant 0 : index
    %c0_28 = arith.constant 0 : index
    %c2_29 = arith.constant 2 : index
    %148 = vector.load %arg1[%c0_27, %c0_28, %c2_29] : memref<2x4x326xf32, #tpu.memory_space<vmem>>, vector<2x1x288xf32>
    %149 = vector.shape_cast %148 : vector<2x1x288xf32> to vector<2x288xf32>
    %c8 = arith.constant 8 : index
    %150 = memref.load %arg2[%c8] : memref<144xf32, #tpu.memory_space<smem>>
    %151 = vector.broadcast %150 : f32 to vector<2x288xf32>
    %152 = arith.mulf %151, %149 : vector<2x288xf32>
    %153 = arith.addf %135, %152 : vector<2x288xf32>
    %c44 = arith.constant 44 : index
    %154 = memref.load %arg2[%c44] : memref<144xf32, #tpu.memory_space<smem>>
    %155 = vector.broadcast %154 : f32 to vector<2x288xf32>
    %156 = arith.mulf %155, %149 : vector<2x288xf32>
    %157 = arith.addf %139, %156 : vector<2x288xf32>
    %c80 = arith.constant 80 : index
    %158 = memref.load %arg2[%c80] : memref<144xf32, #tpu.memory_space<smem>>
    %159 = vector.broadcast %158 : f32 to vector<2x288xf32>
    %160 = arith.mulf %159, %149 : vector<2x288xf32>
    %161 = arith.addf %143, %160 : vector<2x288xf32>
    %c116 = arith.constant 116 : index
    %162 = memref.load %arg2[%c116] : memref<144xf32, #tpu.memory_space<smem>>
    %163 = vector.broadcast %162 : f32 to vector<2x288xf32>
    %164 = arith.mulf %163, %149 : vector<2x288xf32>
    %165 = arith.addf %147, %164 : vector<2x288xf32>
    %c0_30 = arith.constant 0 : index
    %c1_31 = arith.constant 1 : index
    %c2_32 = arith.constant 2 : index
    %166 = vector.load %arg1[%c0_30, %c1_31, %c2_32] : memref<2x4x326xf32, #tpu.memory_space<vmem>>, vector<2x1x288xf32>
    %167 = vector.shape_cast %166 : vector<2x1x288xf32> to vector<2x288xf32>
    %c9 = arith.constant 9 : index
    %168 = memref.load %arg2[%c9] : memref<144xf32, #tpu.memory_space<smem>>
    %169 = vector.broadcast %168 : f32 to vector<2x288xf32>
    %170 = arith.mulf %169, %167 : vector<2x288xf32>
    %171 = arith.addf %153, %170 : vector<2x288xf32>
    %c45 = arith.constant 45 : index
    %172 = memref.load %arg2[%c45] : memref<144xf32, #tpu.memory_space<smem>>
    %173 = vector.broadcast %172 : f32 to vector<2x288xf32>
    %174 = arith.mulf %173, %167 : vector<2x288xf32>
    %175 = arith.addf %157, %174 : vector<2x288xf32>
    %c81 = arith.constant 81 : index
    %176 = memref.load %arg2[%c81] : memref<144xf32, #tpu.memory_space<smem>>
    %177 = vector.broadcast %176 : f32 to vector<2x288xf32>
    %178 = arith.mulf %177, %167 : vector<2x288xf32>
    %179 = arith.addf %161, %178 : vector<2x288xf32>
    %c117 = arith.constant 117 : index
    %180 = memref.load %arg2[%c117] : memref<144xf32, #tpu.memory_space<smem>>
    %181 = vector.broadcast %180 : f32 to vector<2x288xf32>
    %182 = arith.mulf %181, %167 : vector<2x288xf32>
    %183 = arith.addf %165, %182 : vector<2x288xf32>
    %c0_33 = arith.constant 0 : index
    %c2_34 = arith.constant 2 : index
    %c2_35 = arith.constant 2 : index
    %184 = vector.load %arg1[%c0_33, %c2_34, %c2_35] : memref<2x4x326xf32, #tpu.memory_space<vmem>>, vector<2x1x288xf32>
    %185 = vector.shape_cast %184 : vector<2x1x288xf32> to vector<2x288xf32>
    %c10 = arith.constant 10 : index
    %186 = memref.load %arg2[%c10] : memref<144xf32, #tpu.memory_space<smem>>
    %187 = vector.broadcast %186 : f32 to vector<2x288xf32>
    %188 = arith.mulf %187, %185 : vector<2x288xf32>
    %189 = arith.addf %171, %188 : vector<2x288xf32>
    %c46 = arith.constant 46 : index
    %190 = memref.load %arg2[%c46] : memref<144xf32, #tpu.memory_space<smem>>
    %191 = vector.broadcast %190 : f32 to vector<2x288xf32>
    %192 = arith.mulf %191, %185 : vector<2x288xf32>
    %193 = arith.addf %175, %192 : vector<2x288xf32>
    %c82 = arith.constant 82 : index
    %194 = memref.load %arg2[%c82] : memref<144xf32, #tpu.memory_space<smem>>
    %195 = vector.broadcast %194 : f32 to vector<2x288xf32>
    %196 = arith.mulf %195, %185 : vector<2x288xf32>
    %197 = arith.addf %179, %196 : vector<2x288xf32>
    %c118 = arith.constant 118 : index
    %198 = memref.load %arg2[%c118] : memref<144xf32, #tpu.memory_space<smem>>
    %199 = vector.broadcast %198 : f32 to vector<2x288xf32>
    %200 = arith.mulf %199, %185 : vector<2x288xf32>
    %201 = arith.addf %183, %200 : vector<2x288xf32>
    %c0_36 = arith.constant 0 : index
    %c3_37 = arith.constant 3 : index
    %c2_38 = arith.constant 2 : index
    %202 = vector.load %arg1[%c0_36, %c3_37, %c2_38] : memref<2x4x326xf32, #tpu.memory_space<vmem>>, vector<2x1x288xf32>
    %203 = vector.shape_cast %202 : vector<2x1x288xf32> to vector<2x288xf32>
    %c11 = arith.constant 11 : index
    %204 = memref.load %arg2[%c11] : memref<144xf32, #tpu.memory_space<smem>>
    %205 = vector.broadcast %204 : f32 to vector<2x288xf32>
    %206 = arith.mulf %205, %203 : vector<2x288xf32>
    %207 = arith.addf %189, %206 : vector<2x288xf32>
    %c47 = arith.constant 47 : index
    %208 = memref.load %arg2[%c47] : memref<144xf32, #tpu.memory_space<smem>>
    %209 = vector.broadcast %208 : f32 to vector<2x288xf32>
    %210 = arith.mulf %209, %203 : vector<2x288xf32>
    %211 = arith.addf %193, %210 : vector<2x288xf32>
    %c83 = arith.constant 83 : index
    %212 = memref.load %arg2[%c83] : memref<144xf32, #tpu.memory_space<smem>>
    %213 = vector.broadcast %212 : f32 to vector<2x288xf32>
    %214 = arith.mulf %213, %203 : vector<2x288xf32>
    %215 = arith.addf %197, %214 : vector<2x288xf32>
    %c119 = arith.constant 119 : index
    %216 = memref.load %arg2[%c119] : memref<144xf32, #tpu.memory_space<smem>>
    %217 = vector.broadcast %216 : f32 to vector<2x288xf32>
    %218 = arith.mulf %217, %203 : vector<2x288xf32>
    %219 = arith.addf %201, %218 : vector<2x288xf32>
    %c0_39 = arith.constant 0 : index
    %c0_40 = arith.constant 0 : index
    %c18 = arith.constant 18 : index
    %220 = vector.load %arg1[%c0_39, %c0_40, %c18] : memref<2x4x326xf32, #tpu.memory_space<vmem>>, vector<2x1x288xf32>
    %221 = vector.shape_cast %220 : vector<2x1x288xf32> to vector<2x288xf32>
    %c12 = arith.constant 12 : index
    %222 = memref.load %arg2[%c12] : memref<144xf32, #tpu.memory_space<smem>>
    %223 = vector.broadcast %222 : f32 to vector<2x288xf32>
    %224 = arith.mulf %223, %221 : vector<2x288xf32>
    %225 = arith.addf %207, %224 : vector<2x288xf32>
    %c48 = arith.constant 48 : index
    %226 = memref.load %arg2[%c48] : memref<144xf32, #tpu.memory_space<smem>>
    %227 = vector.broadcast %226 : f32 to vector<2x288xf32>
    %228 = arith.mulf %227, %221 : vector<2x288xf32>
    %229 = arith.addf %211, %228 : vector<2x288xf32>
    %c84 = arith.constant 84 : index
    %230 = memref.load %arg2[%c84] : memref<144xf32, #tpu.memory_space<smem>>
    %231 = vector.broadcast %230 : f32 to vector<2x288xf32>
    %232 = arith.mulf %231, %221 : vector<2x288xf32>
    %233 = arith.addf %215, %232 : vector<2x288xf32>
    %c120 = arith.constant 120 : index
    %234 = memref.load %arg2[%c120] : memref<144xf32, #tpu.memory_space<smem>>
    %235 = vector.broadcast %234 : f32 to vector<2x288xf32>
    %236 = arith.mulf %235, %221 : vector<2x288xf32>
    %237 = arith.addf %219, %236 : vector<2x288xf32>
    %c0_41 = arith.constant 0 : index
    %c1_42 = arith.constant 1 : index
    %c18_43 = arith.constant 18 : index
    %238 = vector.load %arg1[%c0_41, %c1_42, %c18_43] : memref<2x4x326xf32, #tpu.memory_space<vmem>>, vector<2x1x288xf32>
    %239 = vector.shape_cast %238 : vector<2x1x288xf32> to vector<2x288xf32>
    %c13 = arith.constant 13 : index
    %240 = memref.load %arg2[%c13] : memref<144xf32, #tpu.memory_space<smem>>
    %241 = vector.broadcast %240 : f32 to vector<2x288xf32>
    %242 = arith.mulf %241, %239 : vector<2x288xf32>
    %243 = arith.addf %225, %242 : vector<2x288xf32>
    %c49 = arith.constant 49 : index
    %244 = memref.load %arg2[%c49] : memref<144xf32, #tpu.memory_space<smem>>
    %245 = vector.broadcast %244 : f32 to vector<2x288xf32>
    %246 = arith.mulf %245, %239 : vector<2x288xf32>
    %247 = arith.addf %229, %246 : vector<2x288xf32>
    %c85 = arith.constant 85 : index
    %248 = memref.load %arg2[%c85] : memref<144xf32, #tpu.memory_space<smem>>
    %249 = vector.broadcast %248 : f32 to vector<2x288xf32>
    %250 = arith.mulf %249, %239 : vector<2x288xf32>
    %251 = arith.addf %233, %250 : vector<2x288xf32>
    %c121 = arith.constant 121 : index
    %252 = memref.load %arg2[%c121] : memref<144xf32, #tpu.memory_space<smem>>
    %253 = vector.broadcast %252 : f32 to vector<2x288xf32>
    %254 = arith.mulf %253, %239 : vector<2x288xf32>
    %255 = arith.addf %237, %254 : vector<2x288xf32>
    %c0_44 = arith.constant 0 : index
    %c2_45 = arith.constant 2 : index
    %c18_46 = arith.constant 18 : index
    %256 = vector.load %arg1[%c0_44, %c2_45, %c18_46] : memref<2x4x326xf32, #tpu.memory_space<vmem>>, vector<2x1x288xf32>
    %257 = vector.shape_cast %256 : vector<2x1x288xf32> to vector<2x288xf32>
    %c14 = arith.constant 14 : index
    %258 = memref.load %arg2[%c14] : memref<144xf32, #tpu.memory_space<smem>>
    %259 = vector.broadcast %258 : f32 to vector<2x288xf32>
    %260 = arith.mulf %259, %257 : vector<2x288xf32>
    %261 = arith.addf %243, %260 : vector<2x288xf32>
    %c50 = arith.constant 50 : index
    %262 = memref.load %arg2[%c50] : memref<144xf32, #tpu.memory_space<smem>>
    %263 = vector.broadcast %262 : f32 to vector<2x288xf32>
    %264 = arith.mulf %263, %257 : vector<2x288xf32>
    %265 = arith.addf %247, %264 : vector<2x288xf32>
    %c86 = arith.constant 86 : index
    %266 = memref.load %arg2[%c86] : memref<144xf32, #tpu.memory_space<smem>>
    %267 = vector.broadcast %266 : f32 to vector<2x288xf32>
    %268 = arith.mulf %267, %257 : vector<2x288xf32>
    %269 = arith.addf %251, %268 : vector<2x288xf32>
    %c122 = arith.constant 122 : index
    %270 = memref.load %arg2[%c122] : memref<144xf32, #tpu.memory_space<smem>>
    %271 = vector.broadcast %270 : f32 to vector<2x288xf32>
    %272 = arith.mulf %271, %257 : vector<2x288xf32>
    %273 = arith.addf %255, %272 : vector<2x288xf32>
    %c0_47 = arith.constant 0 : index
    %c3_48 = arith.constant 3 : index
    %c18_49 = arith.constant 18 : index
    %274 = vector.load %arg1[%c0_47, %c3_48, %c18_49] : memref<2x4x326xf32, #tpu.memory_space<vmem>>, vector<2x1x288xf32>
    %275 = vector.shape_cast %274 : vector<2x1x288xf32> to vector<2x288xf32>
    %c15 = arith.constant 15 : index
    %276 = memref.load %arg2[%c15] : memref<144xf32, #tpu.memory_space<smem>>
    %277 = vector.broadcast %276 : f32 to vector<2x288xf32>
    %278 = arith.mulf %277, %275 : vector<2x288xf32>
    %279 = arith.addf %261, %278 : vector<2x288xf32>
    %c51 = arith.constant 51 : index
    %280 = memref.load %arg2[%c51] : memref<144xf32, #tpu.memory_space<smem>>
    %281 = vector.broadcast %280 : f32 to vector<2x288xf32>
    %282 = arith.mulf %281, %275 : vector<2x288xf32>
    %283 = arith.addf %265, %282 : vector<2x288xf32>
    %c87 = arith.constant 87 : index
    %284 = memref.load %arg2[%c87] : memref<144xf32, #tpu.memory_space<smem>>
    %285 = vector.broadcast %284 : f32 to vector<2x288xf32>
    %286 = arith.mulf %285, %275 : vector<2x288xf32>
    %287 = arith.addf %269, %286 : vector<2x288xf32>
    %c123 = arith.constant 123 : index
    %288 = memref.load %arg2[%c123] : memref<144xf32, #tpu.memory_space<smem>>
    %289 = vector.broadcast %288 : f32 to vector<2x288xf32>
    %290 = arith.mulf %289, %275 : vector<2x288xf32>
    %291 = arith.addf %273, %290 : vector<2x288xf32>
    %c0_50 = arith.constant 0 : index
    %c0_51 = arith.constant 0 : index
    %c19 = arith.constant 19 : index
    %292 = vector.load %arg1[%c0_50, %c0_51, %c19] : memref<2x4x326xf32, #tpu.memory_space<vmem>>, vector<2x1x288xf32>
    %293 = vector.shape_cast %292 : vector<2x1x288xf32> to vector<2x288xf32>
    %c16 = arith.constant 16 : index
    %294 = memref.load %arg2[%c16] : memref<144xf32, #tpu.memory_space<smem>>
    %295 = vector.broadcast %294 : f32 to vector<2x288xf32>
    %296 = arith.mulf %295, %293 : vector<2x288xf32>
    %297 = arith.addf %279, %296 : vector<2x288xf32>
    %c52 = arith.constant 52 : index
    %298 = memref.load %arg2[%c52] : memref<144xf32, #tpu.memory_space<smem>>
    %299 = vector.broadcast %298 : f32 to vector<2x288xf32>
    %300 = arith.mulf %299, %293 : vector<2x288xf32>
    %301 = arith.addf %283, %300 : vector<2x288xf32>
    %c88 = arith.constant 88 : index
    %302 = memref.load %arg2[%c88] : memref<144xf32, #tpu.memory_space<smem>>
    %303 = vector.broadcast %302 : f32 to vector<2x288xf32>
    %304 = arith.mulf %303, %293 : vector<2x288xf32>
    %305 = arith.addf %287, %304 : vector<2x288xf32>
    %c124 = arith.constant 124 : index
    %306 = memref.load %arg2[%c124] : memref<144xf32, #tpu.memory_space<smem>>
    %307 = vector.broadcast %306 : f32 to vector<2x288xf32>
    %308 = arith.mulf %307, %293 : vector<2x288xf32>
    %309 = arith.addf %291, %308 : vector<2x288xf32>
    %c0_52 = arith.constant 0 : index
    %c1_53 = arith.constant 1 : index
    %c19_54 = arith.constant 19 : index
    %310 = vector.load %arg1[%c0_52, %c1_53, %c19_54] : memref<2x4x326xf32, #tpu.memory_space<vmem>>, vector<2x1x288xf32>
    %311 = vector.shape_cast %310 : vector<2x1x288xf32> to vector<2x288xf32>
    %c17 = arith.constant 17 : index
    %312 = memref.load %arg2[%c17] : memref<144xf32, #tpu.memory_space<smem>>
    %313 = vector.broadcast %312 : f32 to vector<2x288xf32>
    %314 = arith.mulf %313, %311 : vector<2x288xf32>
    %315 = arith.addf %297, %314 : vector<2x288xf32>
    %c53 = arith.constant 53 : index
    %316 = memref.load %arg2[%c53] : memref<144xf32, #tpu.memory_space<smem>>
    %317 = vector.broadcast %316 : f32 to vector<2x288xf32>
    %318 = arith.mulf %317, %311 : vector<2x288xf32>
    %319 = arith.addf %301, %318 : vector<2x288xf32>
    %c89 = arith.constant 89 : index
    %320 = memref.load %arg2[%c89] : memref<144xf32, #tpu.memory_space<smem>>
    %321 = vector.broadcast %320 : f32 to vector<2x288xf32>
    %322 = arith.mulf %321, %311 : vector<2x288xf32>
    %323 = arith.addf %305, %322 : vector<2x288xf32>
    %c125 = arith.constant 125 : index
    %324 = memref.load %arg2[%c125] : memref<144xf32, #tpu.memory_space<smem>>
    %325 = vector.broadcast %324 : f32 to vector<2x288xf32>
    %326 = arith.mulf %325, %311 : vector<2x288xf32>
    %327 = arith.addf %309, %326 : vector<2x288xf32>
    %c0_55 = arith.constant 0 : index
    %c2_56 = arith.constant 2 : index
    %c19_57 = arith.constant 19 : index
    %328 = vector.load %arg1[%c0_55, %c2_56, %c19_57] : memref<2x4x326xf32, #tpu.memory_space<vmem>>, vector<2x1x288xf32>
    %329 = vector.shape_cast %328 : vector<2x1x288xf32> to vector<2x288xf32>
    %c18_58 = arith.constant 18 : index
    %330 = memref.load %arg2[%c18_58] : memref<144xf32, #tpu.memory_space<smem>>
    %331 = vector.broadcast %330 : f32 to vector<2x288xf32>
    %332 = arith.mulf %331, %329 : vector<2x288xf32>
    %333 = arith.addf %315, %332 : vector<2x288xf32>
    %c54 = arith.constant 54 : index
    %334 = memref.load %arg2[%c54] : memref<144xf32, #tpu.memory_space<smem>>
    %335 = vector.broadcast %334 : f32 to vector<2x288xf32>
    %336 = arith.mulf %335, %329 : vector<2x288xf32>
    %337 = arith.addf %319, %336 : vector<2x288xf32>
    %c90 = arith.constant 90 : index
    %338 = memref.load %arg2[%c90] : memref<144xf32, #tpu.memory_space<smem>>
    %339 = vector.broadcast %338 : f32 to vector<2x288xf32>
    %340 = arith.mulf %339, %329 : vector<2x288xf32>
    %341 = arith.addf %323, %340 : vector<2x288xf32>
    %c126 = arith.constant 126 : index
    %342 = memref.load %arg2[%c126] : memref<144xf32, #tpu.memory_space<smem>>
    %343 = vector.broadcast %342 : f32 to vector<2x288xf32>
    %344 = arith.mulf %343, %329 : vector<2x288xf32>
    %345 = arith.addf %327, %344 : vector<2x288xf32>
    %c0_59 = arith.constant 0 : index
    %c3_60 = arith.constant 3 : index
    %c19_61 = arith.constant 19 : index
    %346 = vector.load %arg1[%c0_59, %c3_60, %c19_61] : memref<2x4x326xf32, #tpu.memory_space<vmem>>, vector<2x1x288xf32>
    %347 = vector.shape_cast %346 : vector<2x1x288xf32> to vector<2x288xf32>
    %c19_62 = arith.constant 19 : index
    %348 = memref.load %arg2[%c19_62] : memref<144xf32, #tpu.memory_space<smem>>
    %349 = vector.broadcast %348 : f32 to vector<2x288xf32>
    %350 = arith.mulf %349, %347 : vector<2x288xf32>
    %351 = arith.addf %333, %350 : vector<2x288xf32>
    %c55 = arith.constant 55 : index
    %352 = memref.load %arg2[%c55] : memref<144xf32, #tpu.memory_space<smem>>
    %353 = vector.broadcast %352 : f32 to vector<2x288xf32>
    %354 = arith.mulf %353, %347 : vector<2x288xf32>
    %355 = arith.addf %337, %354 : vector<2x288xf32>
    %c91 = arith.constant 91 : index
    %356 = memref.load %arg2[%c91] : memref<144xf32, #tpu.memory_space<smem>>
    %357 = vector.broadcast %356 : f32 to vector<2x288xf32>
    %358 = arith.mulf %357, %347 : vector<2x288xf32>
    %359 = arith.addf %341, %358 : vector<2x288xf32>
    %c127 = arith.constant 127 : index
    %360 = memref.load %arg2[%c127] : memref<144xf32, #tpu.memory_space<smem>>
    %361 = vector.broadcast %360 : f32 to vector<2x288xf32>
    %362 = arith.mulf %361, %347 : vector<2x288xf32>
    %363 = arith.addf %345, %362 : vector<2x288xf32>
    %c0_63 = arith.constant 0 : index
    %c0_64 = arith.constant 0 : index
    %c20 = arith.constant 20 : index
    %364 = vector.load %arg1[%c0_63, %c0_64, %c20] : memref<2x4x326xf32, #tpu.memory_space<vmem>>, vector<2x1x288xf32>
    %365 = vector.shape_cast %364 : vector<2x1x288xf32> to vector<2x288xf32>
    %c20_65 = arith.constant 20 : index
    %366 = memref.load %arg2[%c20_65] : memref<144xf32, #tpu.memory_space<smem>>
    %367 = vector.broadcast %366 : f32 to vector<2x288xf32>
    %368 = arith.mulf %367, %365 : vector<2x288xf32>
    %369 = arith.addf %351, %368 : vector<2x288xf32>
    %c56 = arith.constant 56 : index
    %370 = memref.load %arg2[%c56] : memref<144xf32, #tpu.memory_space<smem>>
    %371 = vector.broadcast %370 : f32 to vector<2x288xf32>
    %372 = arith.mulf %371, %365 : vector<2x288xf32>
    %373 = arith.addf %355, %372 : vector<2x288xf32>
    %c92 = arith.constant 92 : index
    %374 = memref.load %arg2[%c92] : memref<144xf32, #tpu.memory_space<smem>>
    %375 = vector.broadcast %374 : f32 to vector<2x288xf32>
    %376 = arith.mulf %375, %365 : vector<2x288xf32>
    %377 = arith.addf %359, %376 : vector<2x288xf32>
    %c128 = arith.constant 128 : index
    %378 = memref.load %arg2[%c128] : memref<144xf32, #tpu.memory_space<smem>>
    %379 = vector.broadcast %378 : f32 to vector<2x288xf32>
    %380 = arith.mulf %379, %365 : vector<2x288xf32>
    %381 = arith.addf %363, %380 : vector<2x288xf32>
    %c0_66 = arith.constant 0 : index
    %c1_67 = arith.constant 1 : index
    %c20_68 = arith.constant 20 : index
    %382 = vector.load %arg1[%c0_66, %c1_67, %c20_68] : memref<2x4x326xf32, #tpu.memory_space<vmem>>, vector<2x1x288xf32>
    %383 = vector.shape_cast %382 : vector<2x1x288xf32> to vector<2x288xf32>
    %c21 = arith.constant 21 : index
    %384 = memref.load %arg2[%c21] : memref<144xf32, #tpu.memory_space<smem>>
    %385 = vector.broadcast %384 : f32 to vector<2x288xf32>
    %386 = arith.mulf %385, %383 : vector<2x288xf32>
    %387 = arith.addf %369, %386 : vector<2x288xf32>
    %c57 = arith.constant 57 : index
    %388 = memref.load %arg2[%c57] : memref<144xf32, #tpu.memory_space<smem>>
    %389 = vector.broadcast %388 : f32 to vector<2x288xf32>
    %390 = arith.mulf %389, %383 : vector<2x288xf32>
    %391 = arith.addf %373, %390 : vector<2x288xf32>
    %c93 = arith.constant 93 : index
    %392 = memref.load %arg2[%c93] : memref<144xf32, #tpu.memory_space<smem>>
    %393 = vector.broadcast %392 : f32 to vector<2x288xf32>
    %394 = arith.mulf %393, %383 : vector<2x288xf32>
    %395 = arith.addf %377, %394 : vector<2x288xf32>
    %c129 = arith.constant 129 : index
    %396 = memref.load %arg2[%c129] : memref<144xf32, #tpu.memory_space<smem>>
    %397 = vector.broadcast %396 : f32 to vector<2x288xf32>
    %398 = arith.mulf %397, %383 : vector<2x288xf32>
    %399 = arith.addf %381, %398 : vector<2x288xf32>
    %c0_69 = arith.constant 0 : index
    %c2_70 = arith.constant 2 : index
    %c20_71 = arith.constant 20 : index
    %400 = vector.load %arg1[%c0_69, %c2_70, %c20_71] : memref<2x4x326xf32, #tpu.memory_space<vmem>>, vector<2x1x288xf32>
    %401 = vector.shape_cast %400 : vector<2x1x288xf32> to vector<2x288xf32>
    %c22 = arith.constant 22 : index
    %402 = memref.load %arg2[%c22] : memref<144xf32, #tpu.memory_space<smem>>
    %403 = vector.broadcast %402 : f32 to vector<2x288xf32>
    %404 = arith.mulf %403, %401 : vector<2x288xf32>
    %405 = arith.addf %387, %404 : vector<2x288xf32>
    %c58 = arith.constant 58 : index
    %406 = memref.load %arg2[%c58] : memref<144xf32, #tpu.memory_space<smem>>
    %407 = vector.broadcast %406 : f32 to vector<2x288xf32>
    %408 = arith.mulf %407, %401 : vector<2x288xf32>
    %409 = arith.addf %391, %408 : vector<2x288xf32>
    %c94 = arith.constant 94 : index
    %410 = memref.load %arg2[%c94] : memref<144xf32, #tpu.memory_space<smem>>
    %411 = vector.broadcast %410 : f32 to vector<2x288xf32>
    %412 = arith.mulf %411, %401 : vector<2x288xf32>
    %413 = arith.addf %395, %412 : vector<2x288xf32>
    %c130 = arith.constant 130 : index
    %414 = memref.load %arg2[%c130] : memref<144xf32, #tpu.memory_space<smem>>
    %415 = vector.broadcast %414 : f32 to vector<2x288xf32>
    %416 = arith.mulf %415, %401 : vector<2x288xf32>
    %417 = arith.addf %399, %416 : vector<2x288xf32>
    %c0_72 = arith.constant 0 : index
    %c3_73 = arith.constant 3 : index
    %c20_74 = arith.constant 20 : index
    %418 = vector.load %arg1[%c0_72, %c3_73, %c20_74] : memref<2x4x326xf32, #tpu.memory_space<vmem>>, vector<2x1x288xf32>
    %419 = vector.shape_cast %418 : vector<2x1x288xf32> to vector<2x288xf32>
    %c23 = arith.constant 23 : index
    %420 = memref.load %arg2[%c23] : memref<144xf32, #tpu.memory_space<smem>>
    %421 = vector.broadcast %420 : f32 to vector<2x288xf32>
    %422 = arith.mulf %421, %419 : vector<2x288xf32>
    %423 = arith.addf %405, %422 : vector<2x288xf32>
    %c59 = arith.constant 59 : index
    %424 = memref.load %arg2[%c59] : memref<144xf32, #tpu.memory_space<smem>>
    %425 = vector.broadcast %424 : f32 to vector<2x288xf32>
    %426 = arith.mulf %425, %419 : vector<2x288xf32>
    %427 = arith.addf %409, %426 : vector<2x288xf32>
    %c95 = arith.constant 95 : index
    %428 = memref.load %arg2[%c95] : memref<144xf32, #tpu.memory_space<smem>>
    %429 = vector.broadcast %428 : f32 to vector<2x288xf32>
    %430 = arith.mulf %429, %419 : vector<2x288xf32>
    %431 = arith.addf %413, %430 : vector<2x288xf32>
    %c131 = arith.constant 131 : index
    %432 = memref.load %arg2[%c131] : memref<144xf32, #tpu.memory_space<smem>>
    %433 = vector.broadcast %432 : f32 to vector<2x288xf32>
    %434 = arith.mulf %433, %419 : vector<2x288xf32>
    %435 = arith.addf %417, %434 : vector<2x288xf32>
    %c0_75 = arith.constant 0 : index
    %c0_76 = arith.constant 0 : index
    %c36_77 = arith.constant 36 : index
    %436 = vector.load %arg1[%c0_75, %c0_76, %c36_77] : memref<2x4x326xf32, #tpu.memory_space<vmem>>, vector<2x1x288xf32>
    %437 = vector.shape_cast %436 : vector<2x1x288xf32> to vector<2x288xf32>
    %c24 = arith.constant 24 : index
    %438 = memref.load %arg2[%c24] : memref<144xf32, #tpu.memory_space<smem>>
    %439 = vector.broadcast %438 : f32 to vector<2x288xf32>
    %440 = arith.mulf %439, %437 : vector<2x288xf32>
    %441 = arith.addf %423, %440 : vector<2x288xf32>
    %c60 = arith.constant 60 : index
    %442 = memref.load %arg2[%c60] : memref<144xf32, #tpu.memory_space<smem>>
    %443 = vector.broadcast %442 : f32 to vector<2x288xf32>
    %444 = arith.mulf %443, %437 : vector<2x288xf32>
    %445 = arith.addf %427, %444 : vector<2x288xf32>
    %c96 = arith.constant 96 : index
    %446 = memref.load %arg2[%c96] : memref<144xf32, #tpu.memory_space<smem>>
    %447 = vector.broadcast %446 : f32 to vector<2x288xf32>
    %448 = arith.mulf %447, %437 : vector<2x288xf32>
    %449 = arith.addf %431, %448 : vector<2x288xf32>
    %c132 = arith.constant 132 : index
    %450 = memref.load %arg2[%c132] : memref<144xf32, #tpu.memory_space<smem>>
    %451 = vector.broadcast %450 : f32 to vector<2x288xf32>
    %452 = arith.mulf %451, %437 : vector<2x288xf32>
    %453 = arith.addf %435, %452 : vector<2x288xf32>
    %c0_78 = arith.constant 0 : index
    %c1_79 = arith.constant 1 : index
    %c36_80 = arith.constant 36 : index
    %454 = vector.load %arg1[%c0_78, %c1_79, %c36_80] : memref<2x4x326xf32, #tpu.memory_space<vmem>>, vector<2x1x288xf32>
    %455 = vector.shape_cast %454 : vector<2x1x288xf32> to vector<2x288xf32>
    %c25 = arith.constant 25 : index
    %456 = memref.load %arg2[%c25] : memref<144xf32, #tpu.memory_space<smem>>
    %457 = vector.broadcast %456 : f32 to vector<2x288xf32>
    %458 = arith.mulf %457, %455 : vector<2x288xf32>
    %459 = arith.addf %441, %458 : vector<2x288xf32>
    %c61 = arith.constant 61 : index
    %460 = memref.load %arg2[%c61] : memref<144xf32, #tpu.memory_space<smem>>
    %461 = vector.broadcast %460 : f32 to vector<2x288xf32>
    %462 = arith.mulf %461, %455 : vector<2x288xf32>
    %463 = arith.addf %445, %462 : vector<2x288xf32>
    %c97 = arith.constant 97 : index
    %464 = memref.load %arg2[%c97] : memref<144xf32, #tpu.memory_space<smem>>
    %465 = vector.broadcast %464 : f32 to vector<2x288xf32>
    %466 = arith.mulf %465, %455 : vector<2x288xf32>
    %467 = arith.addf %449, %466 : vector<2x288xf32>
    %c133 = arith.constant 133 : index
    %468 = memref.load %arg2[%c133] : memref<144xf32, #tpu.memory_space<smem>>
    %469 = vector.broadcast %468 : f32 to vector<2x288xf32>
    %470 = arith.mulf %469, %455 : vector<2x288xf32>
    %471 = arith.addf %453, %470 : vector<2x288xf32>
    %c0_81 = arith.constant 0 : index
    %c2_82 = arith.constant 2 : index
    %c36_83 = arith.constant 36 : index
    %472 = vector.load %arg1[%c0_81, %c2_82, %c36_83] : memref<2x4x326xf32, #tpu.memory_space<vmem>>, vector<2x1x288xf32>
    %473 = vector.shape_cast %472 : vector<2x1x288xf32> to vector<2x288xf32>
    %c26 = arith.constant 26 : index
    %474 = memref.load %arg2[%c26] : memref<144xf32, #tpu.memory_space<smem>>
    %475 = vector.broadcast %474 : f32 to vector<2x288xf32>
    %476 = arith.mulf %475, %473 : vector<2x288xf32>
    %477 = arith.addf %459, %476 : vector<2x288xf32>
    %c62 = arith.constant 62 : index
    %478 = memref.load %arg2[%c62] : memref<144xf32, #tpu.memory_space<smem>>
    %479 = vector.broadcast %478 : f32 to vector<2x288xf32>
    %480 = arith.mulf %479, %473 : vector<2x288xf32>
    %481 = arith.addf %463, %480 : vector<2x288xf32>
    %c98 = arith.constant 98 : index
    %482 = memref.load %arg2[%c98] : memref<144xf32, #tpu.memory_space<smem>>
    %483 = vector.broadcast %482 : f32 to vector<2x288xf32>
    %484 = arith.mulf %483, %473 : vector<2x288xf32>
    %485 = arith.addf %467, %484 : vector<2x288xf32>
    %c134 = arith.constant 134 : index
    %486 = memref.load %arg2[%c134] : memref<144xf32, #tpu.memory_space<smem>>
    %487 = vector.broadcast %486 : f32 to vector<2x288xf32>
    %488 = arith.mulf %487, %473 : vector<2x288xf32>
    %489 = arith.addf %471, %488 : vector<2x288xf32>
    %c0_84 = arith.constant 0 : index
    %c3_85 = arith.constant 3 : index
    %c36_86 = arith.constant 36 : index
    %490 = vector.load %arg1[%c0_84, %c3_85, %c36_86] : memref<2x4x326xf32, #tpu.memory_space<vmem>>, vector<2x1x288xf32>
    %491 = vector.shape_cast %490 : vector<2x1x288xf32> to vector<2x288xf32>
    %c27 = arith.constant 27 : index
    %492 = memref.load %arg2[%c27] : memref<144xf32, #tpu.memory_space<smem>>
    %493 = vector.broadcast %492 : f32 to vector<2x288xf32>
    %494 = arith.mulf %493, %491 : vector<2x288xf32>
    %495 = arith.addf %477, %494 : vector<2x288xf32>
    %c63 = arith.constant 63 : index
    %496 = memref.load %arg2[%c63] : memref<144xf32, #tpu.memory_space<smem>>
    %497 = vector.broadcast %496 : f32 to vector<2x288xf32>
    %498 = arith.mulf %497, %491 : vector<2x288xf32>
    %499 = arith.addf %481, %498 : vector<2x288xf32>
    %c99 = arith.constant 99 : index
    %500 = memref.load %arg2[%c99] : memref<144xf32, #tpu.memory_space<smem>>
    %501 = vector.broadcast %500 : f32 to vector<2x288xf32>
    %502 = arith.mulf %501, %491 : vector<2x288xf32>
    %503 = arith.addf %485, %502 : vector<2x288xf32>
    %c135 = arith.constant 135 : index
    %504 = memref.load %arg2[%c135] : memref<144xf32, #tpu.memory_space<smem>>
    %505 = vector.broadcast %504 : f32 to vector<2x288xf32>
    %506 = arith.mulf %505, %491 : vector<2x288xf32>
    %507 = arith.addf %489, %506 : vector<2x288xf32>
    %c0_87 = arith.constant 0 : index
    %c0_88 = arith.constant 0 : index
    %c37_89 = arith.constant 37 : index
    %508 = vector.load %arg1[%c0_87, %c0_88, %c37_89] : memref<2x4x326xf32, #tpu.memory_space<vmem>>, vector<2x1x288xf32>
    %509 = vector.shape_cast %508 : vector<2x1x288xf32> to vector<2x288xf32>
    %c28 = arith.constant 28 : index
    %510 = memref.load %arg2[%c28] : memref<144xf32, #tpu.memory_space<smem>>
    %511 = vector.broadcast %510 : f32 to vector<2x288xf32>
    %512 = arith.mulf %511, %509 : vector<2x288xf32>
    %513 = arith.addf %495, %512 : vector<2x288xf32>
    %c64 = arith.constant 64 : index
    %514 = memref.load %arg2[%c64] : memref<144xf32, #tpu.memory_space<smem>>
    %515 = vector.broadcast %514 : f32 to vector<2x288xf32>
    %516 = arith.mulf %515, %509 : vector<2x288xf32>
    %517 = arith.addf %499, %516 : vector<2x288xf32>
    %c100 = arith.constant 100 : index
    %518 = memref.load %arg2[%c100] : memref<144xf32, #tpu.memory_space<smem>>
    %519 = vector.broadcast %518 : f32 to vector<2x288xf32>
    %520 = arith.mulf %519, %509 : vector<2x288xf32>
    %521 = arith.addf %503, %520 : vector<2x288xf32>
    %c136 = arith.constant 136 : index
    %522 = memref.load %arg2[%c136] : memref<144xf32, #tpu.memory_space<smem>>
    %523 = vector.broadcast %522 : f32 to vector<2x288xf32>
    %524 = arith.mulf %523, %509 : vector<2x288xf32>
    %525 = arith.addf %507, %524 : vector<2x288xf32>
    %c0_90 = arith.constant 0 : index
    %c1_91 = arith.constant 1 : index
    %c37_92 = arith.constant 37 : index
    %526 = vector.load %arg1[%c0_90, %c1_91, %c37_92] : memref<2x4x326xf32, #tpu.memory_space<vmem>>, vector<2x1x288xf32>
    %527 = vector.shape_cast %526 : vector<2x1x288xf32> to vector<2x288xf32>
    %c29 = arith.constant 29 : index
    %528 = memref.load %arg2[%c29] : memref<144xf32, #tpu.memory_space<smem>>
    %529 = vector.broadcast %528 : f32 to vector<2x288xf32>
    %530 = arith.mulf %529, %527 : vector<2x288xf32>
    %531 = arith.addf %513, %530 : vector<2x288xf32>
    %c65 = arith.constant 65 : index
    %532 = memref.load %arg2[%c65] : memref<144xf32, #tpu.memory_space<smem>>
    %533 = vector.broadcast %532 : f32 to vector<2x288xf32>
    %534 = arith.mulf %533, %527 : vector<2x288xf32>
    %535 = arith.addf %517, %534 : vector<2x288xf32>
    %c101 = arith.constant 101 : index
    %536 = memref.load %arg2[%c101] : memref<144xf32, #tpu.memory_space<smem>>
    %537 = vector.broadcast %536 : f32 to vector<2x288xf32>
    %538 = arith.mulf %537, %527 : vector<2x288xf32>
    %539 = arith.addf %521, %538 : vector<2x288xf32>
    %c137 = arith.constant 137 : index
    %540 = memref.load %arg2[%c137] : memref<144xf32, #tpu.memory_space<smem>>
    %541 = vector.broadcast %540 : f32 to vector<2x288xf32>
    %542 = arith.mulf %541, %527 : vector<2x288xf32>
    %543 = arith.addf %525, %542 : vector<2x288xf32>
    %c0_93 = arith.constant 0 : index
    %c2_94 = arith.constant 2 : index
    %c37_95 = arith.constant 37 : index
    %544 = vector.load %arg1[%c0_93, %c2_94, %c37_95] : memref<2x4x326xf32, #tpu.memory_space<vmem>>, vector<2x1x288xf32>
    %545 = vector.shape_cast %544 : vector<2x1x288xf32> to vector<2x288xf32>
    %c30 = arith.constant 30 : index
    %546 = memref.load %arg2[%c30] : memref<144xf32, #tpu.memory_space<smem>>
    %547 = vector.broadcast %546 : f32 to vector<2x288xf32>
    %548 = arith.mulf %547, %545 : vector<2x288xf32>
    %549 = arith.addf %531, %548 : vector<2x288xf32>
    %c66 = arith.constant 66 : index
    %550 = memref.load %arg2[%c66] : memref<144xf32, #tpu.memory_space<smem>>
    %551 = vector.broadcast %550 : f32 to vector<2x288xf32>
    %552 = arith.mulf %551, %545 : vector<2x288xf32>
    %553 = arith.addf %535, %552 : vector<2x288xf32>
    %c102 = arith.constant 102 : index
    %554 = memref.load %arg2[%c102] : memref<144xf32, #tpu.memory_space<smem>>
    %555 = vector.broadcast %554 : f32 to vector<2x288xf32>
    %556 = arith.mulf %555, %545 : vector<2x288xf32>
    %557 = arith.addf %539, %556 : vector<2x288xf32>
    %c138 = arith.constant 138 : index
    %558 = memref.load %arg2[%c138] : memref<144xf32, #tpu.memory_space<smem>>
    %559 = vector.broadcast %558 : f32 to vector<2x288xf32>
    %560 = arith.mulf %559, %545 : vector<2x288xf32>
    %561 = arith.addf %543, %560 : vector<2x288xf32>
    %c0_96 = arith.constant 0 : index
    %c3_97 = arith.constant 3 : index
    %c37_98 = arith.constant 37 : index
    %562 = vector.load %arg1[%c0_96, %c3_97, %c37_98] : memref<2x4x326xf32, #tpu.memory_space<vmem>>, vector<2x1x288xf32>
    %563 = vector.shape_cast %562 : vector<2x1x288xf32> to vector<2x288xf32>
    %c31 = arith.constant 31 : index
    %564 = memref.load %arg2[%c31] : memref<144xf32, #tpu.memory_space<smem>>
    %565 = vector.broadcast %564 : f32 to vector<2x288xf32>
    %566 = arith.mulf %565, %563 : vector<2x288xf32>
    %567 = arith.addf %549, %566 : vector<2x288xf32>
    %c67 = arith.constant 67 : index
    %568 = memref.load %arg2[%c67] : memref<144xf32, #tpu.memory_space<smem>>
    %569 = vector.broadcast %568 : f32 to vector<2x288xf32>
    %570 = arith.mulf %569, %563 : vector<2x288xf32>
    %571 = arith.addf %553, %570 : vector<2x288xf32>
    %c103 = arith.constant 103 : index
    %572 = memref.load %arg2[%c103] : memref<144xf32, #tpu.memory_space<smem>>
    %573 = vector.broadcast %572 : f32 to vector<2x288xf32>
    %574 = arith.mulf %573, %563 : vector<2x288xf32>
    %575 = arith.addf %557, %574 : vector<2x288xf32>
    %c139 = arith.constant 139 : index
    %576 = memref.load %arg2[%c139] : memref<144xf32, #tpu.memory_space<smem>>
    %577 = vector.broadcast %576 : f32 to vector<2x288xf32>
    %578 = arith.mulf %577, %563 : vector<2x288xf32>
    %579 = arith.addf %561, %578 : vector<2x288xf32>
    %c0_99 = arith.constant 0 : index
    %c0_100 = arith.constant 0 : index
    %c38_101 = arith.constant 38 : index
    %580 = vector.load %arg1[%c0_99, %c0_100, %c38_101] : memref<2x4x326xf32, #tpu.memory_space<vmem>>, vector<2x1x288xf32>
    %581 = vector.shape_cast %580 : vector<2x1x288xf32> to vector<2x288xf32>
    %c32 = arith.constant 32 : index
    %582 = memref.load %arg2[%c32] : memref<144xf32, #tpu.memory_space<smem>>
    %583 = vector.broadcast %582 : f32 to vector<2x288xf32>
    %584 = arith.mulf %583, %581 : vector<2x288xf32>
    %585 = arith.addf %567, %584 : vector<2x288xf32>
    %c68 = arith.constant 68 : index
    %586 = memref.load %arg2[%c68] : memref<144xf32, #tpu.memory_space<smem>>
    %587 = vector.broadcast %586 : f32 to vector<2x288xf32>
    %588 = arith.mulf %587, %581 : vector<2x288xf32>
    %589 = arith.addf %571, %588 : vector<2x288xf32>
    %c104 = arith.constant 104 : index
    %590 = memref.load %arg2[%c104] : memref<144xf32, #tpu.memory_space<smem>>
    %591 = vector.broadcast %590 : f32 to vector<2x288xf32>
    %592 = arith.mulf %591, %581 : vector<2x288xf32>
    %593 = arith.addf %575, %592 : vector<2x288xf32>
    %c140 = arith.constant 140 : index
    %594 = memref.load %arg2[%c140] : memref<144xf32, #tpu.memory_space<smem>>
    %595 = vector.broadcast %594 : f32 to vector<2x288xf32>
    %596 = arith.mulf %595, %581 : vector<2x288xf32>
    %597 = arith.addf %579, %596 : vector<2x288xf32>
    %c0_102 = arith.constant 0 : index
    %c1_103 = arith.constant 1 : index
    %c38_104 = arith.constant 38 : index
    %598 = vector.load %arg1[%c0_102, %c1_103, %c38_104] : memref<2x4x326xf32, #tpu.memory_space<vmem>>, vector<2x1x288xf32>
    %599 = vector.shape_cast %598 : vector<2x1x288xf32> to vector<2x288xf32>
    %c33 = arith.constant 33 : index
    %600 = memref.load %arg2[%c33] : memref<144xf32, #tpu.memory_space<smem>>
    %601 = vector.broadcast %600 : f32 to vector<2x288xf32>
    %602 = arith.mulf %601, %599 : vector<2x288xf32>
    %603 = arith.addf %585, %602 : vector<2x288xf32>
    %c69 = arith.constant 69 : index
    %604 = memref.load %arg2[%c69] : memref<144xf32, #tpu.memory_space<smem>>
    %605 = vector.broadcast %604 : f32 to vector<2x288xf32>
    %606 = arith.mulf %605, %599 : vector<2x288xf32>
    %607 = arith.addf %589, %606 : vector<2x288xf32>
    %c105 = arith.constant 105 : index
    %608 = memref.load %arg2[%c105] : memref<144xf32, #tpu.memory_space<smem>>
    %609 = vector.broadcast %608 : f32 to vector<2x288xf32>
    %610 = arith.mulf %609, %599 : vector<2x288xf32>
    %611 = arith.addf %593, %610 : vector<2x288xf32>
    %c141 = arith.constant 141 : index
    %612 = memref.load %arg2[%c141] : memref<144xf32, #tpu.memory_space<smem>>
    %613 = vector.broadcast %612 : f32 to vector<2x288xf32>
    %614 = arith.mulf %613, %599 : vector<2x288xf32>
    %615 = arith.addf %597, %614 : vector<2x288xf32>
    %c0_105 = arith.constant 0 : index
    %c2_106 = arith.constant 2 : index
    %c38_107 = arith.constant 38 : index
    %616 = vector.load %arg1[%c0_105, %c2_106, %c38_107] : memref<2x4x326xf32, #tpu.memory_space<vmem>>, vector<2x1x288xf32>
    %617 = vector.shape_cast %616 : vector<2x1x288xf32> to vector<2x288xf32>
    %c34 = arith.constant 34 : index
    %618 = memref.load %arg2[%c34] : memref<144xf32, #tpu.memory_space<smem>>
    %619 = vector.broadcast %618 : f32 to vector<2x288xf32>
    %620 = arith.mulf %619, %617 : vector<2x288xf32>
    %621 = arith.addf %603, %620 : vector<2x288xf32>
    %c70 = arith.constant 70 : index
    %622 = memref.load %arg2[%c70] : memref<144xf32, #tpu.memory_space<smem>>
    %623 = vector.broadcast %622 : f32 to vector<2x288xf32>
    %624 = arith.mulf %623, %617 : vector<2x288xf32>
    %625 = arith.addf %607, %624 : vector<2x288xf32>
    %c106 = arith.constant 106 : index
    %626 = memref.load %arg2[%c106] : memref<144xf32, #tpu.memory_space<smem>>
    %627 = vector.broadcast %626 : f32 to vector<2x288xf32>
    %628 = arith.mulf %627, %617 : vector<2x288xf32>
    %629 = arith.addf %611, %628 : vector<2x288xf32>
    %c142 = arith.constant 142 : index
    %630 = memref.load %arg2[%c142] : memref<144xf32, #tpu.memory_space<smem>>
    %631 = vector.broadcast %630 : f32 to vector<2x288xf32>
    %632 = arith.mulf %631, %617 : vector<2x288xf32>
    %633 = arith.addf %615, %632 : vector<2x288xf32>
    %c0_108 = arith.constant 0 : index
    %c3_109 = arith.constant 3 : index
    %c38_110 = arith.constant 38 : index
    %634 = vector.load %arg1[%c0_108, %c3_109, %c38_110] : memref<2x4x326xf32, #tpu.memory_space<vmem>>, vector<2x1x288xf32>
    %635 = vector.shape_cast %634 : vector<2x1x288xf32> to vector<2x288xf32>
    %c35 = arith.constant 35 : index
    %636 = memref.load %arg2[%c35] : memref<144xf32, #tpu.memory_space<smem>>
    %637 = vector.broadcast %636 : f32 to vector<2x288xf32>
    %638 = arith.mulf %637, %635 : vector<2x288xf32>
    %639 = arith.addf %621, %638 : vector<2x288xf32>
    %c71 = arith.constant 71 : index
    %640 = memref.load %arg2[%c71] : memref<144xf32, #tpu.memory_space<smem>>
    %641 = vector.broadcast %640 : f32 to vector<2x288xf32>
    %642 = arith.mulf %641, %635 : vector<2x288xf32>
    %643 = arith.addf %625, %642 : vector<2x288xf32>
    %c107 = arith.constant 107 : index
    %644 = memref.load %arg2[%c107] : memref<144xf32, #tpu.memory_space<smem>>
    %645 = vector.broadcast %644 : f32 to vector<2x288xf32>
    %646 = arith.mulf %645, %635 : vector<2x288xf32>
    %647 = arith.addf %629, %646 : vector<2x288xf32>
    %c143 = arith.constant 143 : index
    %648 = memref.load %arg2[%c143] : memref<144xf32, #tpu.memory_space<smem>>
    %649 = vector.broadcast %648 : f32 to vector<2x288xf32>
    %650 = arith.mulf %649, %635 : vector<2x288xf32>
    %651 = arith.addf %633, %650 : vector<2x288xf32>
    %cst_111 = arith.constant 0.000000e+00 : f32
    %652 = vector.broadcast %cst_111 : f32 to vector<2x288xf32>
    %c0_112 = arith.constant 0 : index
    %653 = memref.load %arg3[%c0_112] : memref<4xf32, #tpu.memory_space<smem>>
    %654 = vector.broadcast %653 : f32 to vector<2x288xf32>
    %655 = arith.addf %639, %654 : vector<2x288xf32>
    %cst_113 = arith.constant 0.000000e+00 : f32
    %656 = vector.broadcast %cst_113 : f32 to vector<2x288xf32>
    %657 = arith.cmpf oge, %655, %656 : vector<2x288xf32>
    %cst_114 = arith.constant 2.000000e-01 : f32
    %658 = vector.broadcast %cst_114 : f32 to vector<2x288xf32>
    %659 = arith.mulf %658, %655 : vector<2x288xf32>
    %660 = arith.select %657, %655, %659 : vector<2x288xi1>, vector<2x288xf32>
    %c0_115 = arith.constant 0 : index
    %661 = memref.load %arg4[%c0_115] : memref<4xf32, #tpu.memory_space<smem>>
    %662 = vector.broadcast %661 : f32 to vector<2x288xf32>
    %663 = arith.mulf %662, %660 : vector<2x288xf32>
    %664 = arith.addf %652, %663 : vector<2x288xf32>
    %c1_116 = arith.constant 1 : index
    %665 = memref.load %arg3[%c1_116] : memref<4xf32, #tpu.memory_space<smem>>
    %666 = vector.broadcast %665 : f32 to vector<2x288xf32>
    %667 = arith.addf %643, %666 : vector<2x288xf32>
    %cst_117 = arith.constant 0.000000e+00 : f32
    %668 = vector.broadcast %cst_117 : f32 to vector<2x288xf32>
    %669 = arith.cmpf oge, %667, %668 : vector<2x288xf32>
    %cst_118 = arith.constant 2.000000e-01 : f32
    %670 = vector.broadcast %cst_118 : f32 to vector<2x288xf32>
    %671 = arith.mulf %670, %667 : vector<2x288xf32>
    %672 = arith.select %669, %667, %671 : vector<2x288xi1>, vector<2x288xf32>
    %c1_119 = arith.constant 1 : index
    %673 = memref.load %arg4[%c1_119] : memref<4xf32, #tpu.memory_space<smem>>
    %674 = vector.broadcast %673 : f32 to vector<2x288xf32>
    %675 = arith.mulf %674, %672 : vector<2x288xf32>
    %676 = arith.addf %664, %675 : vector<2x288xf32>
    %c2_120 = arith.constant 2 : index
    %677 = memref.load %arg3[%c2_120] : memref<4xf32, #tpu.memory_space<smem>>
    %678 = vector.broadcast %677 : f32 to vector<2x288xf32>
    %679 = arith.addf %647, %678 : vector<2x288xf32>
    %cst_121 = arith.constant 0.000000e+00 : f32
    %680 = vector.broadcast %cst_121 : f32 to vector<2x288xf32>
    %681 = arith.cmpf oge, %679, %680 : vector<2x288xf32>
    %cst_122 = arith.constant 2.000000e-01 : f32
    %682 = vector.broadcast %cst_122 : f32 to vector<2x288xf32>
    %683 = arith.mulf %682, %679 : vector<2x288xf32>
    %684 = arith.select %681, %679, %683 : vector<2x288xi1>, vector<2x288xf32>
    %c2_123 = arith.constant 2 : index
    %685 = memref.load %arg4[%c2_123] : memref<4xf32, #tpu.memory_space<smem>>
    %686 = vector.broadcast %685 : f32 to vector<2x288xf32>
    %687 = arith.mulf %686, %684 : vector<2x288xf32>
    %688 = arith.addf %676, %687 : vector<2x288xf32>
    %c3_124 = arith.constant 3 : index
    %689 = memref.load %arg3[%c3_124] : memref<4xf32, #tpu.memory_space<smem>>
    %690 = vector.broadcast %689 : f32 to vector<2x288xf32>
    %691 = arith.addf %651, %690 : vector<2x288xf32>
    %cst_125 = arith.constant 0.000000e+00 : f32
    %692 = vector.broadcast %cst_125 : f32 to vector<2x288xf32>
    %693 = arith.cmpf oge, %691, %692 : vector<2x288xf32>
    %cst_126 = arith.constant 2.000000e-01 : f32
    %694 = vector.broadcast %cst_126 : f32 to vector<2x288xf32>
    %695 = arith.mulf %694, %691 : vector<2x288xf32>
    %696 = arith.select %693, %691, %695 : vector<2x288xi1>, vector<2x288xf32>
    %c3_127 = arith.constant 3 : index
    %697 = memref.load %arg4[%c3_127] : memref<4xf32, #tpu.memory_space<smem>>
    %698 = vector.broadcast %697 : f32 to vector<2x288xf32>
    %699 = arith.mulf %698, %696 : vector<2x288xf32>
    %700 = arith.addf %688, %699 : vector<2x288xf32>
    %c0_128 = arith.constant 0 : index
    %701 = memref.load %arg5[%c0_128] : memref<1xf32, #tpu.memory_space<smem>>
    %702 = vector.broadcast %701 : f32 to vector<2x288xf32>
    %703 = arith.addf %700, %702 : vector<2x288xf32>
    %704 = arith.negf %703 : vector<2x288xf32>
    %705 = math.exp %704 : vector<2x288xf32>
    %cst_129 = arith.constant 1.000000e+00 : f32
    %706 = vector.broadcast %cst_129 : f32 to vector<2x288xf32>
    %707 = arith.addf %706, %705 : vector<2x288xf32>
    %708 = arith.divf %706, %707 : vector<2x288xf32>
    %c0_130 = arith.constant 0 : index
    %c0_131 = arith.constant 0 : index
    %709 = vector.load %arg6[%c0_130, %c0_131] : memref<2x288xf32, #tpu.memory_space<vmem>>, vector<2x288xf32>
    tpu.vector_store %arg6[%c0_130, %c0_131], %708 {strides = array<i32>} : memref<2x288xf32, #tpu.memory_space<vmem>>, vector<2x288xf32>,
    return
  }
  func.func @transform_0(%arg0: i32) -> (i32, i32, i32) {
    %c0_i32 = arith.constant 0 : i32
    %c0_i32_0 = arith.constant 0 : i32
    %c0_i32_1 = arith.constant 0 : i32
    return %arg0, %c0_i32, %c0_i32_0 : i32, i32, i32
  }
  func.func @transform_1(%arg0: i32) -> i32 {
    %c0_i32 = arith.constant 0 : i32
    %c0_i32_0 = arith.constant 0 : i32
    return %c0_i32 : i32
  }
  func.func @transform_2(%arg0: i32) -> i32 {
    %c0_i32 = arith.constant 0 : i32
    %c0_i32_0 = arith.constant 0 : i32
    return %c0_i32 : i32
  }
  func.func @transform_3(%arg0: i32) -> i32 {
    %c0_i32 = arith.constant 0 : i32
    %c0_i32_0 = arith.constant 0 : i32
    return %c0_i32 : i32
  }
  func.func @transform_4(%arg0: i32) -> i32 {
    %c0_i32 = arith.constant 0 : i32
    %c0_i32_0 = arith.constant 0 : i32
    return %c0_i32 : i32
  }
  func.func @transform_5(%arg0: i32) -> (i32, i32) {
    %c0_i32 = arith.constant 0 : i32
    %c0_i32_0 = arith.constant 0 : i32
    return %arg0, %c0_i32 : i32, i32
  }
}

</mosaic_0001>

<bundles_post_ra>
// kernel: mul.0
= control target key start
LH: loop header
LB: loop body
LE: loop exit
PB: predicated region body
PF: predicated region fallthrough
CT: control target
= control target key end

     0   :  { %s34_s0 = inlined_call_operand.vmem [shape: f32[144], index: 0, kind: input, shape index: {}]   ;;  %s35_s1 = inlined_call_operand.vmem [shape: f32[144], index: 1, kind: input, shape index: {}]   ;;  %s36_s2 = inlined_call_operand.vmem [shape: f32[144], index: 2, kind: output, shape index: {}]  }
   0x1   :  { %v3_v0 = vld [vmem:[%s34_s0] sm:$0x3] }
   0x2   :  { %v4_v1 = vld [vmem:[%s35_s1] sm:$0x3] }
   0x3   :  { %v7_v2 = vmul.f32 %v4_v1, %v3_v0 }
   0x5   :  { %9 = vst [vmem:[%s36_s2] sm:$0x3] %v7_v2 }

// kernel: cbr3c1_confidence.1
= control target key start
LH: loop header
LB: loop body
LE: loop exit
PB: predicated region body
PF: predicated region fallthrough
CT: control target
= control target key end

     0   :  { %11 = vsyncpa [#allocation4], 0  ;;  %s4974_s0 = inlined_call_operand.vmem [shape: f32[2,4,326], index: 0, kind: input, shape index: {}]   ;;  %s4975_s1 = inlined_call_operand.vmem [shape: f32[144], index: 1, kind: input, shape index: {}]   ;;  %s4976_s2 = inlined_call_operand.vmem [shape: f32[4], index: 2, kind: input, shape index: {}]   ;;  %s4977_s3 = inlined_call_operand.vmem [shape: f32[4], index: 3, kind: input, shape index: {}]   ;;  %s4978_s4 = inlined_call_operand.<no memory space> [shape: f32[1], index: 4, kind: input, shape index: {}]   ;;  %s4979_s5 = inlined_call_operand.vmem [shape: f32[2,288], index: 5, kind: output, shape index: {}]  }
   0x1   :  { %12 = vsyncpa [#allocation6], 0  ;;  %s31_s20 = sshll.u32 %s4976_s2, 4  ;;  %s21_s23 = sshll.u32 %s4975_s1, 4  ;;  %s32_s20 = int_to_ptr.vmem [resolvable:$true] %s31_s20  ;;  %s22_s23 = int_to_ptr.vmem [resolvable:$true] %s21_s23 }
   0x2   :  { %s2777_s24 = scalar_lea.vmem %s32_s20, 16  ;;  %p2782_p1 = scmp.lt.s32.totalorder %s32_s20, %s32_s20 }
   0x3   :  { %p2778_p0 = scmp.ne.s32.totalorder %s32_s20, %s2777_s24  ;;  %p2783_p2 = scmp.lt.s32.totalorder %s2777_s24, %s2777_s24 }
   0x5   :  { %p2784_p3 = por %p2783_p2, %p2782_p1 }
   0x7   :  { %p2785_p4 = pnand %p2784_p3, %p2778_p0 }
   0x9   :  { %2788 = shalt.err (!%p2785_p4)
}
   0xa   :  { %s2817_s25 = smov [#allocation5]   ;;  %s2789_s26 = scalar_lea.vmem %s22_s23, 32 }
   0xb   :  { %34 = dma.vmem_to_smem %s32_s20, 16, %s2817_s25, [#allocation6]  }
   0xc   :  { %p2790_p5 = scmp.ne.s32.totalorder %s22_s23, %s2789_s26  ;;  %p2794_p6 = scmp.lt.s32.totalorder %s22_s23, %s22_s23 }
   0xd   :  { %p2795_p7 = scmp.lt.s32.totalorder %s2789_s26, %s2789_s26 }
   0xf   :  { %p2796_p8 = por %p2795_p7, %p2794_p6 }
  0x11   :  { %p2797_p9 = pnand %p2796_p8, %p2790_p5 }
  0x13   :  { %2800 = shalt.err (!%p2797_p9)
}
  0x14   :  { %s2818_s2 = smov [#allocation3]   ;;  %s41_s28 = sshll.u32 %s4977_s3, 4  ;;  %s42_s28 = int_to_ptr.vmem [resolvable:$true] %s41_s28 }
  0x15   :  { %24 = dma.vmem_to_smem %s22_s23, 32, %s2818_s2, [#allocation4]  }
  0x16   :  { %s2801_s29 = scalar_lea.vmem %s42_s28, 16  ;;  %p2806_p11 = scmp.lt.s32.totalorder %s42_s28, %s42_s28 }
  0x17   :  { %p2802_p10 = scmp.ne.s32.totalorder %s42_s28, %s2801_s29  ;;  %p2807_p12 = scmp.lt.s32.totalorder %s2801_s29, %s2801_s29 }
  0x19   :  { %p2808_p13 = por %p2807_p12, %p2806_p11 }
  0x1b   :  { %p2809_p0 = pnand %p2808_p13, %p2802_p10 }
  0x1d   :  { %2812 = shalt.err (!%p2809_p0)
}
  0x1e   :  { %s2819_s30 = smov [#allocation7]  }
  0x1f   :  { %44 = dma.vmem_to_smem %s42_s28, 16, %s2819_s30, [#allocation6]  }
  0x20   :  { %2813 = dma.done.wait [#allocation4], 32  }
  0x21   :  { %2814 = vsyncadd [#allocation4], 4294967264 }
  0x22   :  { %2815 = dma.done.wait [#allocation6], 32  }
  0x23   :  { %2816 = vsyncadd [#allocation6], 4294967264 }
  0x24   :  { %56 = sfence }
  0x25   :  { %s2606_s6 = sld [smem:[#allocation3 + $0x28]]  ;;  %s2605_s7 = sld [smem:[#allocation3 + $0x4]]  ;;  %v2871_v0 = vld [vmem:[%s4974_s0] ss:$4 sm:$0x7]  ;;  %vm180_vm0 = vcmask 1039360  }
  0x26   :  { %s2607_s8 = sld [smem:[#allocation3 + $0x4c]]  ;;  %v2876_v1 = vld [vmem:[%s4974_s0 + $0xc] ss:$4 sm:$0x7]  ;;  %s2608_s12 = sld [smem:[#allocation3 + $0x70]]  ;;  %vm469_vm1 = vcmask 1031168  }
  0x27   :  { %s2820_s13 = smov 127   ;;  %s2609_s14 = sld [smem:[#allocation3 + $0x5]]  ;;  %v2895_v14 = vld [vmem:[%s4974_s0 + $0xd] ss:$4 sm:$0x7]  ;;  %vm758_vm2 = vcmask 900096  }
  0x28   :  { %s2610_s15 = sld [smem:[#allocation3 + $0x29]]  ;;  %s2611_s18 = sld [smem:[#allocation3 + $0x4d]]  ;;  %v2900_v16 = vld [vmem:[%s4974_s0 + $0x1] ss:$4 sm:$0x7]  ;;  %vm1047_vm3 = vcmask 891904  }
  0x29   :  { %s2612_s21 = sld [smem:[#allocation3 + $0x71]]  ;;  %s2613_s22 = sld [smem:[#allocation3 + $0x6]]  ;;  %v2921_v28 = vld [vmem:[%s4974_s0 + $0xe] ss:$4 sm:$0x7]  ;;  %vm1336_vm4 = vcmask 883712  }
  0x2a   :  { %s2614_s23 = sld [smem:[#allocation3 + $0x2a]]  ;;  %s2615_s26 = sld [smem:[#allocation3 + $0x4e]]  ;;  %v2926_v30 = vld [vmem:[%s4974_s0 + $0x2] ss:$4 sm:$0x7]  ;;  %vm1625_vm5 = vcmask 752640  }
  0x2b   :  { %v188_v2 = vstv %s2606_s6  ;;  %v169_v4 = vstv %s2605_s7  ;;  %s2616_s27 = sld [smem:[#allocation3 + $0x72]]  ;;  %s2617_s28 = sld [smem:[#allocation3 + $0x7]]  ;;  %v2947_v42 = vld [vmem:[%s4974_s0 + $0xf] ss:$4 sm:$0x7]  ;;  %vm1914_vm6 = vcmask 744448  }
  0x2c   :  { %v189_v3 = vmul.f32 %v188_v2, %v2871_v0  ;;  %v170_v5 = vmul.f32 %v169_v4, %v2871_v0  ;;  %v190_v6 = vmul.f32 %v2876_v1, %v188_v2  ;;  %v171_v7 = vmul.f32 %v2876_v1, %v169_v4  ;;  %s2618_s29 = sld [smem:[#allocation3 + $0x2b]]  ;;  %s2619_s7 = sld [smem:[#allocation3 + $0x4f]]  ;;  %v2952_v44 = vld [vmem:[%s4974_s0 + $0x3] ss:$4 sm:$0x7] }
  0x2d   :  { %v206_v8 = vstv %s2607_s8  ;;  %v224_v11 = vstv %s2608_s12  ;;  %v242_v15 = vstv %s2609_s14  ;;  %s2620_s3 = sld [smem:[#allocation3 + $0x73]]  ;;  %s2621_s10 = sld [smem:[#allocation3 + $0x8]]  ;;  %vm2203_vm7 = vcmask 736256  }
  0x2e   :  { %193 = vrot.lane.b32.xlu1 %v189_v3, %s2820_s13  ;;  %174 = vrot.lane.b32.xlu0 %v170_v5, %s2820_s13  ;;  %v208_v9 = vmul.f32 %v2876_v1, %v206_v8  ;;  %v207_v10 = vmul.f32 %v206_v8, %v2871_v0  ;;  %v226_v12 = vmul.f32 %v2876_v1, %v224_v11  ;;  %v260_v19 = vstv %s2610_s15  ;;  %s2622_s11 = sld [smem:[#allocation3 + $0x2c]]  ;;  %s2623_s12 = sld [smem:[#allocation3 + $0x50]] }
  0x2f   :  { %v225_v13 = vmul.f32 %v224_v11, %v2871_v0  ;;  %v244_v17 = vmul.f32 %v2895_v14, %v242_v15  ;;  %v243_v18 = vmul.f32 %v2900_v16, %v242_v15  ;;  %v262_v20 = vmul.f32 %v2895_v14, %v260_v19  ;;  %s2624_s14 = sld [smem:[#allocation3 + $0x74]]  ;;  %s2821_s15 = smov 126  }
  0x30   :  { %v261_v21 = vmul.f32 %v2900_v16, %v260_v19  ;;  %v278_v22 = vstv %s2611_s18  ;;  %v296_v25 = vstv %s2612_s21  ;;  %v314_v29 = vstv %s2613_s22  ;;  %s2625_s16 = sld [smem:[#allocation3 + $0x9]]  ;;  %s2628_s18 = sld [smem:[#allocation3 + $0x75]] }
  0x31   :  { %v280_v23 = vmul.f32 %v2895_v14, %v278_v22  ;;  %v279_v24 = vmul.f32 %v2900_v16, %v278_v22  ;;  %v298_v26 = vmul.f32 %v2895_v14, %v296_v25  ;;  %v297_v27 = vmul.f32 %v2900_v16, %v296_v25  ;;  %s2627_s17 = sld [smem:[#allocation3 + $0x51]]  ;;  %s2629_s19 = sld [smem:[#allocation3 + $0xa]] }
  0x32   :  { %195 = vrot.lane.b32.xlu1 %v190_v6, %s2820_s13  ;;  %176 = vrot.lane.b32.xlu0 %v171_v7, %s2820_s13  ;;  %v316_v31 = vmul.f32 %v2921_v28, %v314_v29  ;;  %v315_v32 = vmul.f32 %v2926_v30, %v314_v29  ;;  %v332_v33 = vstv %s2614_s23  ;;  %v350_v36 = vstv %s2615_s26  ;;  %s2630_s20 = sld [smem:[#allocation3 + $0x2e]]  ;;  %s2631_s21 = sld [smem:[#allocation3 + $0x52]] }
  0x33   :  { %v334_v34 = vmul.f32 %v2921_v28, %v332_v33  ;;  %v333_v35 = vmul.f32 %v2926_v30, %v332_v33  ;;  %v352_v37 = vmul.f32 %v2921_v28, %v350_v36  ;;  %v351_v38 = vmul.f32 %v2926_v30, %v350_v36  ;;  %s2632_s22 = sld [smem:[#allocation3 + $0x76]]  ;;  %s2633_s23 = sld [smem:[#allocation3 + $0xb]] }
  0x34   :  { %v368_v39 = vstv %s2616_s27  ;;  %v386_v43 = vstv %s2617_s28  ;;  %v404_v47 = vstv %s2618_s29  ;;  %v422_v50 = vstv %s2619_s7  ;;  %s2634_s24 = sld [smem:[#allocation3 + $0x2f]]  ;;  %s2635_s25 = sld [smem:[#allocation3 + $0x53]] }
  0x35   :  { %v370_v40 = vmul.f32 %v2921_v28, %v368_v39  ;;  %v369_v41 = vmul.f32 %v2926_v30, %v368_v39  ;;  %v388_v45 = vmul.f32 %v2947_v42, %v386_v43  ;;  %v387_v46 = vmul.f32 %v2952_v44, %v386_v43  ;;  %s2636_s26 = sld [smem:[#allocation3 + $0x77]]  ;;  %s2637_s2 = sld [smem:[#allocation3 + $0xc]] }
  0x36   :  { %213 = vrot.lane.b32.xlu1 %v208_v9, %s2820_s13  ;;  %211 = vrot.lane.b32.xlu0 %v207_v10, %s2820_s13  ;;  %v406_v48 = vmul.f32 %v2947_v42, %v404_v47  ;;  %v405_v49 = vmul.f32 %v2952_v44, %v404_v47  ;;  %v424_v51 = vmul.f32 %v2947_v42, %v422_v50  ;;  %v440_v53 = vstv %s2620_s3  ;;  %s2638_s1 = sld [smem:[#allocation3 + $0x30]]  ;;  %s2639_s27 = sld [smem:[#allocation3 + $0x54]] }
  0x37   :  { %v423_v52 = vmul.f32 %v2952_v44, %v422_v50  ;;  %v442_v54 = vmul.f32 %v2947_v42, %v440_v53  ;;  %v441_v55 = vmul.f32 %v2952_v44, %v440_v53  ;;  %v458_v56 = vstv %s2621_s10  ;;  %s2640_s28 = sld [smem:[#allocation3 + $0x78]]  ;;  %s2822_s29 = smov 110  }
  0x38   :  { %v460_v57 = vmul.f32 %v2876_v1, %v458_v56  ;;  %v459_v58 = vmul.f32 %v458_v56, %v2871_v0  ;;  %v477_v59 = vstv %s2622_s11  ;;  %v495_v62 = vstv %s2623_s12  ;;  %s2641_s30 = sld [smem:[#allocation3 + $0xd]]  ;;  %s2642_s6 = sld [smem:[#allocation3 + $0x31]] }
  0x39   :  { %v479_v60 = vmul.f32 %v2876_v1, %v477_v59  ;;  %v478_v61 = vmul.f32 %v477_v59, %v2871_v0  ;;  %v497_v63 = vmul.f32 %v2876_v1, %v495_v62  ;;  %v496_v2 = vmul.f32 %v495_v62, %v2871_v0  ;;  %s2643_s7 = sld [smem:[#allocation3 + $0x55]]  ;;  %s2644_s8 = sld [smem:[#allocation3 + $0x79]] }
  0x3a   :  { %231 = vrot.lane.b32.xlu1 %v226_v12, %s2820_s13  ;;  %229 = vrot.lane.b32.xlu0 %v225_v13, %s2820_s13  ;;  %v513_v3 = vstv %s2624_s14  ;;  %v531_v6 = vstv %s2625_s16  ;;  %s2645_s9 = sld [smem:[#allocation3 + $0xe]]  ;;  %s2646_s3 = sld [smem:[#allocation3 + $0x32]] }
  0x3b   :  { %v515_v4 = vmul.f32 %v2876_v1, %v513_v3  ;;  %v514_v5 = vmul.f32 %v513_v3, %v2871_v0  ;;  %v533_v7 = vmul.f32 %v2895_v14, %v531_v6  ;;  %v532_v8 = vmul.f32 %v2900_v16, %v531_v6  ;;  %s2647_s10 = sld [smem:[#allocation3 + $0x56]]  ;;  %s2648_s11 = sld [smem:[#allocation3 + $0x7a]] }
  0x3c   :  { %v567_v12 = vstv %s2627_s17  ;;  %v729_v47 = vstv %s2636_s26  ;;  %v784_v62 = vstv %s2639_s27  ;;  %s2649_s12 = sld [smem:[#allocation3 + $0xf]]  ;;  %s2650_s14 = sld [smem:[#allocation3 + $0x33]] }
  0x3d   :  { %v569_v13 = vmul.f32 %v2895_v14, %v567_v12  ;;  %v568_v15 = vmul.f32 %v2900_v16, %v567_v12  ;;  %v731_v50 = vmul.f32 %v2947_v42, %v729_v47  ;;  %v786_v3 = vmul.f32 %v2876_v1, %v784_v62  ;;  %s2652_s16 = sld [smem:[#allocation3 + $0x7b]]  ;;  %s2654_s17 = sld [smem:[#allocation3 + $0x34]] }
  0x3e   :  { %249 = vrot.lane.b32.xlu1 %v244_v17, %s2820_s13  ;;  %247 = vrot.lane.b32.xlu0 %v243_v18, %s2820_s13  ;;  %v585_v17 = vstv %s2628_s18  ;;  %s2655_s18 = sld [smem:[#allocation3 + $0x58]]  ;;  %s2662_s26 = sld [smem:[#allocation3 + $0x36]] }
  0x3f   :  { %v587_v18 = vmul.f32 %v2895_v14, %v585_v17  ;;  %v586_v19 = vmul.f32 %v2900_v16, %v585_v17  ;;  %v838_v17 = vstv %s2642_s6  ;;  %s2665_s27 = sld [smem:[#allocation3 + $0x13]]  ;;  %s2669_s6 = sld [smem:[#allocation3 + $0x14]] }
  0x42   :  { %267 = vrot.lane.b32.xlu1 %v262_v20, %s2820_s13  ;;  %265 = vrot.lane.b32.xlu0 %v261_v21, %s2820_s13  ;;  %v603_v20 = vstv %s2629_s19  ;;  %s2656_s19 = sld [smem:[#allocation3 + $0x7c]] }
  0x43   :  { %v605_v21 = vmul.f32 %v2921_v28, %v603_v20  ;;  %v604_v22 = vmul.f32 %v2926_v30, %v603_v20  ;;  %v840_v20 = vmul.f32 %v2895_v14, %v838_v17 }
  0x46   :  { %285 = vrot.lane.b32.xlu1 %v280_v23, %s2820_s13  ;;  %283 = vrot.lane.b32.xlu0 %v279_v24, %s2820_s13  ;;  %v621_v23 = vstv %s2630_s20  ;;  %s2823_s20 = smov 109  }
  0x47   :  { %v623_v24 = vmul.f32 %v2921_v28, %v621_v23  ;;  %v622_v25 = vmul.f32 %v2926_v30, %v621_v23 }
  0x4a   :  { %303 = vrot.lane.b32.xlu1 %v298_v26, %s2820_s13  ;;  %301 = vrot.lane.b32.xlu0 %v297_v27, %s2820_s13  ;;  %v639_v26 = vstv %s2631_s21  ;;  %s2657_s21 = sld [smem:[#allocation3 + $0x11]] }
  0x4b   :  { %v641_v27 = vmul.f32 %v2921_v28, %v639_v26  ;;  %v640_v29 = vmul.f32 %v2926_v30, %v639_v26 }
  0x4e   :  { %321 = vrot.lane.b32.xlu1 %v316_v31, %s2820_s13  ;;  %319 = vrot.lane.b32.xlu0 %v315_v32, %s2820_s13  ;;  %v657_v31 = vstv %s2632_s22  ;;  %s2658_s22 = sld [smem:[#allocation3 + $0x35]] }
  0x4f   :  { %v659_v32 = vmul.f32 %v2921_v28, %v657_v31  ;;  %v658_v33 = vmul.f32 %v2926_v30, %v657_v31 }
  0x52   :  { %339 = vrot.lane.b32.xlu1 %v334_v34, %s2820_s13  ;;  %337 = vrot.lane.b32.xlu0 %v333_v35, %s2820_s13  ;;  %v675_v34 = vstv %s2633_s23  ;;  %s2659_s23 = sld [smem:[#allocation3 + $0x59]] }
  0x53   :  { %v677_v35 = vmul.f32 %v2947_v42, %v675_v34  ;;  %v676_v36 = vmul.f32 %v2952_v44, %v675_v34  ;;  %v892_v34 = vstv %s2645_s9  ;;  %s2672_s9 = sld [smem:[#allocation3 + $0x80]] }
  0x56   :  { %357 = vrot.lane.b32.xlu1 %v352_v37, %s2820_s13  ;;  %355 = vrot.lane.b32.xlu0 %v351_v38, %s2820_s13  ;;  %v693_v37 = vstv %s2634_s24  ;;  %s2660_s24 = sld [smem:[#allocation3 + $0x7d]] }
  0x57   :  { %v695_v38 = vmul.f32 %v2947_v42, %v693_v37  ;;  %v694_v39 = vmul.f32 %v2952_v44, %v693_v37  ;;  %v894_v37 = vmul.f32 %v2921_v28, %v892_v34 }
  0x5a   :  { %375 = vrot.lane.b32.xlu1 %v370_v40, %s2820_s13  ;;  %373 = vrot.lane.b32.xlu0 %v369_v41, %s2820_s13  ;;  %v711_v40 = vstv %s2635_s25  ;;  %s2661_s25 = sld [smem:[#allocation3 + $0x12]] }
  0x5e   :  { %393 = vrot.lane.b32.xlu1 %v388_v45, %s2820_s13  ;;  %391 = vrot.lane.b32.xlu0 %v387_v46, %s2820_s13  ;;  %v713_v45 = vmul.f32 %v2947_v42, %v711_v40  ;;  %v712_v46 = vmul.f32 %v2952_v44, %v711_v40 }
  0x62   :  { %411 = vrot.lane.b32.xlu1 %v406_v48, %s2820_s13  ;;  %409 = vrot.lane.b32.xlu0 %v405_v49, %s2820_s13 }
  0x66   :  { %429 = vrot.lane.b32.xlu1 %v424_v51, %s2820_s13  ;;  %427 = vrot.lane.b32.xlu0 %v423_v52, %s2820_s13  ;;  %v730_v51 = vmul.f32 %v2952_v44, %v729_v47  ;;  %v747_v52 = vstv %s2637_s2  ;;  %s2663_s2 = sld [smem:[#allocation3 + $0x5a]] }
  0x67   :  { %v748_v56 = vmul.f32 %v747_v52, %v2871_v0 }
  0x6a   :  { %447 = vrot.lane.b32.xlu1 %v442_v54, %s2820_s13  ;;  %445 = vrot.lane.b32.xlu0 %v441_v55, %s2820_s13  ;;  %s2626_s13 = sld [smem:[#allocation3 + $0x2d]]  ;;  %v749_v55 = vmul.f32 %v2876_v1, %v747_v52 }
  0x6e   :  { %465 = vrot.lane.b32.xlu1 %v460_v57, %s2821_s15  ;;  %463 = vrot.lane.b32.xlu0 %v459_v58, %s2821_s15  ;;  %v766_v57 = vstv %s2638_s1  ;;  %s2664_s1 = sld [smem:[#allocation3 + $0x7e]] }
  0x70   :  { %v549_v9 = vstv %s2626_s13  ;;  %s2653_s13 = sld [smem:[#allocation3 + $0x10]] }
  0x71   :  { %v551_v10 = vmul.f32 %v2895_v14, %v549_v9  ;;  %v550_v11 = vmul.f32 %v2900_v16, %v549_v9 }
  0x72   :  { %484 = vrot.lane.b32.xlu1 %v479_v60, %s2821_s15  ;;  %482 = vrot.lane.b32.xlu0 %v478_v61, %s2821_s15  ;;  %v768_v60 = vmul.f32 %v2876_v1, %v766_v57  ;;  %v767_v61 = vmul.f32 %v766_v57, %v2871_v0  ;;  %v946_v57 = vstv %s2648_s11  ;;  %s3322_s11 = sld [smem:[#allocation3 + $0x39]] }
  0x76   :  { %502 = vrot.lane.b32.xlu1 %v497_v63, %s2821_s15  ;;  %500 = vrot.lane.b32.xlu0 %v496_v2, %s2821_s15 }
  0x7a   :  { %520 = vrot.lane.b32.xlu1 %v515_v4, %s2821_s15  ;;  %518 = vrot.lane.b32.xlu0 %v514_v5, %s2821_s15  ;;  %v785_v4 = vmul.f32 %v784_v62, %v2871_v0  ;;  %v802_v5 = vstv %s2640_s28  ;;  %v948_v62 = vmul.f32 %v2921_v28, %v946_v57  ;;  %s2666_s28 = sld [smem:[#allocation3 + $0x37]] }
  0x7b   :  { %v803_v9 = vmul.f32 %v802_v5, %v2871_v0 }
  0x7e   :  { %538 = vrot.lane.b32.xlu1 %v533_v7, %s2821_s15  ;;  %536 = vrot.lane.b32.xlu0 %v532_v8, %s2821_s15  ;;  %v804_v8 = vmul.f32 %v2876_v1, %v802_v5 }
  0x82   :  { %556 = vrot.lane.b32.xlu1 %v551_v10, %s2821_s15  ;;  %554 = vrot.lane.b32.xlu0 %v550_v11, %s2821_s15  ;;  %v820_v10 = vstv %s2641_s30  ;;  %s2668_s30 = sld [smem:[#allocation3 + $0x7f]] }
  0x86   :  { %574 = vrot.lane.b32.xlu1 %v569_v13, %s2821_s15  ;;  %572 = vrot.lane.b32.xlu0 %v568_v15, %s2821_s15  ;;  %v822_v13 = vmul.f32 %v2895_v14, %v820_v10  ;;  %v821_v15 = vmul.f32 %v2900_v16, %v820_v10 }
  0x8a   :  { %592 = vrot.lane.b32.xlu1 %v587_v18, %s2821_s15  ;;  %590 = vrot.lane.b32.xlu0 %v586_v19, %s2821_s15 }
  0x8e   :  { %610 = vrot.lane.b32.xlu1 %v605_v21, %s2821_s15  ;;  %608 = vrot.lane.b32.xlu0 %v604_v22, %s2821_s15  ;;  %v839_v21 = vmul.f32 %v2900_v16, %v838_v17  ;;  %v856_v22 = vstv %s2643_s7  ;;  %s2670_s7 = sld [smem:[#allocation3 + $0x38]] }
  0x8f   :  { %v857_v26 = vmul.f32 %v2900_v16, %v856_v22 }
  0x92   :  { %628 = vrot.lane.b32.xlu1 %v623_v24, %s2821_s15  ;;  %626 = vrot.lane.b32.xlu0 %v622_v25, %s2821_s15  ;;  %v858_v25 = vmul.f32 %v2895_v14, %v856_v22 }
  0x96   :  { %646 = vrot.lane.b32.xlu1 %v641_v27, %s2821_s15  ;;  %644 = vrot.lane.b32.xlu0 %v640_v29, %s2821_s15  ;;  %v874_v27 = vstv %s2644_s8  ;;  %s2671_s8 = sld [smem:[#allocation3 + $0x5c]] }
  0x9a   :  { %664 = vrot.lane.b32.xlu1 %v659_v32, %s2821_s15  ;;  %662 = vrot.lane.b32.xlu0 %v658_v33, %s2821_s15  ;;  %v876_v32 = vmul.f32 %v2895_v14, %v874_v27  ;;  %v875_v33 = vmul.f32 %v2900_v16, %v874_v27 }
  0x9e   :  { %682 = vrot.lane.b32.xlu1 %v677_v35, %s2821_s15  ;;  %680 = vrot.lane.b32.xlu0 %v676_v36, %s2821_s15 }
  0xa0   :  { %v3026_v41 = vpop.permute.xlu1 %193  ;;  %v3028_v43 = vpop.permute.xlu0 %174 }
  0xa2   :  { %700 = vrot.lane.b32.xlu1 %v695_v38, %s2821_s15  ;;  %698 = vrot.lane.b32.xlu0 %v694_v39, %s2821_s15  ;;  %v893_v38 = vmul.f32 %v2926_v30, %v892_v34  ;;  %v910_v39 = vstv %s2646_s3  ;;  %s2824_s3 = smov 108  }
  0xa3   :  { %v911_v47 = vmul.f32 %v2926_v30, %v910_v39 }
  0xa4   :  { %v3034_v48 = vpop.permute.xlu1 %195  ;;  %v3036_v49 = vpop.permute.xlu0 %176 }
  0xa6   :  { %718 = vrot.lane.b32.xlu1 %v713_v45, %s2821_s15  ;;  %716 = vrot.lane.b32.xlu0 %v712_v46, %s2821_s15  ;;  %v912_v46 = vmul.f32 %v2921_v28, %v910_v39 }
  0xa8   :  { %v3042_v53 = vpop.permute.xlu1 %213  ;;  %v3044_v54 = vpop.permute.xlu0 %211 }
  0xaa   :  { %736 = vrot.lane.b32.xlu1 %v731_v50, %s2821_s15  ;;  %734 = vrot.lane.b32.xlu0 %v730_v51, %s2821_s15  ;;  %v928_v50 = vstv %s2647_s10  ;;  %s2651_s15 = sld [smem:[#allocation3 + $0x57]]  ;;  %s2673_s10 = sld [smem:[#allocation3 + $0x15]] }
  0xac   :  { %v3050_v58 = vpop.permute.xlu1 %231  ;;  %v3052_v59 = vpop.permute.xlu0 %229 }
  0xae   :  { %754 = vrot.lane.b32.xlu1 %v749_v55, %s2822_s29  ;;  %752 = vrot.lane.b32.xlu0 %v748_v56, %s2822_s29  ;;  %v930_v55 = vmul.f32 %v2921_v28, %v928_v50  ;;  %v929_v56 = vmul.f32 %v2926_v30, %v928_v50 }
  0xb0   :  { %v3058_v63 = vpop.permute.xlu1 %249  ;;  %v3060_v2 = vpop.permute.xlu0 %247  ;;  %v1000_v22 = vstv %s2651_s15  ;;  %s3336_s15 = sld [smem:[#allocation3 + $0x24]] }
  0xb1   :  { %v1002_v27 = vmul.f32 %v2947_v42, %v1000_v22 }
  0xb2   :  { %773 = vrot.lane.b32.xlu1 %v768_v60, %s2822_s29  ;;  %771 = vrot.lane.b32.xlu0 %v767_v61, %s2822_s29 }
  0xb4   :  { %v3066_v6 = vpop.permute.xlu1 %267  ;;  %v3068_v7 = vpop.permute.xlu0 %265 }
  0xb6   :  { %791 = vrot.lane.b32.xlu1 %v786_v3, %s2822_s29  ;;  %789 = vrot.lane.b32.xlu0 %v785_v4, %s2822_s29  ;;  %v947_v3 = vmul.f32 %v2926_v30, %v946_v57  ;;  %v964_v4 = vstv %s2649_s12  ;;  %v1055_v57 = vstv %s2654_s17  ;;  %s3330_s12 = sld [smem:[#allocation3 + $0x25]]  ;;  %s3353_s17 = sld [smem:[#allocation3]] }
  0xb7   :  { %v965_v10 = vmul.f32 %v2952_v44, %v964_v4 }
  0xb8   :  { %v3074_v11 = vpop.permute.xlu1 %285  ;;  %v3076_v12 = vpop.permute.xlu0 %283 }
  0xba   :  { %809 = vrot.lane.b32.xlu1 %v804_v8, %s2822_s29  ;;  %807 = vrot.lane.b32.xlu0 %v803_v9, %s2822_s29  ;;  %v966_v9 = vmul.f32 %v2947_v42, %v964_v4  ;;  %v1057_v4 = vmul.f32 %v2876_v1, %v1055_v57 }
  0xbc   :  { %v3082_v18 = vpop.permute.xlu1 %303  ;;  %v3084_v19 = vpop.permute.xlu0 %301 }
  0xbe   :  { %827 = vrot.lane.b32.xlu1 %v822_v13, %s2822_s29  ;;  %825 = vrot.lane.b32.xlu0 %v821_v15, %s2822_s29  ;;  %v982_v13 = vstv %s2650_s14  ;;  %s3334_s14 = sld [smem:[#allocation3 + $0x5d]] }
  0xc0   :  { %v3090_v23 = vpop.permute.xlu1 %321  ;;  %v3092_v24 = vpop.permute.xlu0 %319 }
  0xc2   :  { %845 = vrot.lane.b32.xlu1 %v840_v20, %s2822_s29  ;;  %843 = vrot.lane.b32.xlu0 %v839_v21, %s2822_s29  ;;  %v984_v20 = vmul.f32 %v2947_v42, %v982_v13  ;;  %v983_v21 = vmul.f32 %v2952_v44, %v982_v13 }
  0xc4   :  { %v3098_v29 = vpop.permute.xlu1 %339  ;;  %v3100_v31 = vpop.permute.xlu0 %337 }
  0xc6   :  { %863 = vrot.lane.b32.xlu1 %v858_v25, %s2822_s29  ;;  %861 = vrot.lane.b32.xlu0 %v857_v26, %s2822_s29 }
  0xc8   :  { %v3106_v35 = vpop.permute.xlu1 %357  ;;  %v3108_v36 = vpop.permute.xlu0 %355 }
  0xca   :  { %881 = vrot.lane.b32.xlu1 %v876_v32, %s2822_s29  ;;  %879 = vrot.lane.b32.xlu0 %v875_v33, %s2822_s29  ;;  %v1001_v32 = vmul.f32 %v2952_v44, %v1000_v22  ;;  %v1018_v33 = vstv %s2652_s16  ;;  %s3344_s16 = sld [smem:[#allocation3 + $0x26]] }
  0xcb   :  { %v1019_v39 = vmul.f32 %v2952_v44, %v1018_v33 }
  0xcc   :  { %v3114_v40 = vpop.permute.xlu1 %375  ;;  %v3116_v45 = vpop.permute.xlu0 %373 }
  0xce   :  { %899 = vrot.lane.b32.xlu1 %v894_v37, %s2822_s29  ;;  %897 = vrot.lane.b32.xlu0 %v893_v38, %s2822_s29  ;;  %v1020_v38 = vmul.f32 %v2947_v42, %v1018_v33 }
  0xd0   :  { %v3122_v51 = vpop.permute.xlu1 %393  ;;  %v3124_v52 = vpop.permute.xlu0 %391 }
  0xd1   :  { %5097 = vst [vmem:[#allocation10_spill] sm:$0xff] %v3124_v52 }
  0xd2   :  { %917 = vrot.lane.b32.xlu1 %v912_v46, %s2822_s29  ;;  %915 = vrot.lane.b32.xlu0 %v911_v47, %s2822_s29  ;;  %v1036_v46 = vstv %s2653_s13  ;;  %s3349_s13 = sld [smem:[#allocation3 + $0x81]] }
  0xd4   :  { %v3130_v60 = vpop.permute.xlu1 %411  ;;  %v3132_v61 = vpop.permute.xlu0 %409 }
  0xd5   :  { %5098 = vst [vmem:[#allocation11_spill] sm:$0xff] %v3130_v60  ;;  %5099 = vst [vmem:[#allocation12_spill] sm:$0xff] %v3132_v61 }
  0xd6   :  { %935 = vrot.lane.b32.xlu1 %v930_v55, %s2822_s29  ;;  %933 = vrot.lane.b32.xlu0 %v929_v56, %s2822_s29  ;;  %v1038_v55 = vmul.f32 %v2876_v1, %v1036_v46  ;;  %v1037_v56 = vmul.f32 %v1036_v46, %v2871_v0  ;;  %v1109_v46 = vstv %s2657_s21  ;;  %s3366_s21 = sld [smem:[#allocation3 + $0x3]] }
  0xd8   :  { %v3138_v5 = vpop.permute.xlu1 %429  ;;  %v3140_v8 = vpop.permute.xlu0 %427 }
  0xd9   :  { %5100 = vst [vmem:[#allocation13_spill] sm:$0xff] %v3138_v5  ;;  %5101 = vst [vmem:[#allocation14_spill] sm:$0xff] %v3140_v8 }
  0xda   :  { %953 = vrot.lane.b32.xlu1 %v948_v62, %s2822_s29  ;;  %951 = vrot.lane.b32.xlu0 %v947_v3, %s2822_s29 }
  0xdc   :  { %v3146_v15 = vpop.permute.xlu1 %447  ;;  %v3148_v17 = vpop.permute.xlu0 %445 }
  0xdd   :  { %5102 = vst [vmem:[#allocation15_spill] sm:$0xff] %v3146_v15  ;;  %5103 = vst [vmem:[#allocation16_spill] sm:$0xff] %v3148_v17 }
  0xde   :  { %971 = vrot.lane.b32.xlu1 %v966_v9, %s2822_s29  ;;  %969 = vrot.lane.b32.xlu0 %v965_v10, %s2822_s29  ;;  %v1056_v9 = vmul.f32 %v1055_v57, %v2871_v0  ;;  %v1073_v10 = vstv %s2655_s18  ;;  %v1111_v57 = vmul.f32 %v2895_v14, %v1109_v46  ;;  %s3355_s18 = sld [smem:[#allocation3 + $0x1]] }
  0xdf   :  { %v1074_v22 = vmul.f32 %v1073_v10, %v2871_v0 }
  0xe0   :  { %v3154_v25 = vpop.permute.xlu1 %465  ;;  %v3156_v26 = vpop.permute.xlu0 %463 }
  0xe1   :  { %5104 = vst [vmem:[#allocation17_spill] sm:$0xff] %v3154_v25  ;;  %5105 = vst [vmem:[#allocation18_spill] sm:$0xff] %v3156_v26 }
  0xe2   :  { %989 = vrot.lane.b32.xlu1 %v984_v20, %s2822_s29  ;;  %987 = vrot.lane.b32.xlu0 %v983_v21, %s2822_s29  ;;  %v1075_v21 = vmul.f32 %v2876_v1, %v1073_v10 }
  0xe4   :  { %v3162_v34 = vpop.permute.xlu1 %484  ;;  %v3164_v37 = vpop.permute.xlu0 %482 }
  0xe5   :  { %5106 = vst [vmem:[#allocation19_spill] sm:$0xff] %v3162_v34  ;;  %5107 = vst [vmem:[#allocation20_spill] sm:$0xff] %v3164_v37 }
  0xe6   :  { %1007 = vrot.lane.b32.xlu1 %v1002_v27, %s2822_s29  ;;  %1005 = vrot.lane.b32.xlu0 %v1001_v32, %s2822_s29  ;;  %v1091_v27 = vstv %s2656_s19  ;;  %s3359_s19 = sld [smem:[#allocation3 + $0x27]] }
  0xe8   :  { %v3170_v47 = vpop.permute.xlu1 %502  ;;  %v3172_v50 = vpop.permute.xlu0 %500 }
  0xe9   :  { %5108 = vst [vmem:[#allocation21_spill] sm:$0xff] %v3170_v47  ;;  %5109 = vst [vmem:[#allocation22_spill] sm:$0xff] %v3172_v50  ;;  %v5160_v50 = vstv %s3366_s21 }
  0xea   :  { %1025 = vrot.lane.b32.xlu1 %v1020_v38, %s2822_s29  ;;  %1023 = vrot.lane.b32.xlu0 %v1019_v39, %s2822_s29  ;;  %v1093_v38 = vmul.f32 %v2876_v1, %v1091_v27  ;;  %v1092_v39 = vmul.f32 %v1091_v27, %v2871_v0  ;;  %s2667_s29 = sld [smem:[#allocation3 + $0x5b]]  ;;  %v146_v47 = vmul.f32 %v2952_v44, %v5160_v50 }
  0xec   :  { %v3178_v62 = vpop.permute.xlu1 %520  ;;  %v3180_v3 = vpop.permute.xlu0 %518 }
  0xed   :  { %5110 = vst [vmem:[#allocation23_spill] sm:$0xff] %v3178_v62  ;;  %5111 = vst [vmem:[#allocation24_spill] sm:$0xff] %v3180_v3 }
  0xee   :  { %1043 = vrot.lane.b32.xlu1 %v1038_v55, %s2823_s20  ;;  %1041 = vrot.lane.b32.xlu0 %v1037_v56, %s2823_s20 }
  0xf0   :  { %v3186_v13 = vpop.permute.xlu1 %538  ;;  %v3188_v20 = vpop.permute.xlu0 %536 }
  0xf1   :  { %5112 = vst [vmem:[#allocation25_spill] sm:$0xff] %v3186_v13  ;;  %5113 = vst [vmem:[#allocation26_spill] sm:$0xff] %v3188_v20 }
  0xf2   :  { %1062 = vrot.lane.b32.xlu1 %v1057_v4, %s2823_s20  ;;  %1060 = vrot.lane.b32.xlu0 %v1056_v9, %s2823_s20  ;;  %v1110_v4 = vmul.f32 %v2900_v16, %v1109_v46  ;;  %v1127_v9 = vstv %s2658_s22  ;;  %s3371_s22 = sld [smem:[#allocation3 + $0x16]] }
  0xf3   :  { %v1128_v27 = vmul.f32 %v2900_v16, %v1127_v9 }
  0xf4   :  { %v3194_v32 = vpop.permute.xlu1 %556  ;;  %v3196_v33 = vpop.permute.xlu0 %554 }
  0xf5   :  { %5114 = vst [vmem:[#allocation27_spill] sm:$0xff] %v3194_v32  ;;  %5115 = vst [vmem:[#allocation28_spill] sm:$0xff] %v3196_v33 }
  0xf6   :  { %1080 = vrot.lane.b32.xlu1 %v1075_v21, %s2823_s20  ;;  %1078 = vrot.lane.b32.xlu0 %v1074_v22, %s2823_s20  ;;  %v1129_v22 = vmul.f32 %v2895_v14, %v1127_v9 }
  0xf8   :  { %v3202_v55 = vpop.permute.xlu1 %574  ;;  %v3204_v56 = vpop.permute.xlu0 %572 }
  0xf9   :  { %5116 = vst [vmem:[#allocation29_spill] sm:$0xff] %v3202_v55  ;;  %5117 = vst [vmem:[#allocation30_spill] sm:$0xff] %v3204_v56  ;;  %v3424_v55 = vld [vmem:[%s4974_s0 + $0x1] ss:$4 sm:$0x7] }
  0xfa   :  { %1098 = vrot.lane.b32.xlu1 %v1093_v38, %s2823_s20  ;;  %1096 = vrot.lane.b32.xlu0 %v1092_v39, %s2823_s20  ;;  %v1145_v38 = vstv %s2659_s23  ;;  %s3379_s23 = sld [smem:[#allocation3 + $0x48]] }
  0xfb   :  { %v1147_v46 = vmul.f32 %v2895_v14, %v1145_v38 }
  0xfc   :  { %v3210_v10 = vpop.permute.xlu1 %592  ;;  %v3212_v21 = vpop.permute.xlu0 %590 }
  0xfd   :  { %5118 = vst [vmem:[#allocation31_spill] sm:$0xff] %v3210_v10  ;;  %5119 = vst [vmem:[#allocation32_spill] sm:$0xff] %v3212_v21  ;;  %v1163_v21 = vstv %s2660_s24  ;;  %s4035_s24 = sld [smem:[#allocation3 + $0x1e]] }
  0xfe   :  { %1116 = vrot.lane.b32.xlu1 %v1111_v57, %s2823_s20  ;;  %1114 = vrot.lane.b32.xlu0 %v1110_v4, %s2823_s20  ;;  %v1146_v57 = vmul.f32 %v2900_v16, %v1145_v38  ;;  %v1165_v9 = vmul.f32 %v2895_v14, %v1163_v21 }
 0x100   :  { %v3218_v56 = vpop.permute.xlu1 %610  ;;  %v3220_v39 = vpop.permute.xlu0 %608 }
 0x101   :  { %5120 = vst [vmem:[#allocation33_spill] sm:$0xff] %v3218_v56  ;;  %5121 = vst [vmem:[#allocation34_spill] sm:$0xff] %v3220_v39  ;;  %v1181_v39 = vstv %s2661_s25  ;;  %s4343_s25 = sld [smem:[#allocation3 + $0x45]] }
 0x102   :  { %1134 = vrot.lane.b32.xlu1 %v1129_v22, %s2823_s20  ;;  %1132 = vrot.lane.b32.xlu0 %v1128_v27, %s2823_s20  ;;  %v1164_v22 = vmul.f32 %v2900_v16, %v1163_v21  ;;  %v1183_v38 = vmul.f32 %v2921_v28, %v1181_v39 }
 0x104   :  { %v3226_v10 = vpop.permute.xlu1 %628  ;;  %v3228_v4 = vpop.permute.xlu0 %626 }
 0x105   :  { %5122 = vst [vmem:[#allocation35_spill] sm:$0xff] %v3226_v10  ;;  %5123 = vst [vmem:[#allocation36_spill] sm:$0xff] %v3228_v4  ;;  %v1199_v4 = vstv %s2662_s26  ;;  %s3390_s26 = sld [smem:[#allocation3 + $0x49]] }
 0x106   :  { %1152 = vrot.lane.b32.xlu1 %v1147_v46, %s2823_s20  ;;  %1150 = vrot.lane.b32.xlu0 %v1146_v57, %s2823_s20  ;;  %v1182_v46 = vmul.f32 %v2926_v30, %v1181_v39  ;;  %v1201_v21 = vmul.f32 %v2921_v28, %v1199_v4 }
 0x108   :  { %v3234_v56 = vpop.permute.xlu1 %646  ;;  %v3236_v27 = vpop.permute.xlu0 %644 }
 0x109   :  { %5124 = vst [vmem:[#allocation37_spill] sm:$0xff] %v3234_v56  ;;  %5125 = vst [vmem:[#allocation38_spill] sm:$0xff] %v3236_v27  ;;  %v1217_v27 = vstv %s2663_s2  ;;  %s3395_s2 = sld [smem:[#allocation3 + $0x3a]] }
 0x10a   :  { %1170 = vrot.lane.b32.xlu1 %v1165_v9, %s2823_s20  ;;  %1168 = vrot.lane.b32.xlu0 %v1164_v22, %s2823_s20  ;;  %v1200_v9 = vmul.f32 %v2926_v30, %v1199_v4  ;;  %v1219_v39 = vmul.f32 %v2921_v28, %v1217_v27 }
 0x10c   :  { %v3242_v10 = vpop.permute.xlu1 %664  ;;  %v3244_v57 = vpop.permute.xlu0 %662 }
 0x10d   :  { %5126 = vst [vmem:[#allocation39_spill] sm:$0xff] %v3242_v10  ;;  %5127 = vst [vmem:[#allocation40_spill] sm:$0xff] %v3244_v57  ;;  %v1235_v57 = vstv %s2664_s1  ;;  %s3401_s1 = sld [smem:[#allocation3 + $0x6c]] }
 0x10e   :  { %1188 = vrot.lane.b32.xlu1 %v1183_v38, %s2823_s20  ;;  %1186 = vrot.lane.b32.xlu0 %v1182_v46, %s2823_s20  ;;  %v1218_v38 = vmul.f32 %v2926_v30, %v1217_v27  ;;  %v1237_v4 = vmul.f32 %v2921_v28, %v1235_v57 }
 0x10f   :  { %v1488_v50 = vstv %s3395_s2  ;;  %s3595_s2 = sld [smem:[#allocation3 + $0x18]] }
 0x110   :  { %v3250_v56 = vpop.permute.xlu1 %682  ;;  %v3252_v22 = vpop.permute.xlu0 %680 }
 0x111   :  { %5128 = vst [vmem:[#allocation41_spill] sm:$0xff] %v3250_v56  ;;  %5129 = vst [vmem:[#allocation42_spill] sm:$0xff] %v3252_v22  ;;  %v1253_v22 = vstv %s2665_s27  ;;  %s3403_s27 = sld [smem:[#allocation3 + $0x6d]] }
 0x112   :  { %1206 = vrot.lane.b32.xlu1 %v1201_v21, %s2823_s20  ;;  %1204 = vrot.lane.b32.xlu0 %v1200_v9, %s2823_s20  ;;  %v1236_v21 = vmul.f32 %v2926_v30, %v1235_v57  ;;  %v1255_v27 = vmul.f32 %v2947_v42, %v1253_v22 }
 0x113   :  { %v79_v17 = vstv %s3401_s1  ;;  %s3617_s1 = sld [smem:[#allocation3 + $0x3c]] }
 0x114   :  { %v3258_v10 = vpop.permute.xlu1 %700  ;;  %v3260_v46 = vpop.permute.xlu0 %698 }
 0x115   :  { %5130 = vst [vmem:[#allocation43_spill] sm:$0xff] %v3258_v10  ;;  %5131 = vst [vmem:[#allocation44_spill] sm:$0xff] %v3260_v46  ;;  %v1271_v46 = vstv %s2666_s28  ;;  %s3410_s28 = sld [smem:[#allocation3 + $0x4a]] }
 0x116   :  { %1224 = vrot.lane.b32.xlu1 %v1219_v39, %s2823_s20  ;;  %1222 = vrot.lane.b32.xlu0 %v1218_v38, %s2823_s20  ;;  %v1254_v39 = vmul.f32 %v2952_v44, %v1253_v22  ;;  %v1273_v57 = vmul.f32 %v2947_v42, %v1271_v46 }
 0x117   :  { %v107_v15 = vstv %s3403_s27  ;;  %s3641_s27 = sld [smem:[#allocation3 + $0x60]] }
 0x118   :  { %v3266_v56 = vpop.permute.xlu1 %718  ;;  %v3268_v9 = vpop.permute.xlu0 %716 }
 0x119   :  { %5132 = vst [vmem:[#allocation45_spill] sm:$0xff] %v3266_v56  ;;  %5133 = vst [vmem:[#allocation46_spill] sm:$0xff] %v3268_v9  ;;  %v1289_v9 = vstv %s2667_s29  ;;  %s3689_s29 = sld [smem:[#allocation3 + $0x19]] }
 0x11a   :  { %1242 = vrot.lane.b32.xlu1 %v1237_v4, %s2823_s20  ;;  %1240 = vrot.lane.b32.xlu0 %v1236_v21, %s2823_s20  ;;  %v1272_v4 = vmul.f32 %v2952_v44, %v1271_v46  ;;  %v1291_v22 = vmul.f32 %v2947_v42, %v1289_v9 }
 0x11c   :  { %v3274_v28 = vpop.permute.xlu1 %736  ;;  %v3276_v38 = vpop.permute.xlu0 %734 }
 0x11d   :  { %5134 = vst [vmem:[#allocation47_spill] sm:$0xff] %v3274_v28  ;;  %5135 = vst [vmem:[#allocation48_spill] sm:$0xff] %v3276_v38  ;;  %v1307_v38 = vstv %s2668_s30  ;;  %s3713_s30 = sld [smem:[#allocation3 + $0x3d]] }
 0x11e   :  { %1260 = vrot.lane.b32.xlu1 %v1255_v27, %s2823_s20  ;;  %1258 = vrot.lane.b32.xlu0 %v1254_v39, %s2823_s20  ;;  %v1290_v27 = vmul.f32 %v2952_v44, %v1289_v9  ;;  %v1309_v46 = vmul.f32 %v2947_v42, %v1307_v38 }
 0x120   :  { %v3282_v56 = vpop.permute.xlu1 %754  ;;  %v3284_v21 = vpop.permute.xlu0 %752 }
 0x121   :  { %5136 = vst [vmem:[#allocation49_spill] sm:$0xff] %v3282_v56  ;;  %5137 = vst [vmem:[#allocation50_spill] sm:$0xff] %v3284_v21  ;;  %v1325_v21 = vstv %s2669_s6  ;;  %s3741_s6 = sld [smem:[#allocation3 + $0x61]] }
 0x122   :  { %1278 = vrot.lane.b32.xlu1 %v1273_v57, %s2823_s20  ;;  %1276 = vrot.lane.b32.xlu0 %v1272_v4, %s2823_s20  ;;  %v1308_v57 = vmul.f32 %v2952_v44, %v1307_v38  ;;  %v1327_v9 = vmul.f32 %v2876_v1, %v1325_v21 }
 0x124   :  { %v3290_v28 = vpop.permute.xlu1 %773  ;;  %v3292_v39 = vpop.permute.xlu0 %771 }
 0x125   :  { %5138 = vst [vmem:[#allocation51_spill] sm:$0xff] %v3290_v28  ;;  %5139 = vst [vmem:[#allocation52_spill] sm:$0xff] %v3292_v39  ;;  %v1344_v39 = vstv %s2670_s7  ;;  %s3761_s7 = sld [smem:[#allocation3 + $0x85]] }
 0x126   :  { %1296 = vrot.lane.b32.xlu1 %v1291_v22, %s2823_s20  ;;  %1294 = vrot.lane.b32.xlu0 %v1290_v27, %s2823_s20  ;;  %v1326_v22 = vmul.f32 %v1325_v21, %v2871_v0  ;;  %v1346_v38 = vmul.f32 %v2876_v1, %v1344_v39 }
 0x128   :  { %v3298_v56 = vpop.permute.xlu1 %791  ;;  %v3300_v4 = vpop.permute.xlu0 %789 }
 0x129   :  { %5140 = vst [vmem:[#allocation53_spill] sm:$0xff] %v3298_v56  ;;  %5141 = vst [vmem:[#allocation54_spill] sm:$0xff] %v3300_v4  ;;  %v1362_v4 = vstv %s2671_s8  ;;  %v89_v56 = vstv %s3355_s18  ;;  %s3428_s8 = sld [smem:[#allocation3 + $0x5e]]  ;;  %s3480_s18 = sld [smem:[#allocation3 + $0x6f]] }
 0x12a   :  { %1314 = vrot.lane.b32.xlu1 %v1309_v46, %s2823_s20  ;;  %1312 = vrot.lane.b32.xlu0 %v1308_v57, %s2823_s20  ;;  %v1345_v46 = vmul.f32 %v1344_v39, %v2871_v0  ;;  %s3361_s20 = sld [smem:[#allocation3 + $0x2]]  ;;  %v90_v32 = vmul.f32 %v3424_v55, %v89_v56 }
 0x12c   :  { %v3306_v42 = vpop.permute.xlu1 %809  ;;  %v3308_v27 = vpop.permute.xlu0 %807 }
 0x12d   :  { %5142 = vst [vmem:[#allocation55_spill] sm:$0xff] %v3306_v42  ;;  %5143 = vst [vmem:[#allocation56_spill] sm:$0xff] %v3308_v27  ;;  %v1364_v42 = vmul.f32 %v2876_v1, %v1362_v4  ;;  %v1380_v27 = vstv %s2672_s9  ;;  %s3813_s9 = sld [smem:[#allocation3 + $0x3e]] }
 0x12e   :  { %1332 = vrot.lane.b32.xlu1 %v1327_v9, %s2824_s3  ;;  %1330 = vrot.lane.b32.xlu0 %v1326_v22, %s2824_s3  ;;  %v1363_v9 = vmul.f32 %v1362_v4, %v2871_v0 }
 0x130   :  { %v3314_v57 = vpop.permute.xlu1 %827  ;;  %v3316_v21 = vpop.permute.xlu0 %825  ;;  %v5159_v3 = vstv %s3361_s20 }
 0x131   :  { %5144 = vst [vmem:[#allocation57_spill] sm:$0xff] %v3314_v57  ;;  %5145 = vst [vmem:[#allocation58_spill] sm:$0xff] %v3316_v21  ;;  %v1382_v21 = vmul.f32 %v2876_v1, %v1380_v27  ;;  %v1452_v57 = vstv %s3349_s13  ;;  %v118_v62 = vmul.f32 %v2926_v30, %v5159_v3  ;;  %s3923_s13 = sld [smem:[#allocation3 + $0x1c]] }
 0x132   :  { %1351 = vrot.lane.b32.xlu1 %v1346_v38, %s2824_s3  ;;  %1349 = vrot.lane.b32.xlu0 %v1345_v46, %s2824_s3  ;;  %v1381_v38 = vmul.f32 %v1380_v27, %v2871_v0  ;;  %v1398_v46 = vstv %s2673_s10  ;;  %s3833_s10 = sld [smem:[#allocation3 + $0x62]] }
 0x133   :  { %v1400_v1 = vmul.f32 %v2895_v14, %v1398_v46  ;;  %v1399_v0 = vmul.f32 %v2900_v16, %v1398_v46 }
 0x134   :  { %v3324_v22 = vpop.permute.xlu1 %845  ;;  %v3326_v39 = vpop.permute.xlu0 %843 }
 0x135   :  { %5146 = vst [vmem:[#allocation59_spill] sm:$0xff] %v3324_v22  ;;  %5147 = vst [vmem:[#allocation60_spill] sm:$0xff] %v3326_v39  ;;  %v3387_v39 = vld [vmem:[%s4974_s0] ss:$4 sm:$0x7] }
 0x136   :  { %1369 = vrot.lane.b32.xlu1 %v1364_v42, %s2824_s3  ;;  %1367 = vrot.lane.b32.xlu0 %v1363_v9, %s2824_s3  ;;  %v1416_v42 = vstv %s3322_s11  ;;  %s3441_s11 = sld [smem:[#allocation3 + $0x6e]] }
 0x137   :  { %v1418_v9 = vmul.f32 %v2895_v14, %v1416_v42  ;;  %v1417_v46 = vmul.f32 %v2900_v16, %v1416_v42  ;;  %v123_v42 = vstv %s3344_s16  ;;  %s3911_s16 = sld [smem:[#allocation3 + $0x87]] }
 0x138   :  { %v3338_v4 = vpop.permute.xlu1 %863  ;;  %v3340_v22 = vpop.permute.xlu0 %861  ;;  %v124_v10 = vmul.f32 %v2926_v30, %v123_v42  ;;  %v3467_v30 = vld [vmem:[%s4974_s0 + $0x2] ss:$4 sm:$0x7] }
 0x139   :  { %5148 = vst [vmem:[#allocation61_spill] sm:$0xff] %v3338_v4  ;;  %5149 = vst [vmem:[#allocation62_spill] sm:$0xff] %v3340_v22 }
 0x13a   :  { %1387 = vrot.lane.b32.xlu1 %v1382_v21, %s2824_s3  ;;  %1385 = vrot.lane.b32.xlu0 %v1381_v38, %s2824_s3  ;;  %v95_v38 = vstv %s3330_s12  ;;  %s3452_s12 = sld [smem:[#allocation3 + $0x4b]]  ;;  %5161 = vst [vmem:[#allocation72_spill] sm:$0xff] %v3467_v30 }
 0x13c   :  { %v3351_v27 = vpop.permute.xlu1 %881  ;;  %v3357_v21 = vpop.permute.xlu0 %879 }
 0x13d   :  { %5150 = vst [vmem:[#allocation63_spill] sm:$0xff] %v3351_v27  ;;  %5151 = vst [vmem:[#allocation64_spill] sm:$0xff] %v3357_v21  ;;  %v1434_v27 = vstv %s3334_s14  ;;  %v67_v21 = vstv %s3336_s15  ;;  %s3886_s14 = sld [smem:[#allocation3 + $0x3f]]  ;;  %s3895_s15 = sld [smem:[#allocation3 + $0x63]] }
 0x13e   :  { %1405 = vrot.lane.b32.xlu1 %v1400_v1, %s2824_s3  ;;  %1403 = vrot.lane.b32.xlu0 %v1399_v0, %s2824_s3  ;;  %v96_v1 = vmul.f32 %v2900_v16, %v95_v38  ;;  %v1436_v0 = vmul.f32 %v2895_v14, %v1434_v27 }
 0x140   :  { %v3374_v22 = vpop.permute.xlu1 %899  ;;  %v3376_v4 = vpop.permute.xlu0 %897  ;;  %v157_v60 = vstv %s3452_s12  ;;  %s3864_s12 = sld [smem:[#allocation3 + $0x1b]] }
 0x141   :  { %5152 = vst [vmem:[#allocation65_spill] sm:$0xff] %v3374_v22  ;;  %5153 = vst [vmem:[#allocation66_spill] sm:$0xff] %v3376_v4  ;;  %v68_v22 = vmul.f32 %v3387_v39, %v67_v21  ;;  %v1435_v4 = vmul.f32 %v2900_v16, %v1434_v27  ;;  %v3416_v16 = vld [vmem:[%s4974_s0 + $0xd] ss:$4 sm:$0x7] }
 0x142   :  { %1423 = vrot.lane.b32.xlu1 %v1418_v9, %s2824_s3  ;;  %1421 = vrot.lane.b32.xlu0 %v1417_v46, %s2824_s3  ;;  %v61_v9 = vstv %s3353_s17  ;;  %v151_v46 = vstv %s3359_s19  ;;  %5156 = vst [vmem:[#allocation69_spill] sm:$0xff] %v3416_v16  ;;  %v1454_v27 = vmul.f32 %v3416_v16, %v1452_v57  ;;  %v97_v33 = vmul.f32 %v3416_v16, %v95_v38  ;;  %s3471_s17 = sld [smem:[#allocation3 + $0x82]]  ;;  %s3494_s19 = sld [smem:[#allocation3 + $0x17]] }
 0x143   :  { %v152_v13 = vmul.f32 %v2952_v44, %v151_v46  ;;  %v91_v25 = vmul.f32 %v3416_v16, %v89_v56 }
 0x144   :  { %v3397_v14 = vpop.permute.xlu1 %917  ;;  %v3405_v28 = vpop.permute.xlu0 %915 }
 0x145   :  { %5154 = vst [vmem:[#allocation67_spill] sm:$0xff] %v3397_v14  ;;  %5155 = vst [vmem:[#allocation68_spill] sm:$0xff] %v3405_v28  ;;  %v98_v14 = vadd.f32 %v96_v1, %v68_v22  ;;  %v1470_v28 = vstv %s3371_s22  ;;  %v62_v22 = vmul.f32 %v3387_v39, %v61_v9  ;;  %s3988_s22 = sld [smem:[#allocation3 + $0x41]] }
 0x146   :  { %1441 = vrot.lane.b32.xlu1 %v1436_v0, %s2824_s3  ;;  %1439 = vrot.lane.b32.xlu0 %v1435_v4, %s2824_s3  ;;  %v1453_v0 = vmul.f32 %v3424_v55, %v1452_v57  ;;  %v3435_v4 = vld [vmem:[%s4974_s0 + $0xc] ss:$4 sm:$0x7]  ;;  %v1471_v44 = vmul.f32 %v3467_v30, %v1470_v28 }
 0x147   :  { %v69_v1 = vmul.f32 %v3435_v4, %v67_v21  ;;  %v3458_v21 = vld [vmem:[%s4974_s0 + $0xe] ss:$4 sm:$0x7]  ;;  %v126_v3 = vadd.f32 %v124_v10, %v98_v14  ;;  %v1489_v14 = vmul.f32 %v3467_v30, %v1488_v50 }
 0x148   :  { %v3439_v57 = vpop.permute.xlu1 %935  ;;  %v3443_v20 = vpop.permute.xlu0 %933  ;;  %v1472_v38 = vmul.f32 %v3458_v21, %v1470_v28  ;;  %v125_v34 = vmul.f32 %v3458_v21, %v123_v42  ;;  %v1490_v10 = vmul.f32 %v3458_v21, %v1488_v50 }
 0x149   :  { %5157 = vst [vmem:[#allocation70_spill] sm:$0xff] %v3439_v57  ;;  %5158 = vst [vmem:[#allocation71_spill] sm:$0xff] %v3443_v20  ;;  %v73_v20 = vstv %s3379_s23  ;;  %v101_v57 = vstv %s3390_s26  ;;  %v99_v37 = vadd.f32 %v97_v33, %v69_v1  ;;  %v129_v33 = vstv %s3410_s28  ;;  %v3501_v1 = vld [vmem:[%s4974_s0 + $0xf] ss:$4 sm:$0x7]  ;;  %s3568_s26 = sld [smem:[#allocation3 + $0x83]] }
 0x14a   :  { %1459 = vrot.lane.b32.xlu1 %v1454_v27, %s2824_s3  ;;  %1457 = vrot.lane.b32.xlu0 %v1453_v0, %s2824_s3  ;;  %v92_v27 = vadd.f32 %v90_v32, %v62_v22  ;;  %v63_v0 = vmul.f32 %v3435_v4, %v61_v9  ;;  %v75_v8 = vmul.f32 %v3435_v4, %v73_v20  ;;  %v1506_v9 = vstv %s3428_s8  ;;  %s3669_s28 = sld [smem:[#allocation3 + $0x84]]  ;;  %s3785_s8 = sld [smem:[#allocation3 + $0x1a]] }
 0x14b   :  { %v103_v32 = vmul.f32 %v3416_v16, %v101_v57  ;;  %v102_v42 = vmul.f32 %v3424_v55, %v101_v57  ;;  %v74_v56 = vmul.f32 %v3387_v39, %v73_v20  ;;  %v3496_v22 = vadd.f32 %v152_v13, %v126_v3  ;;  %s3996_s23 = sld [smem:[#allocation3 + $0x88]] }
 0x14c   :  { %v3474_v26 = vpop.permute.xlu1 %953  ;;  %v3482_v28 = vpop.permute.xlu0 %951  ;;  %v81_v57 = vmul.f32 %v3435_v4, %v79_v17  ;;  %v109_v20 = vmul.f32 %v3416_v16, %v107_v15  ;;  %v120_v50 = vadd.f32 %v118_v62, %v92_v27  ;;  %v135_v3 = vstv %s3441_s11  ;;  %s3856_s11 = sld [smem:[#allocation3 + $0x86]] }
 0x14d   :  { %5162 = vst [vmem:[#allocation73_spill] sm:$0xff] %v3474_v26  ;;  %5163 = vst [vmem:[#allocation74_spill] sm:$0xff] %v3482_v28  ;;  %v93_v28 = vadd.f32 %v91_v25, %v63_v0  ;;  %v5165_v26 = vstv %s3361_s20  ;;  %v131_v61 = vmul.f32 %v3458_v21, %v129_v33  ;;  %v105_v62 = vadd.f32 %v103_v32, %v75_v8  ;;  %s3522_s20 = sld [smem:[#allocation3 + $0x3b]] }
 0x14e   :  { %1477 = vrot.lane.b32.xlu1 %v1472_v38, %s2824_s3  ;;  %1475 = vrot.lane.b32.xlu0 %v1471_v44, %s2824_s3  ;;  %v153_v38 = vmul.f32 %v3501_v1, %v151_v46  ;;  %v119_v13 = vmul.f32 %v3458_v21, %v5165_v26  ;;  %v130_v46 = vmul.f32 %v3467_v30, %v129_v33  ;;  %v1524_v27 = vstv %s3471_s17  ;;  %s3934_s17 = sld [smem:[#allocation3 + $0x40]] }
 0x14f   :  { %v104_v25 = vadd.f32 %v102_v42, %v74_v56  ;;  %v1507_v26 = vmul.f32 %v3467_v30, %v1506_v9  ;;  %v111_v0 = vadd.f32 %v109_v20, %v81_v57  ;;  %v108_v33 = vmul.f32 %v3424_v55, %v107_v15  ;;  %v3541_v15 = vld [vmem:[%s4974_s0 + $0x3] ss:$4 sm:$0x7] }
 0x150   :  { %v3506_v44 = vpop.permute.xlu1 %971  ;;  %v3512_v5 = vpop.permute.xlu0 %969  ;;  %v80_v16 = vmul.f32 %v3387_v39, %v79_v17  ;;  %v3529_v52 = vadd.f32 %v146_v47, %v120_v50  ;;  %v127_v8 = vadd.f32 %v125_v34, %v99_v37  ;;  %v5168_v32 = vstv %s3366_s21  ;;  %s3549_s21 = sld [smem:[#allocation3 + $0x5f]] }
 0x151   :  { %5164 = vst [vmem:[#allocation75_spill] sm:$0xff] %v3506_v44  ;;  %5166 = vst [vmem:[#allocation76_spill] sm:$0xff] %v3512_v5  ;;  %v1508_v44 = vmul.f32 %v3458_v21, %v1506_v9  ;;  %v137_v5 = vmul.f32 %v3458_v21, %v135_v3  ;;  %v147_v42 = vmul.f32 %v3501_v1, %v5168_v32  ;;  %v163_v56 = vstv %s3480_s18  ;;  %s3959_s18 = sld [smem:[#allocation3 + $0x64]] }
 0x152   :  { %1495 = vrot.lane.b32.xlu1 %v1490_v10, %s2824_s3  ;;  %1493 = vrot.lane.b32.xlu0 %v1489_v14, %s2824_s3  ;;  %v121_v9 = vadd.f32 %v119_v13, %v93_v28  ;;  %v159_v57 = vmul.f32 %v3501_v1, %v157_v60  ;;  %v158_v17 = vmul.f32 %v3541_v15, %v157_v60  ;;  %v1542_v28 = vstv %s3494_s19  ;;  %s3965_s19 = sld [smem:[#allocation3 + $0x1d]] }
 0x153   :  { %v1526_v34 = vmul.f32 %v3458_v21, %v1524_v27  ;;  %v133_v37 = vadd.f32 %v131_v61, %v105_v62  ;;  %v132_v47 = vadd.f32 %v130_v46, %v104_v25  ;;  %v1525_v20 = vmul.f32 %v3467_v30, %v1524_v27 }
 0x154   :  { %v3527_v10 = vpop.permute.xlu1 %989  ;;  %v3535_v14 = vpop.permute.xlu0 %987  ;;  %v139_v50 = vadd.f32 %v137_v5, %v111_v0  ;;  %v165_v13 = vmul.f32 %v3501_v1, %v163_v56  ;;  %v136_v32 = vmul.f32 %v3467_v30, %v135_v3  ;;  %v178_v61 = vrot.slane %v3028_v43, 1 }
 0x155   :  { %5167 = vst [vmem:[#allocation77_spill] sm:$0xff] %v3527_v10  ;;  %5169 = vst [vmem:[#allocation78_spill] sm:$0xff] %v3535_v14  ;;  %v110_v14 = vadd.f32 %v108_v33, %v80_v16  ;;  %v198_v46 = vrot.slane %v3034_v48, 1  ;;  %v179_v62 = vrot.slane %v3036_v49, 1  ;;  %v216_v5 = vrot.slane %v3042_v53, 1 }
 0x156   :  { %1513 = vrot.lane.b32.xlu1 %v1508_v44, %s2824_s3  ;;  %1511 = vrot.lane.b32.xlu0 %v1507_v26, %s2824_s3  ;;  %v197_v44 = vrot.slane %v3026_v41, 1  ;;  %v155_v26 = vadd.f32 %v153_v38, %v127_v8  ;;  %v215_v27 = vrot.slane %v3044_v54, 1  ;;  %v1544_v16 = vmul.f32 %v3501_v1, %v1542_v28 }
 0x157   :  { %v149_v3 = vadd.f32 %v147_v42, %v121_v9  ;;  %v161_v0 = vadd.f32 %v159_v57, %v133_v37  ;;  %v1543_v33 = vmul.f32 %v3541_v15, %v1542_v28  ;;  %v160_v10 = vadd.f32 %v158_v17, %v132_v47 }
 0x158   :  { %v3553_v60 = vpop.permute.xlu1 %1007  ;;  %v3559_v25 = vpop.permute.xlu0 %1005  ;;  %v164_v38 = vmul.f32 %v3541_v15, %v163_v56  ;;  %v138_v8 = vadd.f32 %v136_v32, %v110_v14  ;;  %v181_v42 = vsel %vm180_vm0, %v3028_v43, %v178_v61  ;;  %v200_v9 = vsel %vm180_vm0, %v3034_v48, %v198_v46 }
 0x159   :  { %5170 = vst [vmem:[#allocation79_spill] sm:$0xff] %v3553_v60  ;;  %5171 = vst [vmem:[#allocation80_spill] sm:$0xff] %v3559_v25  ;;  %v1560_v60 = vstv %s3522_s20  ;;  %v167_v25 = vadd.f32 %v165_v13, %v139_v50  ;;  %v182_v57 = vsel %vm180_vm0, %v3036_v49, %v179_v62  ;;  %v218_v56 = vsel %vm180_vm0, %v3042_v53, %v216_v5  ;;  %s4022_s20 = sld [smem:[#allocation3 + $0x65]] }
 0x15a   :  { %1531 = vrot.lane.b32.xlu1 %v1526_v34, %s2824_s3  ;;  %1529 = vrot.lane.b32.xlu0 %v1525_v20, %s2824_s3  ;;  %v199_v34 = vsel %vm180_vm0, %v3026_v41, %v197_v44  ;;  %v217_v14 = vsel %vm180_vm0, %v3044_v54, %v215_v27  ;;  %v234_v37 = vrot.slane %v3050_v58, 1  ;;  %v1562_v41 = vmul.f32 %v3501_v1, %v1560_v60 }
 0x15b   :  { %v233_v43 = vrot.slane %v3052_v59, 1  ;;  %v252_v48 = vrot.slane %v3058_v63, 1  ;;  %v1561_v49 = vmul.f32 %v3541_v15, %v1560_v60  ;;  %v1578_v47 = vstv %s3549_s21  ;;  %s2827_s21 = smov 90  }
 0x15c   :  { %v3571_v30 = vpop.permute.xlu1 %1025  ;;  %v3581_v17 = vpop.permute.xlu0 %1023  ;;  %v166_v53 = vadd.f32 %v164_v38, %v138_v8  ;;  %v251_v54 = vrot.slane %v3060_v2, 1  ;;  %v270_v20 = vrot.slane %v3066_v6, 1  ;;  %v269_v28 = vrot.slane %v3068_v7, 1 }
 0x15d   :  { %v203_v13 = vadd.f32 %v199_v34, %v3496_v22  ;;  %v185_v32 = vadd.f32 %v181_v42, %v3529_v52  ;;  %v204_v44 = vadd.f32 %v200_v9, %v155_v26  ;;  %v186_v61 = vadd.f32 %v182_v57, %v149_v3 }
 0x15e   :  { %1549 = vrot.lane.b32.xlu1 %v1544_v16, %s2824_s3  ;;  %1547 = vrot.lane.b32.xlu0 %v1543_v33, %s2824_s3  ;;  %v222_v46 = vadd.f32 %v218_v56, %v161_v0  ;;  %v221_v62 = vadd.f32 %v217_v14, %v160_v10  ;;  %v236_v5 = vsel %vm180_vm0, %v3050_v58, %v234_v37  ;;  %v1596_v26 = vstv %s3568_s26  ;;  %s4635_s26 = sld [smem:[#allocation3 + $0x8c]] }
 0x15f   :  { %v1580_v27 = vmul.f32 %v3501_v1, %v1578_v47  ;;  %v235_v16 = vsel %vm180_vm0, %v3052_v59, %v233_v43  ;;  %v254_v22 = vsel %vm180_vm0, %v3058_v63, %v252_v48  ;;  %v1579_v52 = vmul.f32 %v3541_v15, %v1578_v47 }
 0x160   :  { %v3600_v50 = vpop.permute.xlu1 %1043  ;;  %v3604_v60 = vpop.permute.xlu0 %1041  ;;  %v253_v58 = vsel %vm180_vm0, %v3060_v2, %v251_v54  ;;  %v272_v10 = vsel %vm180_vm0, %v3066_v6, %v270_v20  ;;  %v271_v3 = vsel %vm180_vm0, %v3068_v7, %v269_v28  ;;  %v288_v59 = vrot.slane %v3074_v11, 1 }
 0x161   :  { %v287_v0 = vrot.slane %v3076_v12, 1  ;;  %v306_v33 = vrot.slane %v3082_v18, 1  ;;  %v305_v38 = vrot.slane %v3084_v19, 1  ;;  %v324_v8 = vrot.slane %v3090_v23, 1 }
 0x162   :  { %1567 = vrot.lane.b32.xlu1 %v1562_v41, %s2824_s3  ;;  %1565 = vrot.lane.b32.xlu0 %v1561_v49, %s2824_s3  ;;  %v240_v34 = vadd.f32 %v236_v5, %v167_v25  ;;  %v323_v6 = vrot.slane %v3092_v24, 1  ;;  %v342_v7 = vrot.slane %v3098_v29, 1  ;;  %v1598_v42 = vmul.f32 %v3501_v1, %v1596_v26 }
 0x163   :  { %v239_v9 = vadd.f32 %v235_v16, %v166_v53  ;;  %v258_v57 = vadd.f32 %v254_v22, %v186_v61  ;;  %v1597_v56 = vmul.f32 %v3541_v15, %v1596_v26  ;;  %v1614_v14 = vstv %s3595_s2  ;;  %s4658_s2 = sld [smem:[#allocation3 + $0x69]] }
 0x164   :  { %v3626_v63 = vpop.permute.xlu1 %1062  ;;  %v3632_v2 = vpop.permute.xlu0 %1060  ;;  %v257_v37 = vadd.f32 %v253_v58, %v185_v32  ;;  %v276_v41 = vadd.f32 %v272_v10, %v204_v44  ;;  %v275_v25 = vadd.f32 %v271_v3, %v203_v13  ;;  %v290_v43 = vsel %vm180_vm0, %v3074_v11, %v288_v59 }
 0x165   :  { %v289_v49 = vsel %vm180_vm0, %v3076_v12, %v287_v0  ;;  %v308_v47 = vsel %vm180_vm0, %v3082_v18, %v306_v33  ;;  %v307_v53 = vsel %vm180_vm0, %v3084_v19, %v305_v38  ;;  %v326_v54 = vsel %vm180_vm0, %v3090_v23, %v324_v8  ;;  %v5172_v8 = vld [vmem:[#allocation10_spill] sm:$0xff] }
 0x166   :  { %1585 = vrot.lane.b32.xlu1 %v1580_v27, %s2824_s3  ;;  %1583 = vrot.lane.b32.xlu0 %v1579_v52, %s2824_s3  ;;  %v325_v11 = vsel %vm180_vm0, %v3092_v24, %v323_v6  ;;  %v344_v28 = vsel %vm180_vm0, %v3098_v29, %v342_v7  ;;  %v341_v13 = vrot.slane %v3100_v31, 1  ;;  %v1616_v12 = vmul.f32 %v3435_v4, %v1614_v14  ;;  %v5173_v6 = vld [vmem:[#allocation11_spill] sm:$0xff] }
 0x167   :  { %v360_v18 = vrot.slane %v3106_v35, 1  ;;  %v359_v19 = vrot.slane %v3108_v36, 1  ;;  %v1615_v23 = vmul.f32 %v3387_v39, %v1614_v14  ;;  %v1633_v32 = vstv %s3617_s1  ;;  %v5176_v14 = vld [vmem:[#allocation14_spill] sm:$0xff]  ;;  %s4675_s1 = sld [smem:[#allocation3 + $0x22]] }
 0x168   :  { %v3645_v48 = vpop.permute.xlu1 %1080  ;;  %v3655_v20 = vpop.permute.xlu0 %1078  ;;  %v294_v24 = vadd.f32 %v290_v43, %v222_v46  ;;  %v378_v29 = vrot.slane %v3114_v40, 1  ;;  %v377_v44 = vrot.slane %v3116_v45, 1  ;;  %v396_v61 = vrot.slane %v3122_v51, 1 }
 0x169   :  { %v293_v27 = vadd.f32 %v289_v49, %v221_v62  ;;  %v312_v16 = vadd.f32 %v308_v47, %v240_v34  ;;  %v311_v22 = vadd.f32 %v307_v53, %v239_v9  ;;  %v330_v52 = vadd.f32 %v326_v54, %v258_v57  ;;  %v5175_v57 = vld [vmem:[#allocation13_spill] sm:$0xff]  ;;  %v5178_v49 = vld [vmem:[#allocation16_spill] sm:$0xff] }
 0x16a   :  { %1603 = vrot.lane.b32.xlu1 %v1598_v42, %s2824_s3  ;;  %1601 = vrot.lane.b32.xlu0 %v1597_v56, %s2824_s3  ;;  %v329_v58 = vadd.f32 %v325_v11, %v257_v37  ;;  %v348_v10 = vadd.f32 %v344_v28, %v276_v41  ;;  %v343_v46 = vsel %vm180_vm0, %v3100_v31, %v341_v13  ;;  %s2825_s3 = smov 92   ;;  %v1651_v33 = vstv %s3641_s27  ;;  %v5174_v42 = vld [vmem:[#allocation12_spill] sm:$0xff]  ;;  %s4684_s27 = sld [smem:[#allocation3 + $0x46]] }
 0x16b   :  { %v1635_v3 = vmul.f32 %v3435_v4, %v1633_v32  ;;  %v362_v59 = vsel %vm180_vm0, %v3106_v35, %v360_v18  ;;  %v361_v62 = vsel %vm180_vm0, %v3108_v36, %v359_v19  ;;  %v1634_v0 = vmul.f32 %v3387_v39, %v1633_v32 }
 0x16c   :  { %v3674_v5 = vpop.permute.xlu1 %1098  ;;  %v3676_v26 = vpop.permute.xlu0 %1096  ;;  %v380_v31 = vsel %vm180_vm0, %v3114_v40, %v378_v29  ;;  %v379_v38 = vsel %vm180_vm0, %v3116_v45, %v377_v44  ;;  %v398_v35 = vsel %vm180_vm0, %v3122_v51, %v396_v61  ;;  %v395_v34 = vrot.slane %v5172_v8, 1  ;;  %v5177_v45 = vld [vmem:[#allocation15_spill] sm:$0xff] }
 0x16d   :  { %v414_v7 = vrot.slane %v5173_v6, 1  ;;  %v413_v9 = vrot.slane %v5174_v42, 1  ;;  %v432_v56 = vrot.slane %v5175_v57, 1  ;;  %v431_v37 = vrot.slane %v5176_v14, 1 }
 0x16e   :  { %1621 = vrot.lane.b32.xlu1 %v1616_v12, %s2825_s3  ;;  %1619 = vrot.lane.b32.xlu0 %v1615_v23, %s2825_s3  ;;  %v347_v41 = vadd.f32 %v343_v46, %v275_v25  ;;  %v450_v43 = vrot.slane %v5177_v45, 1  ;;  %v449_v51 = vrot.slane %v5178_v49, 1  ;;  %v1653_v47 = vmul.f32 %v3435_v4, %v1651_v33  ;;  %v5180_v46 = vld [vmem:[#allocation18_spill] sm:$0xff] }
 0x16f   :  { %v366_v53 = vadd.f32 %v362_v59, %v294_v24  ;;  %v365_v54 = vadd.f32 %v361_v62, %v293_v27  ;;  %v1652_v11 = vmul.f32 %v3387_v39, %v1651_v33  ;;  %v1669_v28 = vstv %s3669_s28  ;;  %v5181_v59 = vld [vmem:[#allocation19_spill] sm:$0xff]  ;;  %s4069_s28 = sld [smem:[#allocation3 + $0x42]] }
 0x170   :  { %v3698_v36 = vpop.permute.xlu1 %1116  ;;  %v3704_v40 = vpop.permute.xlu0 %1114  ;;  %v384_v13 = vadd.f32 %v380_v31, %v312_v16  ;;  %v383_v12 = vadd.f32 %v379_v38, %v311_v22  ;;  %v402_v25 = vadd.f32 %v398_v35, %v330_v52  ;;  %v397_v18 = vsel %vm180_vm0, %v5172_v8, %v395_v34  ;;  %v5179_v16 = vld [vmem:[#allocation17_spill] sm:$0xff]  ;;  %v5182_v38 = vld [vmem:[#allocation20_spill] sm:$0xff] }
 0x171   :  { %v416_v23 = vsel %vm180_vm0, %v5173_v6, %v414_v7  ;;  %v415_v32 = vsel %vm180_vm0, %v5174_v42, %v413_v9  ;;  %v434_v24 = vsel %vm180_vm0, %v5175_v57, %v432_v56  ;;  %v433_v29 = vsel %vm180_vm0, %v5176_v14, %v431_v37  ;;  %v5183_v8 = vld [vmem:[#allocation21_spill] sm:$0xff]  ;;  %v5184_v6 = vld [vmem:[#allocation22_spill] sm:$0xff] }
 0x172   :  { %1640 = vrot.lane.b32.xlu1 %v1635_v3, %s2825_s3  ;;  %1638 = vrot.lane.b32.xlu0 %v1634_v0, %s2825_s3  ;;  %v452_v61 = vsel %vm180_vm0, %v5177_v45, %v450_v43  ;;  %v451_v27 = vsel %vm180_vm0, %v5178_v49, %v449_v51  ;;  %v468_v22 = vrot.slane %v5179_v16, 1  ;;  %v1671_v52 = vmul.f32 %v3435_v4, %v1669_v28  ;;  %v5185_v49 = vld [vmem:[#allocation69_spill] sm:$0xff] }
 0x173   :  { %v467_v3 = vrot.slane %v5180_v46, 1  ;;  %v487_v62 = vrot.slane %v5181_v59, 1  ;;  %v1670_v0 = vmul.f32 %v3387_v39, %v1669_v28  ;;  %v1687_v33 = vstv %s3689_s29  ;;  %s4093_s29 = sld [smem:[#allocation3 + $0x89]] }
 0x174   :  { %v3717_v19 = vpop.permute.xlu1 %1134  ;;  %v3727_v44 = vpop.permute.xlu0 %1132  ;;  %v401_v31 = vadd.f32 %v397_v18, %v329_v58  ;;  %v486_v35 = vrot.slane %v5182_v38, 1  ;;  %v505_v34 = vrot.slane %v5183_v8, 1  ;;  %v504_v7 = vrot.slane %v5184_v6, 1 }
 0x175   :  { %v420_v9 = vadd.f32 %v416_v23, %v348_v10  ;;  %v419_v57 = vadd.f32 %v415_v32, %v347_v41  ;;  %v438_v56 = vadd.f32 %v434_v24, %v366_v53  ;;  %v437_v14 = vadd.f32 %v433_v29, %v365_v54  ;;  %v5187_v23 = vld [vmem:[#allocation24_spill] sm:$0xff]  ;;  %v5188_v24 = vld [vmem:[#allocation25_spill] sm:$0xff] }
 0x176   :  { %1658 = vrot.lane.b32.xlu1 %v1653_v47, %s2825_s3  ;;  %1656 = vrot.lane.b32.xlu0 %v1652_v11, %s2825_s3  ;;  %v456_v45 = vadd.f32 %v452_v61, %v384_v13  ;;  %v455_v43 = vadd.f32 %v451_v27, %v383_v12  ;;  %v471_v58 = vsel %vm469_vm1, %v5179_v16, %v468_v22  ;;  %v1705_v53 = vstv %s3713_s30  ;;  %v5186_v13 = vld [vmem:[#allocation23_spill] sm:$0xff]  ;;  %v5189_v61 = vld [vmem:[#allocation26_spill] sm:$0xff]  ;;  %s4100_s30 = sld [smem:[#allocation3 + $0x66]] }
 0x177   :  { %v1689_v51 = vmul.f32 %v5185_v49, %v1687_v33  ;;  %v470_v47 = vsel %vm469_vm1, %v5180_v46, %v467_v3  ;;  %v489_v10 = vsel %vm469_vm1, %v5181_v59, %v487_v62  ;;  %v1688_v41 = vmul.f32 %v3424_v55, %v1687_v33  ;;  %v5190_v16 = vld [vmem:[#allocation27_spill] sm:$0xff]  ;;  %v5192_v3 = vld [vmem:[#allocation28_spill] sm:$0xff]  ;;  %v5193_v62 = vld [vmem:[#allocation29_spill] sm:$0xff] }
 0x178   :  { %v3746_v42 = vpop.permute.xlu1 %1152  ;;  %v3748_v37 = vpop.permute.xlu0 %1150  ;;  %v488_v54 = vsel %vm469_vm1, %v5182_v38, %v486_v35  ;;  %v507_v11 = vsel %vm469_vm1, %v5183_v8, %v505_v34  ;;  %v506_v28 = vsel %vm469_vm1, %v5184_v6, %v504_v7  ;;  %v523_v12 = vrot.slane %v5186_v13, 1 }
 0x179   :  { %v522_v32 = vrot.slane %v5187_v23, 1  ;;  %v541_v29 = vrot.slane %v5188_v24, 1  ;;  %v540_v27 = vrot.slane %v5189_v61, 1  ;;  %v559_v22 = vrot.slane %v5190_v16, 1 }
 0x17a   :  { %1676 = vrot.lane.b32.xlu1 %v1671_v52, %s2825_s3  ;;  %1674 = vrot.lane.b32.xlu0 %v1670_v0, %s2825_s3  ;;  %v475_v46 = vadd.f32 %v471_v58, %v402_v25  ;;  %v558_v59 = vrot.slane %v5192_v3, 1  ;;  %v577_v0 = vrot.slane %v5193_v62, 1  ;;  %v1707_v33 = vmul.f32 %v5185_v49, %v1705_v53 }
 0x17b   :  { %v474_v38 = vadd.f32 %v470_v47, %v401_v31  ;;  %v493_v35 = vadd.f32 %v489_v10, %v420_v9  ;;  %v1706_v8 = vmul.f32 %v3424_v55, %v1705_v53  ;;  %v1723_v34 = vstv %s3741_s6  ;;  %v5196_v10 = vld [vmem:[#allocation30_spill] sm:$0xff]  ;;  %s4724_s6 = sld [smem:[#allocation3 + $0x47]] }
 0x17c   :  { %v3770_v18 = vpop.permute.xlu1 %1170  ;;  %v3776_v52 = vpop.permute.xlu0 %1168  ;;  %v492_v6 = vadd.f32 %v488_v54, %v419_v57  ;;  %v511_v7 = vadd.f32 %v507_v11, %v438_v56  ;;  %v510_v25 = vadd.f32 %v506_v28, %v437_v14  ;;  %v525_v58 = vsel %vm469_vm1, %v5186_v13, %v523_v12  ;;  %v5197_v54 = vld [vmem:[#allocation31_spill] sm:$0xff]  ;;  %v5198_v28 = vld [vmem:[#allocation32_spill] sm:$0xff] }
 0x17d   :  { %5191 = vst [vmem:[#allocation10_spill] sm:$0xff] %v3776_v52  ;;  %v524_v31 = vsel %vm469_vm1, %v5187_v23, %v522_v32  ;;  %v543_v9 = vsel %vm469_vm1, %v5188_v24, %v541_v29  ;;  %v561_v57 = vsel %vm469_vm1, %v5190_v16, %v559_v22  ;;  %v560_v14 = vsel %vm469_vm1, %v5192_v3, %v558_v59  ;;  %v5199_v29 = vld [vmem:[#allocation33_spill] sm:$0xff] }
 0x17e   :  { %1694 = vrot.lane.b32.xlu1 %v1689_v51, %s2825_s3  ;;  %1692 = vrot.lane.b32.xlu0 %v1688_v41, %s2825_s3  ;;  %v542_v51 = vsel %vm469_vm1, %v5189_v61, %v540_v27  ;;  %v579_v47 = vsel %vm469_vm1, %v5193_v62, %v577_v0  ;;  %v576_v41 = vrot.slane %v5196_v10, 1  ;;  %v1725_v53 = vmul.f32 %v5185_v49, %v1723_v34  ;;  %v5200_v27 = vld [vmem:[#allocation34_spill] sm:$0xff]  ;;  %v5202_v0 = vld [vmem:[#allocation35_spill] sm:$0xff] }
 0x17f   :  { %v595_v11 = vrot.slane %v5197_v54, 1  ;;  %v594_v13 = vrot.slane %v5198_v28, 1  ;;  %v1724_v12 = vmul.f32 %v3424_v55, %v1723_v34  ;;  %v1741_v23 = vstv %s3761_s7  ;;  %s4733_s7 = sld [smem:[#allocation3 + $0x8e]] }
 0x180   :  { %v3789_v52 = vpop.permute.xlu1 %1188  ;;  %v3799_v56 = vpop.permute.xlu0 %1186  ;;  %v529_v32 = vadd.f32 %v525_v58, %v456_v45  ;;  %v528_v24 = vadd.f32 %v524_v31, %v455_v43  ;;  %v613_v61 = vrot.slane %v5199_v29, 1  ;;  %v612_v16 = vrot.slane %v5200_v27, 1 }
 0x181   :  { %5194 = vst [vmem:[#allocation11_spill] sm:$0xff] %v3789_v52  ;;  %5195 = vst [vmem:[#allocation12_spill] sm:$0xff] %v3799_v56  ;;  %v547_v3 = vadd.f32 %v543_v9, %v475_v46  ;;  %v546_v59 = vadd.f32 %v542_v51, %v474_v38  ;;  %v565_v62 = vadd.f32 %v561_v57, %v493_v35  ;;  %v1759_v35 = vstv %s3785_s8  ;;  %v5205_v9 = vld [vmem:[#allocation37_spill] sm:$0xff]  ;;  %s4141_s8 = sld [smem:[#allocation3 + $0x1f]] }
 0x182   :  { %1712 = vrot.lane.b32.xlu1 %v1707_v33, %s2825_s3  ;;  %1710 = vrot.lane.b32.xlu0 %v1706_v8, %s2825_s3  ;;  %v631_v33 = vrot.slane %v5202_v0, 1  ;;  %v564_v34 = vadd.f32 %v560_v14, %v492_v6  ;;  %v583_v56 = vadd.f32 %v579_v47, %v511_v7  ;;  %v578_v45 = vsel %vm469_vm1, %v5196_v10, %v576_v41  ;;  %v5208_v10 = vld [vmem:[#allocation39_spill] sm:$0xff] }
 0x183   :  { %v1743_v43 = vmul.f32 %v5185_v49, %v1741_v23  ;;  %v597_v58 = vsel %vm469_vm1, %v5197_v54, %v595_v11  ;;  %v596_v46 = vsel %vm469_vm1, %v5198_v28, %v594_v13  ;;  %v1742_v38 = vmul.f32 %v3424_v55, %v1741_v23  ;;  %v5204_v49 = vld [vmem:[#allocation36_spill] sm:$0xff]  ;;  %v5207_v55 = vld [vmem:[#allocation38_spill] sm:$0xff] }
 0x184   :  { %v3817_v22 = vpop.permute.xlu1 %1206  ;;  %v3820_v8 = vpop.permute.xlu0 %1204  ;;  %v615_v6 = vsel %vm469_vm1, %v5199_v29, %v613_v61  ;;  %v614_v7 = vsel %vm469_vm1, %v5200_v27, %v612_v16  ;;  %v630_v31 = vrot.slane %v5204_v49, 1  ;;  %v649_v51 = vrot.slane %v5205_v9, 1  ;;  %v5212_v16 = vld [vmem:[#allocation72_spill] sm:$0xff] }
 0x185   :  { %5201 = vst [vmem:[#allocation13_spill] sm:$0xff] %v3817_v22  ;;  %5203 = vst [vmem:[#allocation14_spill] sm:$0xff] %v3820_v8  ;;  %v633_v14 = vsel %vm469_vm1, %v5202_v0, %v631_v33  ;;  %v648_v47 = vrot.slane %v5207_v55, 1  ;;  %v667_v41 = vrot.slane %v5208_v10, 1  ;;  %v582_v28 = vadd.f32 %v578_v45, %v510_v25 }
 0x186   :  { %1730 = vrot.lane.b32.xlu1 %v1725_v53, %s2825_s3  ;;  %1728 = vrot.lane.b32.xlu0 %v1724_v12, %s2825_s3  ;;  %v5209_v53 = vld [vmem:[#allocation40_spill] sm:$0xff]  ;;  %v601_v13 = vadd.f32 %v597_v58, %v529_v32  ;;  %v5211_v12 = vld [vmem:[#allocation41_spill] sm:$0xff]  ;;  %v1761_v29 = vmul.f32 %v3458_v21, %v1759_v35  ;;  %v600_v61 = vadd.f32 %v596_v46, %v528_v24  ;;  %v1777_v33 = vstv %s3813_s9  ;;  %s4830_s9 = sld [smem:[#allocation5]] }
 0x187   :  { %v666_v54 = vrot.slane %v5209_v53, 1  ;;  %v685_v23 = vrot.slane %v5211_v12, 1  ;;  %v619_v27 = vadd.f32 %v615_v6, %v547_v3  ;;  %v1760_v0 = vmul.f32 %v5212_v16, %v1759_v35  ;;  %v5217_v6 = vld [vmem:[#allocation44_spill] sm:$0xff] }
 0x188   :  { %v3841_v57 = vpop.permute.xlu1 %1224  ;;  %v3848_v11 = vpop.permute.xlu0 %1222  ;;  %v637_v8 = vadd.f32 %v633_v14, %v565_v62  ;;  %v632_v25 = vsel %vm469_vm1, %v5204_v49, %v630_v31  ;;  %v651_v32 = vsel %vm469_vm1, %v5205_v9, %v649_v51  ;;  %v650_v24 = vsel %vm469_vm1, %v5207_v55, %v648_v47  ;;  %v5214_v62 = vld [vmem:[#allocation42_spill] sm:$0xff]  ;;  %v5218_v31 = vld [vmem:[#allocation45_spill] sm:$0xff]  ;;  %v4149_v22 = vld [vmem:[%s4974_s0 + $0xe] ss:$4 sm:$0x7] }
 0x189   :  { %5206 = vst [vmem:[#allocation15_spill] sm:$0xff] %v3841_v57  ;;  %5210 = vst [vmem:[#allocation16_spill] sm:$0xff] %v3848_v11  ;;  %v618_v57 = vadd.f32 %v614_v7, %v546_v59  ;;  %v669_v3 = vsel %vm469_vm1, %v5208_v10, %v667_v41  ;;  %v668_v59 = vsel %vm469_vm1, %v5209_v53, %v666_v54  ;;  %v702_v7 = vrot.slane %v5217_v6, 1  ;;  %v5219_v51 = vld [vmem:[#allocation46_spill] sm:$0xff] }
 0x18a   :  { %1748 = vrot.lane.b32.xlu1 %v1743_v43, %s2825_s3  ;;  %1746 = vrot.lane.b32.xlu0 %v1742_v38, %s2825_s3  ;;  %v684_v43 = vrot.slane %v5214_v62, 1  ;;  %v687_v46 = vsel %vm469_vm1, %v5211_v12, %v685_v23  ;;  %v5216_v38 = vld [vmem:[#allocation43_spill] sm:$0xff]  ;;  %v1779_v49 = vmul.f32 %v3458_v21, %v1777_v33  ;;  %v721_v9 = vrot.slane %v5218_v31, 1  ;;  %5270 = vst [vmem:[#allocation39_spill] sm:$0xff] %v4149_v22 }
 0x18b   :  { %v703_v35 = vrot.slane %v5216_v38, 1  ;;  %v720_v14 = vrot.slane %v5219_v51, 1  ;;  %v1778_v55 = vmul.f32 %v5212_v16, %v1777_v33  ;;  %v1795_v47 = vstv %s3833_s10  ;;  %v5223_v33 = vld [vmem:[#allocation48_spill] sm:$0xff]  ;;  %s4832_s10 = sld [smem:[#allocation7]] }
 0x18c   :  { %v3862_v45 = vpop.permute.xlu1 %1242  ;;  %v3873_v58 = vpop.permute.xlu0 %1240  ;;  %v636_v10 = vadd.f32 %v632_v25, %v564_v34  ;;  %v655_v41 = vadd.f32 %v651_v32, %v583_v56  ;;  %v654_v53 = vadd.f32 %v650_v24, %v582_v28  ;;  %v673_v54 = vadd.f32 %v669_v3, %v601_v13  ;;  %v5224_v3 = vld [vmem:[#allocation49_spill] sm:$0xff] }
 0x18d   :  { %5213 = vst [vmem:[#allocation17_spill] sm:$0xff] %v3862_v45  ;;  %5215 = vst [vmem:[#allocation18_spill] sm:$0xff] %v3873_v58  ;;  %v672_v23 = vadd.f32 %v668_v59, %v600_v61  ;;  %v686_v58 = vsel %vm469_vm1, %v5214_v62, %v684_v43  ;;  %v5221_v45 = vld [vmem:[#allocation47_spill] sm:$0xff]  ;;  %v705_v56 = vsel %vm469_vm1, %v5216_v38, %v703_v35  ;;  %v738_v25 = vrot.slane %v5223_v33, 1  ;;  %v5225_v62 = vld [vmem:[#allocation50_spill] sm:$0xff] }
 0x18e   :  { %1766 = vrot.lane.b32.xlu1 %v1761_v29, %s2825_s3  ;;  %1764 = vrot.lane.b32.xlu0 %v1760_v0, %s2825_s3  ;;  %v691_v29 = vadd.f32 %v687_v46, %v619_v27  ;;  %v739_v11 = vrot.slane %v5221_v45, 1  ;;  %v704_v34 = vsel %vm469_vm1, %v5217_v6, %v702_v7  ;;  %v1797_v28 = vmul.f32 %v3458_v21, %v1795_v47 }
 0x18f   :  { %v1796_v13 = vmul.f32 %v5212_v16, %v1795_v47  ;;  %v723_v61 = vsel %vm469_vm1, %v5218_v31, %v721_v9  ;;  %v722_v27 = vsel %vm469_vm1, %v5219_v51, %v720_v14  ;;  %v1813_v32 = vstv %s3856_s11  ;;  %s4154_s11 = sld [smem:[#allocation3 + $0x43]] }
 0x190   :  { %v3888_v12 = vpop.permute.xlu1 %1260  ;;  %v3893_v0 = vpop.permute.xlu0 %1258  ;;  %v690_v24 = vadd.f32 %v686_v58, %v618_v57  ;;  %v757_v59 = vrot.slane %v5224_v3, 1  ;;  %v756_v43 = vrot.slane %v5225_v62, 1  ;;  %v1831_v38 = vstv %s3864_s12  ;;  %s4838_s12 = sld [smem:[#allocation7 + $0x1]] }
 0x191   :  { %5220 = vst [vmem:[#allocation19_spill] sm:$0xff] %v3888_v12  ;;  %5222 = vst [vmem:[#allocation20_spill] sm:$0xff] %v3893_v0  ;;  %v709_v35 = vadd.f32 %v705_v56, %v637_v8  ;;  %v708_v6 = vadd.f32 %v704_v34, %v636_v10  ;;  %v741_v7 = vsel %vm469_vm1, %v5221_v45, %v739_v11  ;;  %v1849_v47 = vstv %s3886_s14  ;;  %v5231_v34 = vld [vmem:[#allocation53_spill] sm:$0xff]  ;;  %s4842_s14 = sld [smem:[#allocation5 + $0x2]] }
 0x192   :  { %1784 = vrot.lane.b32.xlu1 %v1779_v49, %s2825_s3  ;;  %1782 = vrot.lane.b32.xlu0 %v1778_v55, %s2825_s3  ;;  %v5227_v49 = vld [vmem:[#allocation51_spill] sm:$0xff]  ;;  %v727_v57 = vadd.f32 %v723_v61, %v655_v41  ;;  %v726_v58 = vadd.f32 %v722_v27, %v654_v53  ;;  %v1815_v51 = vmul.f32 %v3458_v21, %v1813_v32  ;;  %v5229_v55 = vld [vmem:[#allocation52_spill] sm:$0xff]  ;;  %v5268_v0 = vld [vmem:[#allocation77_spill] sm:$0xff]  ;;  %vm2571_vm0 = vcmask 1041408  }
 0x193   :  { %v776_v31 = vrot.slane %v5227_v49, 1  ;;  %v1814_v14 = vmul.f32 %v5212_v16, %v1813_v32  ;;  %v740_v8 = vsel %vm469_vm1, %v5223_v33, %v738_v25  ;;  %v775_v11 = vrot.slane %v5229_v55, 1  ;;  %v5234_v25 = vld [vmem:[#allocation55_spill] sm:$0xff] }
 0x194   :  { %v3915_v46 = vpop.permute.xlu1 %1278  ;;  %v3921_v9 = vpop.permute.xlu0 %1276  ;;  %v1833_v45 = vmul.f32 %v3501_v1, %v1831_v38  ;;  %v745_v10 = vadd.f32 %v741_v7, %v673_v54  ;;  %v760_v41 = vsel %vm758_vm2, %v5224_v3, %v757_v59  ;;  %v759_v21 = vsel %vm758_vm2, %v5225_v62, %v756_v43 }
 0x195   :  { %5226 = vst [vmem:[#allocation21_spill] sm:$0xff] %v3915_v46  ;;  %5228 = vst [vmem:[#allocation22_spill] sm:$0xff] %v3921_v9  ;;  %v1832_v53 = vmul.f32 %v3541_v15, %v1831_v38  ;;  %v778_v56 = vsel %vm758_vm2, %v5227_v49, %v776_v31  ;;  %v1867_v54 = vstv %s3895_s15  ;;  %v744_v33 = vadd.f32 %v740_v8, %v672_v23  ;;  %v5235_v38 = vld [vmem:[#allocation56_spill] sm:$0xff]  ;;  %s4179_s15 = sld [smem:[#allocation3 + $0x8a]] }
 0x196   :  { %1802 = vrot.lane.b32.xlu1 %v1797_v28, %s2825_s3  ;;  %1800 = vrot.lane.b32.xlu0 %v1796_v13, %s2825_s3  ;;  %v794_v28 = vrot.slane %v5231_v34, 1  ;;  %v5232_v13 = vld [vmem:[#allocation54_spill] sm:$0xff]  ;;  %v812_v32 = vrot.slane %v5234_v25, 1  ;;  %v1851_v3 = vmul.f32 %v3501_v1, %v1849_v47  ;;  %v1850_v59 = vmul.f32 %v3541_v15, %v1849_v47  ;;  %v5257_v9 = vld [vmem:[#allocation68_spill] sm:$0xff] }
 0x197   :  { %v793_v61 = vrot.slane %v5232_v13, 1  ;;  %v764_v62 = vadd.f32 %v760_v41, %v691_v29  ;;  %v777_v43 = vsel %vm758_vm2, %v5229_v55, %v775_v11  ;;  %v811_v7 = vrot.slane %v5235_v38, 1  ;;  %v5237_v55 = vld [vmem:[#allocation57_spill] sm:$0xff] }
 0x198   :  { %v3940_v16 = vpop.permute.xlu1 %1296  ;;  %v3947_v27 = vpop.permute.xlu0 %1294  ;;  %v1885_v49 = vstv %s3911_s16  ;;  %v763_v23 = vadd.f32 %v759_v21, %v690_v24  ;;  %v782_v31 = vadd.f32 %v778_v56, %v709_v35  ;;  %v1868_v47 = vmul.f32 %v3541_v15, %v1867_v54  ;;  %v5239_v56 = vld [vmem:[#allocation58_spill] sm:$0xff]  ;;  %s4202_s16 = sld [smem:[#allocation3 + $0x67]] }
 0x199   :  { %5230 = vst [vmem:[#allocation69_spill] sm:$0xff] %v3940_v16  ;;  %5233 = vst [vmem:[#allocation23_spill] sm:$0xff] %v3947_v27  ;;  %v796_v29 = vsel %vm758_vm2, %v5231_v34, %v794_v28  ;;  %v830_v11 = vrot.slane %v5237_v55, 1  ;;  %v1903_v24 = vstv %s3923_s13  ;;  %v781_v35 = vadd.f32 %v777_v43, %v708_v6  ;;  %v5240_v28 = vld [vmem:[#allocation59_spill] sm:$0xff]  ;;  %s4212_s13 = sld [smem:[#allocation3 + $0x20]] }
 0x19a   :  { %1820 = vrot.lane.b32.xlu1 %v1815_v51, %s2825_s3  ;;  %1818 = vrot.lane.b32.xlu0 %v1814_v14, %s2825_s3  ;;  %v1869_v51 = vmul.f32 %v3501_v1, %v1867_v54  ;;  %v795_v14 = vsel %vm758_vm2, %v5232_v13, %v793_v61  ;;  %v814_v21 = vsel %vm758_vm2, %v5234_v25, %v812_v32  ;;  %v829_v54 = vrot.slane %v5239_v56, 1  ;;  %v5241_v61 = vld [vmem:[#allocation60_spill] sm:$0xff] }
 0x19b   :  { %v813_v34 = vsel %vm758_vm2, %v5235_v38, %v811_v7  ;;  %v848_v13 = vrot.slane %v5240_v28, 1  ;;  %v847_v27 = vrot.slane %v5241_v61, 1  ;;  %v1922_v6 = vstv %s3934_s17 }
 0x19c   :  { %v3961_v8 = vpop.permute.xlu1 %1314  ;;  %v3972_v41 = vpop.permute.xlu0 %1312  ;;  %v800_v25 = vadd.f32 %v796_v29, %v727_v57  ;;  %v799_v32 = vadd.f32 %v795_v14, %v726_v58  ;;  %v818_v38 = vadd.f32 %v814_v21, %v745_v10  ;;  %v832_v7 = vsel %vm758_vm2, %v5237_v55, %v830_v11  ;;  %v5245_v55 = vld [vmem:[#allocation62_spill] sm:$0xff] }
 0x19d   :  { %5236 = vst [vmem:[#allocation24_spill] sm:$0xff] %v3961_v8  ;;  %5238 = vst [vmem:[#allocation25_spill] sm:$0xff] %v3972_v41  ;;  %v3980_v8 = vmul.f32 %v3501_v1, %v1885_v49  ;;  %v3994_v1 = vmul.f32 %v3435_v4, %v1903_v24  ;;  %v4004_v57 = vmul.f32 %v3387_v39, %v1903_v24  ;;  %v865_v11 = vrot.slane %v5245_v55, 1  ;;  %v5246_v24 = vld [vmem:[#allocation63_spill] sm:$0xff] }
 0x19e   :  { %1838 = vrot.lane.b32.xlu1 %v1833_v45, %s2825_s3  ;;  %1836 = vrot.lane.b32.xlu0 %v1832_v53, %s2825_s3  ;;  %v1886_v45 = vmul.f32 %v3541_v15, %v1885_v49  ;;  %v5243_v53 = vld [vmem:[#allocation61_spill] sm:$0xff]  ;;  %v817_v58 = vadd.f32 %v813_v34, %v744_v33  ;;  %v831_v15 = vsel %vm758_vm2, %v5239_v56, %v829_v54  ;;  %v1940_v33 = vstv %s3959_s18  ;;  %v5247_v56 = vld [vmem:[#allocation64_spill] sm:$0xff] }
 0x19f   :  { %v866_v41 = vrot.slane %v5243_v53, 1  ;;  %v4010_v49 = vmul.f32 %v3435_v4, %v1922_v6  ;;  %v4013_v10 = vmul.f32 %v3387_v39, %v1922_v6  ;;  %v850_v29 = vsel %vm758_vm2, %v5240_v28, %v848_v13 }
 0x1a0   :  { %v3990_v43 = vpop.permute.xlu1 %1332  ;;  %v4001_v16 = vpop.permute.xlu0 %1330  ;;  %v849_v14 = vsel %vm758_vm2, %v5241_v61, %v847_v27  ;;  %v884_v21 = vrot.slane %v5246_v24, 1  ;;  %v883_v54 = vrot.slane %v5247_v56, 1  ;;  %v1976_v34 = vstv %s3965_s19  ;;  %v5249_v27 = vld [vmem:[#allocation65_spill] sm:$0xff]  ;;  %v5250_v61 = vld [vmem:[#allocation66_spill] sm:$0xff]  ;;  %s4250_s19 = sld [smem:[#allocation3 + $0x44]] }
 0x1a1   :  { %5242 = vst [vmem:[#allocation26_spill] sm:$0xff] %v3990_v43  ;;  %5244 = vst [vmem:[#allocation27_spill] sm:$0xff] %v4001_v16  ;;  %v835_v6 = vadd.f32 %v831_v15, %v763_v23  ;;  %v868_v28 = vsel %vm758_vm2, %v5243_v53, %v866_v41  ;;  %v902_v13 = vrot.slane %v5249_v27, 1  ;;  %v4044_v23 = vld [vmem:[%s4974_s0] ss:$4 sm:$0x7]  ;;  %v867_v53 = vsel %vm758_vm2, %v5245_v55, %v865_v11 }
 0x1a2   :  { %1856 = vrot.lane.b32.xlu1 %v1851_v3, %s2825_s3  ;;  %1854 = vrot.lane.b32.xlu0 %v1850_v59, %s2825_s3  ;;  %v836_v3 = vadd.f32 %v832_v7, %v764_v62  ;;  %v901_v59 = vrot.slane %v5250_v61, 1  ;;  %v854_v62 = vadd.f32 %v850_v29, %v782_v31  ;;  %v853_v7 = vadd.f32 %v849_v14, %v781_v35  ;;  %v4055_v31 = vld [vmem:[%s4974_s0 + $0xd] ss:$4 sm:$0x7] }
 0x1a3   :  { %5252 = vst [vmem:[#allocation30_spill] sm:$0xff] %v4044_v23  ;;  %v4047_v41 = vmul.f32 %v4044_v23, %v1940_v33  ;;  %5253 = vst [vmem:[#allocation31_spill] sm:$0xff] %v4055_v31  ;;  %v1994_v15 = vstv %s3988_s22  ;;  %v886_v29 = vsel %vm758_vm2, %v5246_v24, %v884_v21  ;;  %v885_v14 = vsel %vm758_vm2, %v5247_v56, %v883_v54  ;;  %v5259_v21 = vld [vmem:[#allocation70_spill] sm:$0xff]  ;;  %v5260_v56 = vld [vmem:[#allocation71_spill] sm:$0xff] }
 0x1a4   :  { %v4026_v39 = vpop.permute.xlu1 %1351  ;;  %v4033_v16 = vpop.permute.xlu0 %1349  ;;  %v1958_v11 = vstv %s3996_s23  ;;  %v871_v24 = vadd.f32 %v867_v53, %v799_v32  ;;  %v938_v46 = vrot.slane %v5259_v21, 1  ;;  %v937_v54 = vrot.slane %v5260_v56, 1 }
 0x1a5   :  { %5248 = vst [vmem:[#allocation28_spill] sm:$0xff] %v4026_v39  ;;  %5251 = vst [vmem:[#allocation29_spill] sm:$0xff] %v4033_v16  ;;  %v4039_v39 = vmul.f32 %v3435_v4, %v1940_v33  ;;  %v4058_v4 = vmul.f32 %v4055_v31, %v1976_v34  ;;  %v904_v33 = vsel %vm758_vm2, %v5249_v27, %v902_v13  ;;  %v5256_v16 = vld [vmem:[#allocation67_spill] sm:$0xff]  ;;  %v2012_v32 = vstv %s4022_s20  ;;  %s4265_s20 = sld [smem:[#allocation3 + $0x8b]] }
 0x1a6   :  { %1874 = vrot.lane.b32.xlu1 %v1869_v51, %s2825_s3  ;;  %1872 = vrot.lane.b32.xlu0 %v1868_v47, %s2825_s3  ;;  %v4063_v51 = vld [vmem:[%s4974_s0 + $0x1] ss:$4 sm:$0x7]  ;;  %v872_v47 = vadd.f32 %v868_v28, %v800_v25  ;;  %v920_v43 = vrot.slane %v5256_v16, 1  ;;  %v919_v25 = vrot.slane %v5257_v9, 1  ;;  %v890_v27 = vadd.f32 %v886_v29, %v818_v38 }
 0x1a7   :  { %5254 = vst [vmem:[#allocation32_spill] sm:$0xff] %v4063_v51  ;;  %v4066_v35 = vmul.f32 %v4063_v51, %v1976_v34  ;;  %v903_v34 = vsel %vm758_vm2, %v5250_v61, %v901_v59  ;;  %v889_v13 = vadd.f32 %v885_v14, %v817_v58  ;;  %v4097_v61 = vmul.f32 %v4063_v51, %v1994_v15 }
 0x1a8   :  { %v4075_v55 = vpop.permute.xlu1 %1369  ;;  %v4084_v28 = vpop.permute.xlu0 %1367  ;;  %v908_v59 = vadd.f32 %v904_v33, %v836_v3  ;;  %v907_v53 = vadd.f32 %v903_v34, %v835_v6  ;;  %v922_v58 = vsel %vm758_vm2, %v5256_v16, %v920_v43  ;;  %v921_v3 = vsel %vm758_vm2, %v5257_v9, %v919_v25  ;;  %v5263_v6 = vld [vmem:[#allocation73_spill] sm:$0xff]  ;;  %v5266_v9 = vld [vmem:[#allocation75_spill] sm:$0xff]  ;;  %v5267_v25 = vld [vmem:[#allocation76_spill] sm:$0xff] }
 0x1a9   :  { %5255 = vst [vmem:[#allocation33_spill] sm:$0xff] %v4075_v55  ;;  %5258 = vst [vmem:[#allocation34_spill] sm:$0xff] %v4084_v28  ;;  %v4091_v55 = vmul.f32 %v4055_v31, %v1994_v15  ;;  %v956_v15 = vrot.slane %v5263_v6, 1  ;;  %v2048_v14 = vstv %s4035_s24  ;;  %v940_v33 = vsel %vm758_vm2, %v5259_v21, %v938_v46  ;;  %s4307_s24 = sld [smem:[#allocation3 + $0x21]] }
 0x1aa   :  { %1892 = vrot.lane.b32.xlu1 %v3980_v8, %s2825_s3  ;;  %1890 = vrot.lane.b32.xlu0 %v1886_v45, %s2825_s3  ;;  %v4107_v8 = vld [vmem:[%s4974_s0 + $0xc] ss:$4 sm:$0x7]  ;;  %v4113_v45 = vmul.f32 %v4044_v23, %v1958_v11  ;;  %v939_v34 = vsel %vm758_vm2, %v5260_v56, %v937_v54  ;;  %s2826_s3 = smov 91   ;;  %v4131_v16 = vmul.f32 %v4055_v31, %v2012_v32  ;;  %v974_v43 = vrot.slane %v5266_v9, 1 }
 0x1ab   :  { %5262 = vst [vmem:[#allocation36_spill] sm:$0xff] %v4107_v8  ;;  %v4110_v38 = vmul.f32 %v4107_v8, %v1958_v11  ;;  %v5265_v11 = vld [vmem:[#allocation74_spill] sm:$0xff]  ;;  %v4138_v46 = vmul.f32 %v4063_v51, %v2012_v32  ;;  %v2066_v21 = vstv %s4069_s28  ;;  %v926_v56 = vadd.f32 %v922_v58, %v854_v62  ;;  %s4695_s28 = sld [smem:[#allocation3 + $0x8d]] }
 0x1ac   :  { %v4102_v28 = vpop.permute.xlu1 %1387  ;;  %v4120_v29 = vpop.permute.xlu0 %1385  ;;  %v925_v54 = vadd.f32 %v921_v3, %v853_v7  ;;  %v944_v32 = vadd.f32 %v940_v33, %v872_v47  ;;  %v943_v52 = vadd.f32 %v939_v34, %v871_v24  ;;  %v958_v62 = vsel %vm758_vm2, %v5263_v6, %v956_v15  ;;  %v4163_v58 = vld [vmem:[%s4974_s0 + $0x2] ss:$4 sm:$0x7] }
 0x1ad   :  { %5261 = vst [vmem:[#allocation35_spill] sm:$0xff] %v4102_v28  ;;  %5264 = vst [vmem:[#allocation37_spill] sm:$0xff] %v4120_v29  ;;  %v955_v28 = vrot.slane %v5265_v11, 1  ;;  %v973_v29 = vrot.slane %v5267_v25, 1  ;;  %v4166_v3 = vmul.f32 %v4163_v58, %v2048_v14  ;;  %v4173_v47 = vmul.f32 %v4149_v22, %v2066_v21  ;;  %v5276_v33 = vld [vmem:[#allocation78_spill] sm:$0xff] }
 0x1ae   :  { %1910 = vrot.lane.b32.xlu1 %v3994_v1, %s2826_s3  ;;  %1908 = vrot.lane.b32.xlu0 %v4004_v57, %s2826_s3  ;;  %v992_v1 = vrot.slane %v5268_v0, 1  ;;  %v4152_v57 = vmul.f32 %v4149_v22, %v2048_v14  ;;  %5272 = vst [vmem:[#allocation41_spill] sm:$0xff] %v4163_v58  ;;  %v4176_v24 = vmul.f32 %v4163_v58, %v2066_v21  ;;  %v2030_v6 = vstv %s4093_s29  ;;  %v5277_v21 = vld [vmem:[#allocation79_spill] sm:$0xff]  ;;  %s4706_s29 = sld [smem:[#allocation3 + $0x6a]] }
 0x1af   :  { %5273 = vst [vmem:[#allocation72_spill] sm:$0xff] %v4166_v3  ;;  %5274 = vst [vmem:[#allocation42_spill] sm:$0xff] %v4173_v47  ;;  %v976_v15 = vsel %vm758_vm2, %v5266_v9, %v974_v43  ;;  %v975_v14 = vsel %vm758_vm2, %v5267_v25, %v973_v29  ;;  %v962_v34 = vadd.f32 %v958_v62, %v890_v27  ;;  %v1028_v29 = vrot.slane %v3571_v30, 1 }
 0x1b0   :  { %v4144_v12 = vpop.permute.xlu1 %1405  ;;  %v4158_v7 = vpop.permute.xlu0 %1403  ;;  %5275 = vst [vmem:[#allocation43_spill] sm:$0xff] %v4176_v24  ;;  %v5278_v24 = vld [vmem:[#allocation80_spill] sm:$0xff]  ;;  %v1027_v43 = vrot.slane %v3581_v17, 1  ;;  %v979_v27 = vadd.f32 %v975_v14, %v907_v53  ;;  %v2120_v53 = vstv %s4141_s8  ;;  %v2138_v14 = vstv %s4154_s11  ;;  %s4751_s8 = sld [smem:[#allocation3 + $0x8f]]  ;;  %s4836_s11 = sld [smem:[#allocation5 + $0x1]] }
 0x1b1   :  { %5269 = vst [vmem:[#allocation38_spill] sm:$0xff] %v4144_v12  ;;  %5271 = vst [vmem:[#allocation40_spill] sm:$0xff] %v4158_v7  ;;  %v957_v12 = vsel %vm758_vm2, %v5265_v11, %v955_v28  ;;  %v991_v28 = vrot.slane %v5276_v33, 1  ;;  %v994_v11 = vsel %vm758_vm2, %v5268_v0, %v992_v1  ;;  %v1010_v7 = vrot.slane %v5277_v21, 1 }
 0x1b2   :  { %1929 = vrot.lane.b32.xlu1 %v4010_v49, %s2826_s3  ;;  %1927 = vrot.lane.b32.xlu0 %v4013_v10, %s2826_s3  ;;  %v2084_v49 = vstv %s4100_s30  ;;  %v1009_v47 = vrot.slane %v5278_v24, 1  ;;  %v961_v9 = vadd.f32 %v957_v12, %v889_v13  ;;  %v4200_v10 = vmul.f32 %v4055_v31, %v2030_v6  ;;  %s4715_s30 = sld [smem:[#allocation3 + $0x23]] }
 0x1b3   :  { %v980_v0 = vadd.f32 %v976_v15, %v908_v59  ;;  %v4207_v12 = vmul.f32 %v4063_v51, %v2030_v6  ;;  %v4210_v13 = vmul.f32 %v4149_v22, %v2084_v49  ;;  %v998_v1 = vadd.f32 %v994_v11, %v926_v56 }
 0x1b4   :  { %v4193_v3 = vpop.permute.xlu1 %1423  ;;  %v4197_v25 = vpop.permute.xlu0 %1421  ;;  %v993_v62 = vsel %vm758_vm2, %v5276_v33, %v991_v28  ;;  %v4219_v59 = vmul.f32 %v4163_v58, %v2084_v49  ;;  %v1011_v6 = vsel %vm758_vm2, %v5278_v24, %v1009_v47  ;;  %v1046_v15 = vrot.slane %v3600_v50, 1  ;;  %v4244_v24 = vld [vmem:[%s4974_s0 + $0xf] ss:$4 sm:$0x7] }
 0x1b5   :  { %v1030_v33 = vsel %vm758_vm2, %v3571_v30, %v1028_v29  ;;  %v1045_v28 = vrot.slane %v3604_v60, 1  ;;  %v1065_v49 = vrot.slane %v3626_v63, 1  ;;  %v1064_v47 = vrot.slane %v3632_v2, 1  ;;  %5280 = vst [vmem:[#allocation45_spill] sm:$0xff] %v4244_v24 }
 0x1b6   :  { %1947 = vrot.lane.b32.xlu1 %v4039_v39, %s2826_s3  ;;  %1945 = vrot.lane.b32.xlu0 %v4047_v41, %s2826_s3  ;;  %v1012_v39 = vsel %vm758_vm2, %v5277_v21, %v1010_v7  ;;  %v1029_v41 = vsel %vm758_vm2, %v3581_v17, %v1027_v43  ;;  %v997_v7 = vadd.f32 %v993_v62, %v925_v54  ;;  %v2102_v17 = vstv %s4179_s15  ;;  %s4844_s15 = sld [smem:[#allocation5 + $0x3]] }
 0x1b7   :  { %v4247_v30 = vmul.f32 %v4244_v24, %v2120_v53  ;;  %v1016_v21 = vadd.f32 %v1012_v39, %v944_v32  ;;  %v1015_v29 = vadd.f32 %v1011_v6, %v943_v52  ;;  %v4263_v43 = vmul.f32 %v4244_v24, %v2138_v14 }
 0x1b8   :  { %v4227_v56 = vpop.permute.xlu1 %1441  ;;  %v4236_v11 = vpop.permute.xlu0 %1439  ;;  %v1034_v32 = vadd.f32 %v1030_v33, %v962_v34  ;;  %v1033_v62 = vadd.f32 %v1029_v41, %v961_v9  ;;  %v1049_v52 = vsel %vm1047_vm3, %v3600_v50, %v1046_v15  ;;  %v1067_v6 = vsel %vm1047_vm3, %v3626_v63, %v1065_v49 }
 0x1b9   :  { %5279 = vst [vmem:[#allocation44_spill] sm:$0xff] %v4236_v11  ;;  %5282 = vst [vmem:[#allocation47_spill] sm:$0xff] %v4263_v43  ;;  %v4281_v43 = vmul.f32 %v4149_v22, %v2102_v17  ;;  %v2156_v34 = vstv %s4202_s16  ;;  %v1066_v50 = vsel %vm1047_vm3, %v3632_v2, %v1064_v47  ;;  %v1083_v9 = vrot.slane %v3645_v48, 1  ;;  %s4939_s16 = sld [smem:[#allocation7 + $0x2]] }
 0x1ba   :  { %1983 = vrot.lane.b32.xlu1 %v4058_v4, %s2826_s3  ;;  %1981 = vrot.lane.b32.xlu0 %v4066_v35, %s2826_s3  ;;  %v4257_v4 = vld [vmem:[%s4974_s0 + $0x3] ss:$4 sm:$0x7]  ;;  %v1082_v15 = vrot.slane %v3655_v20, 1  ;;  %v1101_v63 = vrot.slane %v3674_v5, 1  ;;  %v1100_v33 = vrot.slane %v3676_v26, 1  ;;  %v4296_v41 = vmul.f32 %v4163_v58, %v2102_v17 }
 0x1bb   :  { %5281 = vst [vmem:[#allocation46_spill] sm:$0xff] %v4257_v4  ;;  %v4260_v54 = vmul.f32 %v4257_v4, %v2120_v53  ;;  %v4272_v39 = vmul.f32 %v4257_v4, %v2138_v14  ;;  %v1048_v53 = vsel %vm1047_vm3, %v3604_v60, %v1045_v28  ;;  %v2192_v60 = vstv %s4212_s13  ;;  %s4298_s0 = sld [smem:[#allocation3 + $0x68]]  ;;  %s4953_s13 = sld [smem:[#allocation7 + $0x3]] }
 0x1bc   :  { %v4269_v35 = vpop.permute.xlu1 %1459  ;;  %v4278_v11 = vpop.permute.xlu0 %1457  ;;  %v1053_v14 = vadd.f32 %v1049_v52, %v980_v0  ;;  %v1052_v2 = vadd.f32 %v1048_v53, %v979_v27  ;;  %v1119_v28 = vrot.slane %v3698_v36, 1  ;;  %v4305_v0 = vmul.f32 %v4244_v24, %v2156_v34 }
 0x1bd   :  { %v1070_v47 = vadd.f32 %v1066_v50, %v997_v7  ;;  %v4312_v52 = vmul.f32 %v4257_v4, %v2156_v34  ;;  %v4315_v27 = vmul.f32 %v4107_v8, %v2192_v60  ;;  %v1085_v53 = vsel %vm1047_vm3, %v3645_v48, %v1083_v9 }
 0x1be   :  { %2001 = vrot.lane.b32.xlu1 %v4091_v55, %s2826_s3  ;;  %1999 = vrot.lane.b32.xlu0 %v4097_v61, %s2826_s3  ;;  %v1118_v55 = vrot.slane %v3704_v40, 1  ;;  %v1071_v61 = vadd.f32 %v1067_v6, %v998_v1  ;;  %v1084_v58 = vsel %vm1047_vm3, %v3655_v20, %v1082_v15  ;;  %v4324_v1 = vmul.f32 %v4044_v23, %v2192_v60 }
 0x1bf   :  { %5283 = vst [vmem:[#allocation48_spill] sm:$0xff] %v4312_v52  ;;  %5284 = vst [vmem:[#allocation49_spill] sm:$0xff] %v4315_v27  ;;  %v2211_v7 = vstv %s4250_s19  ;;  %v1103_v6 = vsel %vm1047_vm3, %v3674_v5, %v1101_v63  ;;  %v1102_v34 = vsel %vm1047_vm3, %v3676_v26, %v1100_v33  ;;  %v1137_v50 = vrot.slane %v3717_v19, 1 }
 0x1c0   :  { %v4302_v49 = vpop.permute.xlu1 %1477  ;;  %v4309_v17 = vpop.permute.xlu0 %1475  ;;  %5285 = vst [vmem:[#allocation50_spill] sm:$0xff] %v4324_v1  ;;  %v2174_v48 = vstv %s4265_s20  ;;  %v1121_v20 = vsel %vm1047_vm3, %v3698_v36, %v1119_v28  ;;  %v1136_v9 = vrot.slane %v3727_v44, 1  ;;  %v1155_v15 = vrot.slane %v3746_v42, 1 }
 0x1c1   :  { %v1089_v26 = vadd.f32 %v1085_v53, %v1016_v21  ;;  %v1088_v60 = vadd.f32 %v1084_v58, %v1015_v29  ;;  %v4351_v36 = vmul.f32 %v4044_v23, %v2211_v7  ;;  %v1106_v33 = vadd.f32 %v1102_v34, %v1033_v62 }
 0x1c2   :  { %1965 = vrot.lane.b32.xlu1 %v4110_v38, %s2826_s3  ;;  %1963 = vrot.lane.b32.xlu0 %v4113_v45, %s2826_s3  ;;  %v1120_v38 = vsel %vm1047_vm3, %v3704_v40, %v1118_v55  ;;  %v4348_v45 = vmul.f32 %v4107_v8, %v2211_v7  ;;  %v1107_v40 = vadd.f32 %v1103_v6, %v1034_v32  ;;  %v2229_v53 = vstv %s4298_s0 }
 0x1c3   :  { %5287 = vst [vmem:[#allocation52_spill] sm:$0xff] %v4351_v36  ;;  %v4356_v28 = vmul.f32 %v4244_v24, %v2174_v48  ;;  %v4359_v21 = vmul.f32 %v4257_v4, %v2174_v48  ;;  %v1125_v58 = vadd.f32 %v1121_v20, %v1053_v14  ;;  %v1124_v29 = vadd.f32 %v1120_v38, %v1052_v2  ;;  %v5291_v2 = vld [vmem:[#allocation10_spill] sm:$0xff]  ;;  %v5293_v48 = vld [vmem:[#allocation12_spill] sm:$0xff] }
 0x1c4   :  { %v4341_v5 = vpop.permute.xlu1 %1495  ;;  %v4345_v63 = vpop.permute.xlu0 %1493  ;;  %5286 = vst [vmem:[#allocation51_spill] sm:$0xff] %v4348_v45  ;;  %v1139_v55 = vsel %vm1047_vm3, %v3717_v19, %v1137_v50  ;;  %v1138_v32 = vsel %vm1047_vm3, %v3727_v44, %v1136_v9  ;;  %v1154_v62 = vrot.slane %v3748_v37, 1  ;;  %v2265_v6 = vstv %s4307_s24  ;;  %v5292_v19 = vld [vmem:[#allocation11_spill] sm:$0xff]  ;;  %v5295_v44 = vld [vmem:[#allocation13_spill] sm:$0xff]  ;;  %v5296_v9 = vld [vmem:[#allocation14_spill] sm:$0xff] }
 0x1c5   :  { %5288 = vst [vmem:[#allocation53_spill] sm:$0xff] %v4356_v28  ;;  %5289 = vst [vmem:[#allocation54_spill] sm:$0xff] %v4359_v21  ;;  %v1173_v14 = vrot.slane %v3770_v18, 1  ;;  %v1172_v34 = vrot.slane %v5291_v2, 1  ;;  %v1191_v50 = vrot.slane %v5292_v19, 1  ;;  %v1209_v38 = vrot.slane %v5295_v44, 1 }
 0x1c6   :  { %2019 = vrot.lane.b32.xlu1 %v4131_v16, %s2826_s3  ;;  %2017 = vrot.lane.b32.xlu0 %v4138_v46, %s2826_s3  ;;  %v1157_v16 = vsel %vm1047_vm3, %v3746_v42, %v1155_v15  ;;  %v1190_v46 = vrot.slane %v5293_v48, 1  ;;  %v1208_v42 = vrot.slane %v5296_v9, 1  ;;  %v5297_v15 = vld [vmem:[#allocation15_spill] sm:$0xff]  ;;  %v4386_v24 = vmul.f32 %v4107_v8, %v2229_v53  ;;  %v5299_v28 = vld [vmem:[#allocation72_spill] sm:$0xff] }
 0x1c7   :  { %v1227_v4 = vrot.slane %v5297_v15, 1  ;;  %v1143_v22 = vadd.f32 %v1139_v55, %v1071_v61  ;;  %v1142_v21 = vadd.f32 %v1138_v32, %v1070_v47  ;;  %v4391_v36 = vmul.f32 %v4044_v23, %v2229_v53  ;;  %v5312_v23 = vld [vmem:[#allocation69_spill] sm:$0xff] }
 0x1c8   :  { %v4371_v7 = vpop.permute.xlu1 %1513  ;;  %v4378_v20 = vpop.permute.xlu0 %1511  ;;  %5298 = vst [vmem:[#allocation57_spill] sm:$0xff] %v4386_v24  ;;  %v4394_v45 = vmul.f32 %v4055_v31, %v2265_v6  ;;  %v1161_v1 = vadd.f32 %v1157_v16, %v1089_v26  ;;  %v1156_v27 = vsel %vm1047_vm3, %v3748_v37, %v1154_v62  ;;  %v1175_v47 = vsel %vm1047_vm3, %v3770_v18, %v1173_v14  ;;  %v5303_v16 = vld [vmem:[#allocation16_spill] sm:$0xff]  ;;  %v5305_v14 = vld [vmem:[#allocation17_spill] sm:$0xff] }
 0x1c9   :  { %5290 = vst [vmem:[#allocation55_spill] sm:$0xff] %v4371_v7  ;;  %5294 = vst [vmem:[#allocation56_spill] sm:$0xff] %v4378_v20  ;;  %v1193_v55 = vsel %vm1047_vm3, %v5292_v19, %v1191_v50  ;;  %v1192_v26 = vsel %vm1047_vm3, %v5293_v48, %v1190_v46  ;;  %v1211_v37 = vsel %vm1047_vm3, %v5295_v44, %v1209_v38  ;;  %v1226_v62 = vrot.slane %v5303_v16, 1  ;;  %v5307_v50 = vld [vmem:[#allocation19_spill] sm:$0xff]  ;;  %v5308_v46 = vld [vmem:[#allocation20_spill] sm:$0xff] }
 0x1ca   :  { %2055 = vrot.lane.b32.xlu1 %v4152_v57, %s2826_s3  ;;  %2053 = vrot.lane.b32.xlu0 %v5299_v28, %s2826_s3  ;;  %5300 = vst [vmem:[#allocation58_spill] sm:$0xff] %v4391_v36  ;;  %5301 = vst [vmem:[#allocation59_spill] sm:$0xff] %v4394_v45  ;;  %v4401_v57 = vmul.f32 %v4063_v51, %v2265_v6  ;;  %v1174_v28 = vsel %vm1047_vm3, %v5291_v2, %v1172_v34  ;;  %v5304_v6 = vld [vmem:[#allocation42_spill] sm:$0xff]  ;;  %v1245_v2 = vrot.slane %v5305_v14, 1  ;;  %v5309_v38 = vld [vmem:[#allocation43_spill] sm:$0xff]  ;;  %vm2572_vm1 = vcmask 1043458  }
 0x1cb   :  { %v1210_v32 = vsel %vm1047_vm3, %v5296_v9, %v1208_v42  ;;  %v1229_v18 = vsel %vm1047_vm3, %v5297_v15, %v1227_v4  ;;  %v5306_v34 = vld [vmem:[#allocation18_spill] sm:$0xff]  ;;  %v1263_v48 = vrot.slane %v5307_v50, 1  ;;  %v1262_v44 = vrot.slane %v5308_v46, 1  ;;  %v5310_v42 = vld [vmem:[#allocation21_spill] sm:$0xff]  ;;  %vm2573_vm2 = vmor %vm2572_vm1, %vm2571_vm0 }
 0x1cc   :  { %v4398_v20 = vpop.permute.xlu1 %1531  ;;  %5302 = vst [vmem:[#allocation60_spill] sm:$0xff] %v4401_v57  ;;  %v4412_v53 = vpop.permute.xlu0 %1529  ;;  %v1244_v19 = vrot.slane %v5306_v34, 1  ;;  %v1160_v9 = vadd.f32 %v1156_v27, %v1088_v60  ;;  %v1281_v4 = vrot.slane %v5310_v42, 1  ;;  %v5311_v15 = vld [vmem:[#allocation22_spill] sm:$0xff]  ;;  %v1299_v8 = vrot.slane %v5312_v23, 1 }
 0x1cd   :  { %v1280_v61 = vrot.slane %v5311_v15, 1  ;;  %v1178_v57 = vadd.f32 %v1174_v28, %v1106_v33  ;;  %v1197_v31 = vadd.f32 %v1193_v55, %v1125_v58  ;;  %v1196_v45 = vadd.f32 %v1192_v26, %v1124_v29  ;;  %v5313_v58 = vld [vmem:[#allocation23_spill] sm:$0xff]  ;;  %v5314_v28 = vld [vmem:[#allocation24_spill] sm:$0xff]  ;;  %v5315_v26 = vld [vmem:[#allocation25_spill] sm:$0xff] }
 0x1ce   :  { %2073 = vrot.lane.b32.xlu1 %v5304_v6, %s2826_s3  ;;  %2071 = vrot.lane.b32.xlu0 %v5309_v38, %s2826_s3  ;;  %v1179_v6 = vadd.f32 %v1175_v47, %v1107_v40  ;;  %v1215_v24 = vadd.f32 %v1211_v37, %v1143_v22  ;;  %v1214_v52 = vadd.f32 %v1210_v32, %v1142_v21  ;;  %v1298_v29 = vrot.slane %v5313_v58, 1  ;;  %v5316_v32 = vld [vmem:[#allocation26_spill] sm:$0xff] }
 0x1cf   :  { %v1233_v7 = vadd.f32 %v1229_v18, %v1161_v1  ;;  %v1228_v27 = vsel %vm1047_vm3, %v5303_v16, %v1226_v62  ;;  %v1247_v60 = vsel %vm1047_vm3, %v5305_v14, %v1245_v2  ;;  %v1246_v40 = vsel %vm1047_vm3, %v5306_v34, %v1244_v19  ;;  %v5318_v2 = vld [vmem:[#allocation28_spill] sm:$0xff]  ;;  %v5319_v34 = vld [vmem:[#allocation29_spill] sm:$0xff] }
 0x1d0   :  { %v4432_v51 = vpop.permute.xlu1 %1549  ;;  %v4434_v36 = vpop.permute.xlu0 %1547  ;;  %v1265_v33 = vsel %vm1047_vm3, %v5307_v50, %v1263_v48  ;;  %v1264_v22 = vsel %vm1047_vm3, %v5308_v46, %v1262_v44  ;;  %v1283_v1 = vsel %vm1047_vm3, %v5310_v42, %v1281_v4  ;;  %v1301_v21 = vsel %vm1047_vm3, %v5312_v23, %v1299_v8  ;;  %v5320_v23 = vld [vmem:[#allocation33_spill] sm:$0xff] }
 0x1d1   :  { %v1317_v55 = vrot.slane %v5314_v28, 1  ;;  %v1316_v37 = vrot.slane %v5315_v26, 1  ;;  %v1335_v18 = vrot.slane %v5316_v32, 1  ;;  %v1232_v14 = vadd.f32 %v1228_v27, %v1160_v9 }
 0x1d2   :  { %2037 = vrot.lane.b32.xlu1 %v4200_v10, %s2826_s3  ;;  %2035 = vrot.lane.b32.xlu0 %v4207_v12, %s2826_s3  ;;  %v1282_v10 = vsel %vm1047_vm3, %v5311_v15, %v1280_v61  ;;  %v5317_v12 = vld [vmem:[#allocation27_spill] sm:$0xff]  ;;  %v1354_v61 = vrot.slane %v5318_v2, 1  ;;  %v1353_v19 = vrot.slane %v5319_v34, 1  ;;  %v1372_v8 = vrot.slane %v5320_v23, 1 }
 0x1d3   :  { %v1334_v16 = vrot.slane %v5317_v12, 1  ;;  %v1251_v50 = vadd.f32 %v1247_v60, %v1179_v6  ;;  %v1250_v48 = vadd.f32 %v1246_v40, %v1178_v57  ;;  %v1269_v46 = vadd.f32 %v1265_v33, %v1197_v31  ;;  %v5321_v57 = vld [vmem:[#allocation34_spill] sm:$0xff]  ;;  %v5322_v60 = vld [vmem:[#allocation35_spill] sm:$0xff]  ;;  %v5323_v33 = vld [vmem:[#allocation37_spill] sm:$0xff] }
 0x1d4   :  { %v4457_v47 = vpop.permute.xlu1 %1567  ;;  %v4463_v62 = vpop.permute.xlu0 %1565  ;;  %v1268_v44 = vadd.f32 %v1264_v22, %v1196_v45  ;;  %v1287_v38 = vadd.f32 %v1283_v1, %v1215_v24  ;;  %v1286_v42 = vadd.f32 %v1282_v10, %v1214_v52  ;;  %v1305_v4 = vadd.f32 %v1301_v21, %v1233_v7  ;;  %v5324_v1 = vld [vmem:[#allocation38_spill] sm:$0xff]  ;;  %v5325_v21 = vld [vmem:[#allocation40_spill] sm:$0xff] }
 0x1d5   :  { %v1300_v9 = vsel %vm1047_vm3, %v5313_v58, %v1298_v29  ;;  %v1319_v27 = vsel %vm1047_vm3, %v5314_v28, %v1317_v55  ;;  %v1338_v31 = vsel %vm1336_vm4, %v5316_v32, %v1335_v18  ;;  %v1356_v52 = vsel %vm1336_vm4, %v5318_v2, %v1354_v61 }
 0x1d6   :  { %2091 = vrot.lane.b32.xlu1 %v4210_v13, %s2826_s3  ;;  %2089 = vrot.lane.b32.xlu0 %v4219_v59, %s2826_s3  ;;  %v1318_v13 = vsel %vm1047_vm3, %v5315_v26, %v1316_v37  ;;  %v1337_v59 = vsel %vm1336_vm4, %v5317_v12, %v1334_v16  ;;  %v1355_v45 = vsel %vm1336_vm4, %v5319_v34, %v1353_v19  ;;  %v1371_v6 = vrot.slane %v5321_v57, 1 }
 0x1d7   :  { %v1374_v7 = vsel %vm1336_vm4, %v5320_v23, %v1372_v8  ;;  %v1390_v40 = vrot.slane %v5322_v60, 1  ;;  %v1389_v22 = vrot.slane %v5323_v33, 1  ;;  %v1408_v10 = vrot.slane %v5324_v1, 1 }
 0x1d8   :  { %v4474_v15 = vpop.permute.xlu1 %1585  ;;  %v4484_v24 = vpop.permute.xlu0 %1583  ;;  %v1407_v58 = vrot.slane %v5325_v21, 1  ;;  %v1304_v29 = vadd.f32 %v1300_v9, %v1232_v14  ;;  %v1323_v28 = vadd.f32 %v1319_v27, %v1251_v50  ;;  %v1426_v55 = vrot.slane %v4193_v3, 1  ;;  %v5326_v14 = vld [vmem:[#allocation47_spill] sm:$0xff] }
 0x1d9   :  { %v1425_v26 = vrot.slane %v4197_v25, 1  ;;  %v1342_v32 = vadd.f32 %v1338_v31, %v1269_v46  ;;  %v1341_v18 = vadd.f32 %v1337_v59, %v1268_v44  ;;  %v1444_v12 = vrot.slane %v4227_v56, 1  ;;  %v5327_v44 = vld [vmem:[#allocation44_spill] sm:$0xff] }
 0x1da   :  { %2127 = vrot.lane.b32.xlu1 %v4247_v30, %s2826_s3  ;;  %2125 = vrot.lane.b32.xlu0 %v4260_v54, %s2826_s3  ;;  %v1322_v30 = vadd.f32 %v1318_v13, %v1250_v48  ;;  %v1360_v2 = vadd.f32 %v1356_v52, %v1287_v38  ;;  %v1359_v61 = vadd.f32 %v1355_v45, %v1286_v42  ;;  %v1443_v38 = vrot.slane %v5327_v44, 1 }
 0x1db   :  { %v1378_v34 = vadd.f32 %v1374_v7, %v1305_v4  ;;  %v1373_v54 = vsel %vm1336_vm4, %v5321_v57, %v1371_v6  ;;  %v1392_v19 = vsel %vm1336_vm4, %v5322_v60, %v1390_v40  ;;  %v1391_v23 = vsel %vm1336_vm4, %v5323_v33, %v1389_v22 }
 0x1dc   :  { %v4503_v37 = vpop.permute.xlu1 %1603  ;;  %v4506_v16 = vpop.permute.xlu0 %1601  ;;  %v1410_v8 = vsel %vm1336_vm4, %v5324_v1, %v1408_v10  ;;  %v1409_v50 = vsel %vm1336_vm4, %v5325_v21, %v1407_v58  ;;  %v1428_v48 = vsel %vm1336_vm4, %v4193_v3, %v1426_v55  ;;  %v1427_v46 = vsel %vm1336_vm4, %v4197_v25, %v1425_v26 }
 0x1dd   :  { %v1462_v42 = vrot.slane %v4269_v35, 1  ;;  %v1446_v9 = vsel %vm1336_vm4, %v4227_v56, %v1444_v12  ;;  %v1461_v27 = vrot.slane %v4278_v11, 1  ;;  %v1480_v13 = vrot.slane %v4302_v49, 1 }
 0x1de   :  { %2145 = vrot.lane.b32.xlu1 %v5326_v14, %s2826_s3  ;;  %2143 = vrot.lane.b32.xlu0 %v4272_v39, %s2826_s3  ;;  %v1479_v39 = vrot.slane %v4309_v17, 1  ;;  %v1377_v3 = vadd.f32 %v1373_v54, %v1304_v29  ;;  %v1396_v59 = vadd.f32 %v1392_v19, %v1323_v28  ;;  %v1395_v25 = vadd.f32 %v1391_v23, %v1322_v30  ;;  %v5329_v30 = vld [vmem:[#allocation48_spill] sm:$0xff] }
 0x1df   :  { %v1498_v52 = vrot.slane %v4341_v5, 1  ;;  %v1414_v45 = vadd.f32 %v1410_v8, %v1342_v32  ;;  %v1413_v7 = vadd.f32 %v1409_v50, %v1341_v18  ;;  %v1432_v57 = vadd.f32 %v1428_v48, %v1360_v2  ;;  %v5330_v18 = vld [vmem:[#allocation56_spill] sm:$0xff]  ;;  %v5331_v48 = vld [vmem:[#allocation49_spill] sm:$0xff] }
 0x1e0   :  { %v4528_v4 = vpop.permute.xlu1 %1621  ;;  %v4535_v31 = vpop.permute.xlu0 %1619  ;;  %v1431_v56 = vadd.f32 %v1427_v46, %v1359_v61  ;;  %v4542_v6 = vadd.f32 %v1446_v9, %v1378_v34  ;;  %v1445_v60 = vsel %vm1336_vm4, %v5327_v44, %v1443_v38  ;;  %v1464_v40 = vsel %vm1336_vm4, %v4269_v35, %v1462_v42 }
 0x1e1   :  { %v1497_v33 = vrot.slane %v4345_v63, 1  ;;  %v1482_v1 = vsel %vm1336_vm4, %v4302_v49, %v1480_v13  ;;  %v1534_v10 = vrot.slane %v4398_v20, 1  ;;  %v1500_v35 = vsel %vm1336_vm4, %v4341_v5, %v1498_v52 }
 0x1e2   :  { %2109 = vrot.lane.b32.xlu1 %v4281_v43, %s2826_s3  ;;  %2107 = vrot.lane.b32.xlu0 %v4296_v41, %s2826_s3  ;;  %v1463_v43 = vsel %vm1336_vm4, %v4278_v11, %v1461_v27  ;;  %v1481_v41 = vsel %vm1336_vm4, %v4309_v17, %v1479_v39  ;;  %v1533_v58 = vrot.slane %v4412_v53, 1  ;;  %v1552_v29 = vrot.slane %v4432_v51, 1  ;;  %v5328_v17 = vld [vmem:[#allocation55_spill] sm:$0xff] }
 0x1e3   :  { %v1551_v28 = vrot.slane %v4434_v36, 1  ;;  %v4567_v11 = vadd.f32 %v1445_v60, %v1377_v3  ;;  %v1468_v49 = vadd.f32 %v1464_v40, %v1396_v59  ;;  %v1516_v55 = vrot.slane %v5328_v17, 1 }
 0x1e4   :  { %v4549_v22 = vpop.permute.xlu1 %1640  ;;  %v4558_v21 = vpop.permute.xlu0 %1638  ;;  %v1606_v26 = vrot.slane %v4503_v37, 1  ;;  %v1467_v5 = vadd.f32 %v1463_v43, %v1395_v25  ;;  %v1499_v32 = vsel %vm1336_vm4, %v4345_v63, %v1497_v33  ;;  %v1515_v12 = vrot.slane %v5330_v18, 1  ;;  %v5334_v33 = vld [vmem:[#allocation52_spill] sm:$0xff] }
 0x1e5   :  { %v1605_v2 = vrot.slane %v4506_v16, 1  ;;  %v1485_v34 = vadd.f32 %v1481_v41, %v1413_v7  ;;  %v1504_v54 = vadd.f32 %v1500_v35, %v1432_v57  ;;  %v1536_v14 = vsel %vm1336_vm4, %v4398_v20, %v1534_v10  ;;  %v5333_v57 = vld [vmem:[#allocation51_spill] sm:$0xff] }
 0x1e6   :  { %2163 = vrot.lane.b32.xlu1 %v4305_v0, %s2826_s3  ;;  %2161 = vrot.lane.b32.xlu0 %v5329_v30, %s2826_s3  ;;  %v1486_v0 = vadd.f32 %v1482_v1, %v1414_v45  ;;  %v1535_v23 = vsel %vm1336_vm4, %v4412_v53, %v1533_v58  ;;  %v1554_v63 = vsel %vm1336_vm4, %v4432_v51, %v1552_v29  ;;  %v1570_v50 = vrot.slane %v4457_v47, 1  ;;  %v5332_v51 = vld [vmem:[#allocation50_spill] sm:$0xff] }
 0x1e7   :  { %v1553_v8 = vsel %vm1336_vm4, %v4434_v36, %v1551_v28  ;;  %v1503_v46 = vadd.f32 %v1499_v32, %v1431_v56  ;;  %v1518_v20 = vsel %vm1336_vm4, %v5328_v17, %v1516_v55  ;;  %v1608_v44 = vsel %vm1336_vm4, %v4503_v37, %v1606_v26  ;;  %v5335_v26 = vld [vmem:[#allocation53_spill] sm:$0xff] }
 0x1e8   :  { %v4577_v61 = vpop.permute.xlu1 %1658  ;;  %v4581_v19 = vpop.permute.xlu0 %1656  ;;  %v1624_v53 = vrot.slane %v4528_v4, 1  ;;  %v1517_v36 = vsel %vm1336_vm4, %v5330_v18, %v1515_v12  ;;  %v1540_v38 = vadd.f32 %v1536_v14, %v1468_v49  ;;  %v1607_v42 = vsel %vm1336_vm4, %v4506_v16, %v1605_v2  ;;  %v5336_v12 = vld [vmem:[#allocation54_spill] sm:$0xff] }
 0x1e9   :  { %v1623_v9 = vrot.slane %v4535_v31, 1  ;;  %v1539_v13 = vadd.f32 %v1535_v23, %v1467_v5  ;;  %v1558_v39 = vadd.f32 %v1554_v63, %v1486_v0  ;;  %v1557_v3 = vadd.f32 %v1553_v8, %v1485_v34 }
 0x1ea   :  { %2199 = vrot.lane.b32.xlu1 %v5331_v48, %s2827_s21  ;;  %2197 = vrot.lane.b32.xlu0 %v5332_v51, %s2827_s21  ;;  %v1572_v25 = vsel %vm1336_vm4, %v4457_v47, %v1570_v50  ;;  %v1569_v52 = vrot.slane %v4463_v62, 1  ;;  %v1612_v45 = vadd.f32 %v1608_v44, %v1540_v38  ;;  %v1627_v16 = vsel %vm1625_vm5, %v4528_v4, %v1624_v53  ;;  %v5337_v53 = vld [vmem:[#allocation57_spill] sm:$0xff] }
 0x1eb   :  { %v1611_v56 = vadd.f32 %v1607_v42, %v1539_v13  ;;  %v1643_v60 = vrot.slane %v4549_v22, 1  ;;  %v1626_v47 = vsel %vm1625_vm5, %v4535_v31, %v1623_v9  ;;  %v1642_v43 = vrot.slane %v4558_v21, 1  ;;  %v5338_v42 = vld [vmem:[#allocation58_spill] sm:$0xff] }
 0x1ec   :  { %v1677_v27 = vpop.permute.xlu1 %1676  ;;  %v1675_v37 = vpop.permute.xlu0 %1674  ;;  %v1576_v35 = vadd.f32 %v1572_v25, %v1504_v54  ;;  %v1588_v4 = vrot.slane %v4474_v15, 1  ;;  %v1571_v49 = vsel %vm1336_vm4, %v4463_v62, %v1569_v52  ;;  %v1587_v17 = vrot.slane %v4484_v24, 1  ;;  %v5341_v25 = vld [vmem:[#allocation31_spill] sm:$0xff] }
 0x1ed   :  { %v1679_v59 = vrot.slane %v1677_v27, 1  ;;  %v1678_v7 = vrot.slane %v1675_v37, 1  ;;  %v1631_v31 = vadd.f32 %v1627_v16, %v1558_v39  ;;  %v1630_v30 = vadd.f32 %v1626_v47, %v1557_v3 }
 0x1ee   :  { %2218 = vrot.lane.b32.xlu1 %v5333_v57, %s2827_s21  ;;  %2216 = vrot.lane.b32.xlu0 %v5334_v33, %s2827_s21  ;;  %v1645_v5 = vsel %vm1625_vm5, %v4549_v22, %v1643_v60  ;;  %v1661_v32 = vrot.slane %v4577_v61, 1  ;;  %v1644_v62 = vsel %vm1625_vm5, %v4558_v21, %v1642_v43  ;;  %v1660_v2 = vrot.slane %v4581_v19, 1 }
 0x1ef   :  { %v1681_v40 = vsel %vm1625_vm5, %v1677_v27, %v1679_v59  ;;  %v1680_v41 = vsel %vm1625_vm5, %v1675_v37, %v1678_v7  ;;  %v1575_v22 = vadd.f32 %v1571_v49, %v1503_v46  ;;  %v1590_v14 = vsel %vm1336_vm4, %v4474_v15, %v1588_v4  ;;  %v5339_v59 = vld [vmem:[#allocation59_spill] sm:$0xff]  ;;  %v5342_v7 = vld [vmem:[#allocation60_spill] sm:$0xff]  ;;  %v5346_v49 = vld [vmem:[#allocation30_spill] sm:$0xff] }
 0x1f0   :  { %v4618_v1 = vadd.f32 %v1681_v40, %v1612_v45  ;;  %v1695_v10 = vpop.permute.xlu1 %1694  ;;  %v4622_v58 = vadd.f32 %v1680_v41, %v1611_v56  ;;  %v1693_v28 = vpop.permute.xlu0 %1692  ;;  %v1522_v50 = vadd.f32 %v1518_v20, %v4542_v6  ;;  %v1589_v21 = vsel %vm1336_vm4, %v4484_v24, %v1587_v17  ;;  %v5344_v56 = vld [vmem:[#allocation32_spill] sm:$0xff] }
 0x1f1   :  { %v1697_v29 = vrot.slane %v1695_v10, 1  ;;  %v1696_v55 = vrot.slane %v1693_v28, 1  ;;  %v1649_v48 = vadd.f32 %v1645_v5, %v1576_v35  ;;  %v1521_v51 = vadd.f32 %v1517_v36, %v4567_v11  ;;  %v5345_v4 = vld [vmem:[#allocation36_spill] sm:$0xff] }
 0x1f2   :  { %2181 = vrot.lane.b32.xlu1 %v5335_v26, %s2826_s3  ;;  %2179 = vrot.lane.b32.xlu0 %v5336_v12, %s2826_s3  ;;  %v1648_v46 = vadd.f32 %v1644_v62, %v1575_v22  ;;  %v1663_v15 = vsel %vm1625_vm5, %v4577_v61, %v1661_v32  ;;  %v1594_v24 = vadd.f32 %v1590_v14, %v1522_v50  ;;  %v5340_v37 = vstv %s4343_s25  ;;  %s4742_s3 = sld [smem:[#allocation3 + $0x6b]] }
 0x1f3   :  { %v1699_v18 = vsel %vm1625_vm5, %v1695_v10, %v1697_v29  ;;  %v1698_v34 = vsel %vm1625_vm5, %v1693_v28, %v1696_v55  ;;  %v1662_v6 = vsel %vm1625_vm5, %v4581_v19, %v1660_v2  ;;  %v1593_v9 = vadd.f32 %v1589_v21, %v1521_v51  ;;  %v5347_v21 = vld [vmem:[#allocation39_spill] sm:$0xff] }
 0x1f4   :  { %v4640_v0 = vadd.f32 %v1699_v18, %v1631_v31  ;;  %v1713_v54 = vpop.permute.xlu1 %1712  ;;  %v4645_v23 = vadd.f32 %v1698_v34, %v1630_v30  ;;  %v1711_v8 = vpop.permute.xlu0 %1710  ;;  %v1667_v39 = vadd.f32 %v1663_v15, %v1594_v24  ;;  %v2285_v52 = vmul.f32 %v5341_v25, %v5340_v37 }
 0x1f5   :  { %v1715_v63 = vrot.slane %v1713_v54, 1  ;;  %v1714_v44 = vrot.slane %v1711_v8, 1  ;;  %v1666_v45 = vadd.f32 %v1662_v6, %v1593_v9  ;;  %v5343_v57 = vmov %v5340_v37 }
 0x1f6   :  { %2236 = vrot.lane.b32.xlu1 %v5337_v53, %s2827_s21  ;;  %2234 = vrot.lane.b32.xlu0 %v5338_v42, %s2827_s21  ;;  %v2284_v16 = vmul.f32 %v5344_v56, %v5343_v57  ;;  %v2247_v60 = vstv %s4635_s26  ;;  %v2301_v31 = vstv %s4658_s2  ;;  %v5348_v53 = vld [vmem:[#allocation41_spill] sm:$0xff]  ;;  %vm2574_vm3 = vcmask 259076  }
 0x1f7   :  { %v1717_v38 = vsel %vm1625_vm5, %v1713_v54, %v1715_v63  ;;  %v1716_v11 = vsel %vm1625_vm5, %v1711_v8, %v1714_v44  ;;  %v2249_v29 = vmul.f32 %v5345_v4, %v2247_v60  ;;  %v2248_v17 = vmul.f32 %v5346_v49, %v2247_v60  ;;  %vm2575_vm4 = vmor %vm2574_vm3, %vm2573_vm2 }
 0x1f8   :  { %v1721_v20 = vadd.f32 %v1717_v38, %v1649_v48  ;;  %v1731_v36 = vpop.permute.xlu1 %1730  ;;  %v1720_v61 = vadd.f32 %v1716_v11, %v1648_v46  ;;  %v1729_v13 = vpop.permute.xlu0 %1728  ;;  %v2303_v62 = vmul.f32 %v5341_v25, %v2301_v31  ;;  %v2302_v34 = vmul.f32 %v5344_v56, %v2301_v31 }
 0x1f9   :  { %v1733_v27 = vrot.slane %v1731_v36, 1  ;;  %v1732_v3 = vrot.slane %v1729_v13, 1 }
 0x1fa   :  { %2272 = vrot.lane.b32.xlu1 %v5339_v59, %s2827_s21  ;;  %2270 = vrot.lane.b32.xlu0 %v5342_v7, %s2827_s21  ;;  %v2373_v7 = vstv %s4706_s29 }
 0x1fb   :  { %v1735_v19 = vsel %vm1625_vm5, %v1731_v36, %v1733_v27  ;;  %v1734_v33 = vsel %vm1625_vm5, %v1729_v13, %v1732_v3  ;;  %v2319_v27 = vstv %s4695_s28 }
 0x1fc   :  { %v1739_v40 = vadd.f32 %v1735_v19, %v1667_v39  ;;  %v1749_v47 = vpop.permute.xlu1 %1748  ;;  %v1738_v43 = vadd.f32 %v1734_v33, %v1666_v45  ;;  %v1747_v10 = vpop.permute.xlu0 %1746  ;;  %v2320_v19 = vmul.f32 %v5344_v56, %v2319_v27  ;;  %v2374_v56 = vmul.f32 %v5348_v53, %v2373_v7 }
 0x1fd   :  { %v1751_v41 = vrot.slane %v1749_v47, 1  ;;  %v1750_v35 = vrot.slane %v1747_v10, 1 }
 0x1fe   :  { %2290 = vrot.lane.b32.xlu1 %v2285_v52, %s2827_s21  ;;  %2288 = vrot.lane.b32.xlu0 %v2284_v16, %s2827_s21  ;;  %v2321_v52 = vmul.f32 %v5341_v25, %v2319_v27  ;;  %v2375_v25 = vmul.f32 %v5347_v21, %v2373_v7 }
 0x1ff   :  { %v1753_v28 = vsel %vm1625_vm5, %v1749_v47, %v1751_v41  ;;  %v1752_v26 = vsel %vm1625_vm5, %v1747_v10, %v1750_v35  ;;  %v2409_v10 = vstv %s4715_s30 }
 0x200   :  { %v1757_v55 = vadd.f32 %v1753_v28, %v4618_v1  ;;  %v1767_v30 = vpop.permute.xlu1 %1766  ;;  %v1756_v5 = vadd.f32 %v1752_v26, %v4622_v58  ;;  %v1765_v18 = vpop.permute.xlu0 %1764  ;;  %v2337_v1 = vstv %s4675_s1 }
 0x201   :  { %v1769_v32 = vrot.slane %v1767_v30, 1  ;;  %v1768_v12 = vrot.slane %v1765_v18, 1  ;;  %v2339_v48 = vmul.f32 %v5347_v21, %v2337_v1  ;;  %v2338_v51 = vmul.f32 %v5348_v53, %v2337_v1 }
 0x202   :  { %2254 = vrot.lane.b32.xlu1 %v2249_v29, %s2827_s21  ;;  %2252 = vrot.lane.b32.xlu0 %v2248_v17, %s2827_s21 }
 0x203   :  { %v1771_v2 = vsel %vm1625_vm5, %v1767_v30, %v1769_v32  ;;  %v1770_v58 = vsel %vm1625_vm5, %v1765_v18, %v1768_v12  ;;  %v2427_v18 = vstv %s4724_s6 }
 0x204   :  { %v1775_v54 = vadd.f32 %v1771_v2, %v4640_v0  ;;  %v1785_v22 = vpop.permute.xlu1 %1784  ;;  %v1774_v14 = vadd.f32 %v1770_v58, %v4645_v23  ;;  %v1783_v8 = vpop.permute.xlu0 %1782  ;;  %v2355_v0 = vstv %s4684_s27 }
 0x205   :  { %v1787_v63 = vrot.slane %v1785_v22, 1  ;;  %v1786_v50 = vrot.slane %v1783_v8, 1  ;;  %v2357_v11 = vmul.f32 %v5347_v21, %v2355_v0  ;;  %v2356_v9 = vmul.f32 %v5348_v53, %v2355_v0 }
 0x206   :  { %2308 = vrot.lane.b32.xlu1 %v2303_v62, %s2827_s21  ;;  %2306 = vrot.lane.b32.xlu0 %v2302_v34, %s2827_s21 }
 0x207   :  { %v1789_v44 = vsel %vm1625_vm5, %v1785_v22, %v1787_v63  ;;  %v1788_v23 = vsel %vm1625_vm5, %v1783_v8, %v1786_v50  ;;  %v2391_v8 = vstv %s4733_s7 }
 0x208   :  { %v1793_v46 = vadd.f32 %v1789_v44, %v1721_v20  ;;  %v1803_v15 = vpop.permute.xlu1 %1802  ;;  %v1792_v38 = vadd.f32 %v1788_v23, %v1720_v61  ;;  %v1801_v24 = vpop.permute.xlu0 %1800 }
 0x209   :  { %v1805_v42 = vrot.slane %v1803_v15, 1  ;;  %v1804_v6 = vrot.slane %v1801_v24, 1 }
 0x20a   :  { %2344 = vrot.lane.b32.xlu1 %v2339_v48, %s2827_s21  ;;  %2342 = vrot.lane.b32.xlu0 %v2338_v51, %s2827_s21 }
 0x20b   :  { %v1807_v36 = vsel %vm1625_vm5, %v1803_v15, %v1805_v42  ;;  %v1806_v61 = vsel %vm1625_vm5, %v1801_v24, %v1804_v6  ;;  %v2393_v15 = vmul.f32 %v5347_v21, %v2391_v8  ;;  %v2392_v42 = vmul.f32 %v5348_v53, %v2391_v8 }
 0x20c   :  { %v1811_v20 = vadd.f32 %v1807_v36, %v1739_v40  ;;  %v1821_v13 = vpop.permute.xlu1 %1820  ;;  %v1810_v39 = vadd.f32 %v1806_v61, %v1738_v43  ;;  %v1819_v59 = vpop.permute.xlu0 %1818  ;;  %v2445_v24 = vstv %s4742_s3 }
 0x20d   :  { %v1823_v3 = vrot.slane %v1821_v13, 1  ;;  %v1822_v37 = vrot.slane %v1819_v59, 1 }
 0x20e   :  { %2362 = vrot.lane.b32.xlu1 %v2357_v11, %s2827_s21  ;;  %2360 = vrot.lane.b32.xlu0 %v2356_v9, %s2827_s21 }
 0x20f   :  { %v1825_v45 = vsel %vm1625_vm5, %v1821_v13, %v1823_v3  ;;  %v1824_v16 = vsel %vm1625_vm5, %v1819_v59, %v1822_v37 }
 0x210   :  { %v1829_v57 = vadd.f32 %v1825_v45, %v1757_v55  ;;  %v1839_v60 = vpop.permute.xlu1 %1838  ;;  %v1828_v40 = vadd.f32 %v1824_v16, %v1756_v5  ;;  %v1837_v47 = vpop.permute.xlu0 %1836  ;;  %v5349_v55 = vld [vmem:[#allocation45_spill] sm:$0xff]  ;;  %v5350_v5 = vld [vmem:[#allocation46_spill] sm:$0xff] }
 0x211   :  { %v1841_v33 = vrot.slane %v1839_v60, 1  ;;  %v1840_v43 = vrot.slane %v1837_v47, 1  ;;  %v2411_v26 = vmul.f32 %v5349_v55, %v2409_v10  ;;  %v2410_v32 = vmul.f32 %v5350_v5, %v2409_v10 }
 0x212   :  { %2326 = vrot.lane.b32.xlu1 %v2321_v52, %s2827_s21  ;;  %2324 = vrot.lane.b32.xlu0 %v2320_v19, %s2827_s21  ;;  %v2429_v22 = vmul.f32 %v5349_v55, %v2427_v18  ;;  %v2428_v63 = vmul.f32 %v5350_v5, %v2427_v18  ;;  %v2447_v21 = vmul.f32 %v5349_v55, %v2445_v24 }
 0x213   :  { %v1843_v41 = vsel %vm1625_vm5, %v1839_v60, %v1841_v33  ;;  %v1842_v4 = vsel %vm1625_vm5, %v1837_v47, %v1840_v43  ;;  %v2446_v53 = vmul.f32 %v5350_v5, %v2445_v24 }
 0x214   :  { %v1847_v35 = vadd.f32 %v1843_v41, %v1775_v54  ;;  %v1857_v29 = vpop.permute.xlu1 %1856  ;;  %v1846_v28 = vadd.f32 %v1842_v4, %v1774_v14  ;;  %v1855_v17 = vpop.permute.xlu0 %1854 }
 0x215   :  { %v1859_v49 = vrot.slane %v1857_v29, 1  ;;  %v1858_v31 = vrot.slane %v1855_v17, 1 }
 0x216   :  { %2380 = vrot.lane.b32.xlu1 %v2375_v25, %s2827_s21  ;;  %2378 = vrot.lane.b32.xlu0 %v2374_v56, %s2827_s21 }
 0x217   :  { %v1861_v30 = vsel %vm1625_vm5, %v1857_v29, %v1859_v49  ;;  %v1860_v62 = vsel %vm1625_vm5, %v1855_v17, %v1858_v31 }
 0x218   :  { %v1865_v12 = vadd.f32 %v1861_v30, %v1793_v46  ;;  %v1875_v2 = vpop.permute.xlu1 %1874  ;;  %v1864_v34 = vadd.f32 %v1860_v62, %v1792_v38  ;;  %v1873_v54 = vpop.permute.xlu0 %1872 }
 0x219   :  { %v1877_v1 = vrot.slane %v1875_v2, 1  ;;  %v1876_v58 = vrot.slane %v1873_v54, 1 }
 0x21a   :  { %2416 = vrot.lane.b32.xlu1 %v2411_v26, %s2827_s21  ;;  %2414 = vrot.lane.b32.xlu0 %v2410_v32, %s2827_s21 }
 0x21b   :  { %v1879_v14 = vsel %vm1625_vm5, %v1875_v2, %v1877_v1  ;;  %v1878_v48 = vsel %vm1625_vm5, %v1873_v54, %v1876_v58 }
 0x21c   :  { %v1883_v50 = vadd.f32 %v1879_v14, %v1811_v20  ;;  %v1893_v44 = vpop.permute.xlu1 %1892  ;;  %v1882_v51 = vadd.f32 %v1878_v48, %v1810_v39  ;;  %v1891_v46 = vpop.permute.xlu0 %1890  ;;  %v2463_v39 = vstv %s4751_s8 }
 0x21d   :  { %v1895_v0 = vrot.slane %v1893_v44, 1  ;;  %v1894_v23 = vrot.slane %v1891_v46, 1  ;;  %v2464_v60 = vmul.f32 %v5350_v5, %v2463_v39 }
 0x21e   :  { %2434 = vrot.lane.b32.xlu1 %v2429_v22, %s2827_s21  ;;  %2432 = vrot.lane.b32.xlu0 %v2428_v63, %s2827_s21 }
 0x21f   :  { %v1897_v38 = vsel %vm1625_vm5, %v1893_v44, %v1895_v0  ;;  %v1896_v11 = vsel %vm1625_vm5, %v1891_v46, %v1894_v23 }
 0x220   :  { %v1901_v6 = vadd.f32 %v1897_v38, %v1829_v57  ;;  %v1911_v36 = vpop.permute.xlu1 %1910  ;;  %v1900_v9 = vadd.f32 %v1896_v11, %v1828_v40  ;;  %v1909_v20 = vpop.permute.xlu0 %1908  ;;  %v2465_v57 = vmul.f32 %v5349_v55, %v2463_v39 }
 0x221   :  { %v1913_v27 = vrot.slane %v1911_v36, 1  ;;  %v1912_v61 = vrot.slane %v1909_v20, 1 }
 0x222   :  { %2398 = vrot.lane.b32.xlu1 %v2393_v15, %s2827_s21  ;;  %2396 = vrot.lane.b32.xlu0 %v2392_v42, %s2827_s21 }
 0x223   :  { %v1916_v13 = vsel %vm1914_vm6, %v1911_v36, %v1913_v27  ;;  %v1915_v59 = vsel %vm1914_vm6, %v1909_v20, %v1912_v61 }
 0x224   :  { %v1920_v3 = vadd.f32 %v1916_v13, %v1847_v35  ;;  %v1930_v37 = vpop.permute.xlu1 %1929  ;;  %v1919_v52 = vadd.f32 %v1915_v59, %v1846_v28  ;;  %v1928_v19 = vpop.permute.xlu0 %1927 }
 0x225   :  { %v1932_v45 = vrot.slane %v1930_v37, 1  ;;  %v1931_v7 = vrot.slane %v1928_v19, 1 }
 0x226   :  { %2452 = vrot.lane.b32.xlu1 %v2447_v21, %s2827_s21  ;;  %2450 = vrot.lane.b32.xlu0 %v2446_v53, %s2827_s21 }
 0x227   :  { %v1934_v16 = vsel %vm1914_vm6, %v1930_v37, %v1932_v45  ;;  %v1933_v33 = vsel %vm1914_vm6, %v1928_v19, %v1931_v7 }
 0x228   :  { %v1938_v40 = vadd.f32 %v1934_v16, %v1865_v12  ;;  %v1948_v47 = vpop.permute.xlu1 %1947  ;;  %v1937_v43 = vadd.f32 %v1933_v33, %v1864_v34  ;;  %v1946_v41 = vpop.permute.xlu0 %1945 }
 0x229   :  { %v1950_v25 = vrot.slane %v1948_v47, 1  ;;  %v1949_v56 = vrot.slane %v1946_v41, 1 }
 0x22a   :  { %2470 = vrot.lane.b32.xlu1 %v2465_v57, %s2827_s21  ;;  %2468 = vrot.lane.b32.xlu0 %v2464_v60, %s2827_s21 }
 0x22b   :  { %v1952_v10 = vsel %vm1914_vm6, %v1948_v47, %v1950_v25  ;;  %v1951_v4 = vsel %vm1914_vm6, %v1946_v41, %v1949_v56 }
 0x22c   :  { %v1956_v35 = vadd.f32 %v1952_v10, %v1883_v50  ;;  %v1984_v29 = vpop.permute.xlu1 %1983  ;;  %v1955_v28 = vadd.f32 %v1951_v4, %v1882_v51  ;;  %v1982_v17 = vpop.permute.xlu0 %1981 }
 0x22d   :  { %v1986_v49 = vrot.slane %v1984_v29, 1  ;;  %v1985_v31 = vrot.slane %v1982_v17, 1 }
 0x22f   :  { %v1988_v55 = vsel %vm1914_vm6, %v1984_v29, %v1986_v49  ;;  %v1987_v30 = vsel %vm1914_vm6, %v1982_v17, %v1985_v31 }
 0x230   :  { %v1992_v26 = vadd.f32 %v1988_v55, %v1920_v3  ;;  %v2002_v5 = vpop.permute.xlu1 %2001  ;;  %v1991_v32 = vadd.f32 %v1987_v30, %v1919_v52  ;;  %v2000_v12 = vpop.permute.xlu0 %1999 }
 0x231   :  { %v2004_v18 = vrot.slane %v2002_v5, 1  ;;  %v2003_v62 = vrot.slane %v2000_v12, 1 }
 0x233   :  { %v2006_v2 = vsel %vm1914_vm6, %v2002_v5, %v2004_v18  ;;  %v2005_v1 = vsel %vm1914_vm6, %v2000_v12, %v2003_v62 }
 0x234   :  { %v2010_v34 = vadd.f32 %v2006_v2, %v1938_v40  ;;  %v1966_v54 = vpop.permute.xlu1 %1965  ;;  %v2009_v58 = vadd.f32 %v2005_v1, %v1937_v43  ;;  %v1964_v14 = vpop.permute.xlu0 %1963 }
 0x235   :  { %v1968_v22 = vrot.slane %v1966_v54, 1  ;;  %v1967_v63 = vrot.slane %v1964_v14, 1 }
 0x237   :  { %v1970_v8 = vsel %vm1914_vm6, %v1966_v54, %v1968_v22  ;;  %v1969_v48 = vsel %vm1914_vm6, %v1964_v14, %v1967_v63 }
 0x238   :  { %v1974_v50 = vadd.f32 %v1970_v8, %v1901_v6  ;;  %v2020_v44 = vpop.permute.xlu1 %2019  ;;  %v1973_v51 = vadd.f32 %v1969_v48, %v1900_v9  ;;  %v2018_v46 = vpop.permute.xlu0 %2017 }
 0x239   :  { %v2022_v0 = vrot.slane %v2020_v44, 1  ;;  %v2021_v23 = vrot.slane %v2018_v46, 1 }
 0x23b   :  { %v2024_v15 = vsel %vm1914_vm6, %v2020_v44, %v2022_v0  ;;  %v2023_v42 = vsel %vm1914_vm6, %v2018_v46, %v2021_v23 }
 0x23c   :  { %v2028_v38 = vadd.f32 %v2024_v15, %v1956_v35  ;;  %v2056_v24 = vpop.permute.xlu1 %2055  ;;  %v2027_v11 = vadd.f32 %v2023_v42, %v1955_v28  ;;  %v2054_v27 = vpop.permute.xlu0 %2053 }
 0x23d   :  { %v2058_v36 = vrot.slane %v2056_v24, 1  ;;  %v2057_v20 = vrot.slane %v2054_v27, 1 }
 0x23f   :  { %v2060_v61 = vsel %vm1914_vm6, %v2056_v24, %v2058_v36  ;;  %v2059_v21 = vsel %vm1914_vm6, %v2054_v27, %v2057_v20 }
 0x240   :  { %v2064_v6 = vadd.f32 %v2060_v61, %v1992_v26  ;;  %v2074_v13 = vpop.permute.xlu1 %2073  ;;  %v2063_v9 = vadd.f32 %v2059_v21, %v1991_v32  ;;  %v2072_v39 = vpop.permute.xlu0 %2071 }
 0x241   :  { %v2076_v53 = vrot.slane %v2074_v13, 1  ;;  %v2075_v3 = vrot.slane %v2072_v39, 1 }
 0x243   :  { %v2078_v59 = vsel %vm1914_vm6, %v2074_v13, %v2076_v53  ;;  %v2077_v52 = vsel %vm1914_vm6, %v2072_v39, %v2075_v3 }
 0x244   :  { %v2082_v37 = vadd.f32 %v2078_v59, %v2010_v34  ;;  %v2038_v45 = vpop.permute.xlu1 %2037  ;;  %v2081_v19 = vadd.f32 %v2077_v52, %v2009_v58  ;;  %v2036_v57 = vpop.permute.xlu0 %2035 }
 0x245   :  { %v2040_v7 = vrot.slane %v2038_v45, 1  ;;  %v2039_v16 = vrot.slane %v2036_v57, 1 }
 0x247   :  { %v2042_v60 = vsel %vm1914_vm6, %v2038_v45, %v2040_v7  ;;  %v2041_v33 = vsel %vm1914_vm6, %v2036_v57, %v2039_v16 }
 0x248   :  { %v2046_v40 = vadd.f32 %v2042_v60, %v1974_v50  ;;  %v2092_v47 = vpop.permute.xlu1 %2091  ;;  %v2045_v43 = vadd.f32 %v2041_v33, %v1973_v51  ;;  %v2090_v41 = vpop.permute.xlu0 %2089 }
 0x249   :  { %v2094_v25 = vrot.slane %v2092_v47, 1  ;;  %v2093_v56 = vrot.slane %v2090_v41, 1 }
 0x24b   :  { %v2096_v10 = vsel %vm1914_vm6, %v2092_v47, %v2094_v25  ;;  %v2095_v4 = vsel %vm1914_vm6, %v2090_v41, %v2093_v56  ;;  %v2481_v47 = vstv %s4830_s9  ;;  %v2497_v41 = vstv %s4836_s11 }
 0x24c   :  { %v4793_v35 = vadd.f32 %v2096_v10, %v2028_v38  ;;  %v2128_v29 = vpop.permute.xlu1 %2127  ;;  %v4796_v28 = vadd.f32 %v2095_v4, %v2027_v11  ;;  %v2126_v17 = vpop.permute.xlu0 %2125  ;;  %v2507_v56 = vstv %s4838_s12  ;;  %v2513_v10 = vstv %s4842_s14 }
 0x24d   :  { %v2130_v49 = vrot.slane %v2128_v29, 1  ;;  %v2129_v31 = vrot.slane %v2126_v17, 1  ;;  %v2529_v4 = vstv %s4844_s15 }
 0x24f   :  { %v2132_v55 = vsel %vm1914_vm6, %v2128_v29, %v2130_v49  ;;  %v2131_v30 = vsel %vm1914_vm6, %v2126_v17, %v2129_v31 }
 0x250   :  { %v4799_v26 = vadd.f32 %v2132_v55, %v2064_v6  ;;  %v2146_v5 = vpop.permute.xlu1 %2145  ;;  %v4802_v32 = vadd.f32 %v2131_v30, %v2063_v9  ;;  %v2144_v12 = vpop.permute.xlu0 %2143 }
 0x251   :  { %v2148_v18 = vrot.slane %v2146_v5, 1  ;;  %v2147_v62 = vrot.slane %v2144_v12, 1 }
 0x253   :  { %v2150_v2 = vsel %vm1914_vm6, %v2146_v5, %v2148_v18  ;;  %v2149_v1 = vsel %vm1914_vm6, %v2144_v12, %v2147_v62 }
 0x254   :  { %v4805_v34 = vadd.f32 %v2150_v2, %v2082_v37  ;;  %v2110_v54 = vpop.permute.xlu1 %2109  ;;  %v4808_v58 = vadd.f32 %v2149_v1, %v2081_v19  ;;  %v2108_v14 = vpop.permute.xlu0 %2107 }
 0x255   :  { %v2112_v22 = vrot.slane %v2110_v54, 1  ;;  %v2111_v63 = vrot.slane %v2108_v14, 1 }
 0x257   :  { %v2114_v8 = vsel %vm1914_vm6, %v2110_v54, %v2112_v22  ;;  %v2113_v48 = vsel %vm1914_vm6, %v2108_v14, %v2111_v63 }
 0x258   :  { %v4811_v50 = vadd.f32 %v2114_v8, %v2046_v40  ;;  %v2164_v44 = vpop.permute.xlu1 %2163  ;;  %v4814_v51 = vadd.f32 %v2113_v48, %v2045_v43  ;;  %v2162_v0 = vpop.permute.xlu0 %2161  ;;  %v2491_v43 = vstv %s4832_s10 }
 0x259   :  { %v2166_v39 = vrot.slane %v2164_v44, 1  ;;  %v2165_v3 = vrot.slane %v2162_v0, 1 }
 0x25b   :  { %v2168_v19 = vsel %vm1914_vm6, %v2164_v44, %v2166_v39  ;;  %v2167_v60 = vsel %vm1914_vm6, %v2162_v0, %v2165_v3 }
 0x25c   :  { %v2200_v46 = vpop.permute.xlu1 %2199  ;;  %v2198_v23 = vpop.permute.xlu0 %2197  ;;  %v2172_v29 = vadd.f32 %v2168_v19, %v4793_v35  ;;  %v2171_v55 = vadd.f32 %v2167_v60, %v4796_v28 }
 0x25d   :  { %v2202_v52 = vrot.slane %v2200_v46, 1  ;;  %v2201_v45 = vrot.slane %v2198_v23, 1 }
 0x25f   :  { %v2205_v49 = vsel %vm2203_vm7, %v2200_v46, %v2202_v52  ;;  %v2204_v17 = vsel %vm2203_vm7, %v2198_v23, %v2201_v45 }
 0x260   :  { %v2219_v15 = vpop.permute.xlu1 %2218  ;;  %v2217_v38 = vpop.permute.xlu0 %2216  ;;  %v2209_v54 = vadd.f32 %v2205_v49, %v4799_v26  ;;  %v2208_v28 = vadd.f32 %v2204_v17, %v4802_v32 }
 0x261   :  { %v2221_v7 = vrot.slane %v2219_v15, 1  ;;  %v2220_v57 = vrot.slane %v2217_v38, 1 }
 0x263   :  { %v2223_v30 = vsel %vm2203_vm7, %v2219_v15, %v2221_v7  ;;  %v2222_v5 = vsel %vm2203_vm7, %v2217_v38, %v2220_v57 }
 0x264   :  { %v2182_v42 = vpop.permute.xlu1 %2181  ;;  %v2180_v24 = vpop.permute.xlu0 %2179  ;;  %v2227_v8 = vadd.f32 %v2223_v30, %v4805_v34  ;;  %v2226_v46 = vadd.f32 %v2222_v5, %v4808_v58 }
 0x265   :  { %v2184_v16 = vrot.slane %v2182_v42, 1  ;;  %v2183_v40 = vrot.slane %v2180_v24, 1 }
 0x267   :  { %v2186_v18 = vsel %vm1914_vm6, %v2182_v42, %v2184_v16  ;;  %v2185_v12 = vsel %vm1914_vm6, %v2180_v24, %v2183_v40 }
 0x268   :  { %v2237_v11 = vpop.permute.xlu1 %2236  ;;  %v4816_v36 = vpop.permute.xlu0 %2234  ;;  %v2190_v26 = vadd.f32 %v2186_v18, %v4811_v50  ;;  %v2189_v32 = vadd.f32 %v2185_v12, %v4814_v51 }
 0x269   :  { %v2239_v31 = vrot.slane %v2237_v11, 1  ;;  %v2238_v62 = vrot.slane %v4816_v36, 1 }
 0x26b   :  { %v2241_v48 = vsel %vm2203_vm7, %v2237_v11, %v2239_v31  ;;  %v2240_v15 = vsel %vm2203_vm7, %v4816_v36, %v2238_v62 }
 0x26c   :  { %v4818_v27 = vpop.permute.xlu1 %2272  ;;  %v4820_v20 = vpop.permute.xlu0 %2270  ;;  %v2245_v11 = vadd.f32 %v2241_v48, %v2172_v29  ;;  %v2244_v52 = vadd.f32 %v2240_v15, %v2171_v55 }
 0x26d   :  { %v2275_v2 = vrot.slane %v4818_v27, 1  ;;  %v2274_v35 = vrot.slane %v4820_v20, 1 }
 0x26f   :  { %v2277_v34 = vsel %vm2203_vm7, %v4818_v27, %v2275_v2  ;;  %v2276_v38 = vsel %vm2203_vm7, %v4820_v20, %v2274_v35 }
 0x270   :  { %v4822_v61 = vpop.permute.xlu1 %2290  ;;  %v4824_v6 = vpop.permute.xlu0 %2288  ;;  %v2281_v45 = vadd.f32 %v2277_v34, %v2209_v54  ;;  %v2280_v19 = vadd.f32 %v2276_v38, %v2208_v28 }
 0x271   :  { %v2293_v22 = vrot.slane %v4822_v61, 1  ;;  %v2292_v14 = vrot.slane %v4824_v6, 1 }
 0x273   :  { %v2295_v58 = vsel %vm2203_vm7, %v4822_v61, %v2293_v22  ;;  %v2294_v50 = vsel %vm2203_vm7, %v4824_v6, %v2292_v14 }
 0x274   :  { %v4826_v21 = vpop.permute.xlu1 %2254  ;;  %v4828_v13 = vpop.permute.xlu0 %2252  ;;  %v2299_v7 = vadd.f32 %v2295_v58, %v2227_v8  ;;  %v2298_v6 = vadd.f32 %v2294_v50, %v2226_v46 }
 0x275   :  { %v2257_v44 = vrot.slane %v4826_v21, 1  ;;  %v2256_v0 = vrot.slane %v4828_v13, 1 }
 0x277   :  { %v2259_v36 = vsel %vm2203_vm7, %v4826_v21, %v2257_v44  ;;  %v2258_v27 = vsel %vm2203_vm7, %v4828_v13, %v2256_v0 }
 0x278   :  { %v4834_v9 = vpop.permute.xlu1 %2308  ;;  %v4840_v53 = vpop.permute.xlu0 %2306  ;;  %v2263_v60 = vadd.f32 %v2259_v36, %v2190_v26  ;;  %v4909_v40 = vadd.f32 %v2258_v27, %v2189_v32 }
 0x279   :  { %v2311_v51 = vrot.slane %v4834_v9, 1  ;;  %v2310_v57 = vrot.slane %v4840_v53, 1 }
 0x27b   :  { %v2313_v13 = vsel %vm2203_vm7, %v4834_v9, %v2311_v51  ;;  %v2312_v9 = vsel %vm2203_vm7, %v4840_v53, %v2310_v57 }
 0x27c   :  { %v4846_v59 = vpop.permute.xlu1 %2344  ;;  %v4848_v37 = vpop.permute.xlu0 %2342  ;;  %v2317_v12 = vadd.f32 %v2313_v13, %v2245_v11  ;;  %v2316_v38 = vadd.f32 %v2312_v9, %v2244_v52 }
 0x27d   :  { %v2347_v23 = vrot.slane %v4846_v59, 1  ;;  %v2346_v42 = vrot.slane %v4848_v37, 1 }
 0x27f   :  { %v2349_v61 = vsel %vm2203_vm7, %v4846_v59, %v2347_v23  ;;  %v2348_v16 = vsel %vm2203_vm7, %v4848_v37, %v2346_v42 }
 0x280   :  { %v4852_v33 = vpop.permute.xlu1 %2362  ;;  %v2361_v25 = vpop.permute.xlu0 %2360  ;;  %v2353_v17 = vadd.f32 %v2349_v61, %v2281_v45  ;;  %v2352_v30 = vadd.f32 %v2348_v16, %v2280_v19 }
 0x281   :  { %v2365_v20 = vrot.slane %v4852_v33, 1  ;;  %v2364_v3 = vrot.slane %v2361_v25, 1 }
 0x283   :  { %v2367_v59 = vsel %vm2203_vm7, %v4852_v33, %v2365_v20  ;;  %v2366_v31 = vsel %vm2203_vm7, %v2361_v25, %v2364_v3 }
 0x284   :  { %v4871_v1 = vpop.permute.xlu1 %2326  ;;  %v4877_v63 = vpop.permute.xlu0 %2324  ;;  %v2371_v33 = vadd.f32 %v2367_v59, %v2299_v7  ;;  %v2370_v54 = vadd.f32 %v2366_v31, %v2298_v6 }
 0x285   :  { %v2329_v37 = vrot.slane %v4871_v1, 1  ;;  %v2328_v14 = vrot.slane %v4877_v63, 1 }
 0x287   :  { %v2331_v0 = vsel %vm2203_vm7, %v4871_v1, %v2329_v37  ;;  %v2330_v51 = vsel %vm2203_vm7, %v4877_v63, %v2328_v14 }
 0x288   :  { %v2381_v24 = vpop.permute.xlu1 %2380  ;;  %v2379_v39 = vpop.permute.xlu0 %2378  ;;  %v2335_v1 = vadd.f32 %v2331_v0, %v2263_v60 }
 0x289   :  { %v2383_v5 = vrot.slane %v2381_v24, 1  ;;  %v2382_v8 = vrot.slane %v2379_v39, 1 }
 0x28b   :  { %v2385_v53 = vsel %vm2203_vm7, %v2381_v24, %v2383_v5  ;;  %v2384_v50 = vsel %vm2203_vm7, %v2379_v39, %v2382_v8 }
 0x28c   :  { %v2417_v21 = vpop.permute.xlu1 %2416  ;;  %v2415_v49 = vpop.permute.xlu0 %2414  ;;  %v2389_v36 = vadd.f32 %v2385_v53, %v2317_v12  ;;  %v2388_v19 = vadd.f32 %v2384_v50, %v2316_v38 }
 0x28d   :  { %v2419_v29 = vrot.slane %v2417_v21, 1  ;;  %v2418_v55 = vrot.slane %v2415_v49, 1 }
 0x28f   :  { %v2421_v18 = vsel %vm2203_vm7, %v2417_v21, %v2419_v29  ;;  %v2420_v2 = vsel %vm2203_vm7, %v2415_v49, %v2418_v55 }
 0x290   :  { %v2425_v62 = vadd.f32 %v2421_v18, %v2353_v17  ;;  %v2435_v35 = vpop.permute.xlu1 %2434  ;;  %v2424_v25 = vadd.f32 %v2420_v2, %v2352_v30  ;;  %v2433_v22 = vpop.permute.xlu0 %2432 }
 0x291   :  { %v2437_v28 = vrot.slane %v2435_v35, 1  ;;  %v2436_v44 = vrot.slane %v2433_v22, 1 }
 0x292   :  { %v2483_v48 = vadd.f32 %v2481_v47, %v2425_v62  ;;  %v2482_v46 = vadd.f32 %v2481_v47, %v2424_v25 }
 0x293   :  { %v2439_v26 = vsel %vm2203_vm7, %v2435_v35, %v2437_v28  ;;  %v2438_v15 = vsel %vm2203_vm7, %v2433_v22, %v2436_v44  ;;  %v2523_v35 = vstv %s4939_s16 }
 0x294   :  { %vm2485_vm8 = vcmp.ge.f32.partialorder %v2483_v48, 0.0  ;;  %v2487_v32 = vmul.f32 0.2, %v2483_v48  ;;  %v2443_v23 = vadd.f32 %v2439_v26, %v2371_v33  ;;  %v2399_v34 = vpop.permute.xlu1 %2398  ;;  %vm2484_vm9 = vcmp.ge.f32.partialorder %v2482_v46, 0.0  ;;  %v2397_v58 = vpop.permute.xlu0 %2396 }
 0x295   :  { %v2486_v42 = vmul.f32 0.2, %v2482_v46  ;;  %v2442_v11 = vadd.f32 %v2438_v15, %v2370_v54  ;;  %v2401_v47 = vrot.slane %v2399_v34, 1  ;;  %v2400_v39 = vrot.slane %v2397_v58, 1 }
 0x296   :  { %v2499_v24 = vadd.f32 %v2497_v41, %v2443_v23  ;;  %v2489_v27 = vsel %vm2485_vm8, %v2483_v48, %v2487_v32  ;;  %v2539_v26 = vstv %s4953_s13 }
 0x297   :  { %v2498_v20 = vadd.f32 %v2497_v41, %v2442_v11  ;;  %v2488_v3 = vsel %vm2484_vm9, %v2482_v46, %v2486_v42  ;;  %v2493_v6 = vmul.f32 %v2491_v43, %v2489_v27  ;;  %v2403_v41 = vsel %vm2203_vm7, %v2399_v34, %v2401_v47 }
 0x298   :  { %vm2501_vm10 = vcmp.ge.f32.partialorder %v2499_v24, 0.0  ;;  %v2503_v52 = vmul.f32 0.2, %v2499_v24  ;;  %v2453_v45 = vpop.permute.xlu1 %2452  ;;  %v2451_v63 = vpop.permute.xlu0 %2450  ;;  %v2492_v21 = vmul.f32 %v2491_v43, %v2488_v3  ;;  %v2402_v17 = vsel %vm2203_vm7, %v2397_v58, %v2400_v39 }
 0x299   :  { %vm2500_vm11 = vcmp.ge.f32.partialorder %v2498_v20, 0.0  ;;  %v2502_v61 = vmul.f32 0.2, %v2498_v20  ;;  %v2455_v7 = vrot.slane %v2453_v45, 1  ;;  %v2454_v16 = vrot.slane %v2451_v63, 1 }
 0x29a   :  { %v2505_v57 = vsel %vm2501_vm10, %v2499_v24, %v2503_v52  ;;  %v2334_v43 = vadd.f32 %v2330_v51, %v4909_v40  ;;  %v2407_v9 = vadd.f32 %v2403_v41, %v2335_v1  ;;  %v2545_v11 = vstv %s4978_s4 }
 0x29b   :  { %v2509_v60 = vmul.f32 %v2507_v56, %v2505_v57  ;;  %v2504_v13 = vsel %vm2500_vm11, %v2498_v20, %v2502_v61  ;;  %v2457_v29 = vsel %vm2203_vm7, %v2453_v45, %v2455_v7  ;;  %v2456_v31 = vsel %vm2203_vm7, %v2451_v63, %v2454_v16 }
 0x29c   :  { %v2508_v49 = vmul.f32 %v2507_v56, %v2504_v13  ;;  %v2461_v59 = vadd.f32 %v2457_v29, %v2389_v36  ;;  %v2471_v55 = vpop.permute.xlu1 %2470  ;;  %v2460_v37 = vadd.f32 %v2456_v31, %v2388_v19  ;;  %v2469_v18 = vpop.permute.xlu0 %2468  ;;  %v2406_v2 = vadd.f32 %v2402_v17, %v2334_v43 }
 0x29d   :  { %v2511_v30 = vadd.f32 %v2509_v60, %v2493_v6  ;;  %v2473_v5 = vrot.slane %v2471_v55, 1  ;;  %v2472_v62 = vrot.slane %v2469_v18, 1  ;;  %v2828_v52 = vmov 1935823168  }
 0x29e   :  { %v2510_v12 = vadd.f32 %v2508_v49, %v2492_v21  ;;  %v2515_v56 = vadd.f32 %v2513_v10, %v2461_v59  ;;  %v2514_v33 = vadd.f32 %v2513_v10, %v2460_v37  ;;  %v2564_v39 = vunpack.c.l.s4 %v2828_v52 }
 0x29f   :  { %v2475_v54 = vsel %vm2203_vm7, %v2471_v55, %v2473_v5  ;;  %v2474_v28 = vsel %vm2203_vm7, %v2469_v18, %v2472_v62  ;;  %v2566_v45 = vlaneseq }
 0x2a0   :  { %vm2517_vm12 = vcmp.ge.f32.partialorder %v2515_v56, 0.0  ;;  %v2519_v40 = vmul.f32 0.2, %v2515_v56  ;;  %v2479_v25 = vadd.f32 %v2475_v54, %v2407_v9  ;;  %vm2516_vm13 = vcmp.ge.f32.partialorder %v2514_v33, 0.0 }
 0x2a1   :  { %v2518_v22 = vmul.f32 0.2, %v2514_v33  ;;  %v2478_v14 = vadd.f32 %v2474_v28, %v2406_v2  ;;  %v2565_v19 = vunpack.c.0.s8 %v2564_v39  ;;  %v2567_v61 = vshrl.u32 %v2566_v45, 7 }
 0x2a2   :  { %v2521_v8 = vsel %vm2517_vm12, %v2515_v56, %v2519_v40  ;;  %v2531_v48 = vadd.f32 %v2529_v4, %v2479_v25 }
 0x2a3   :  { %v2525_v44 = vmul.f32 %v2523_v35, %v2521_v8  ;;  %v2520_v0 = vsel %vm2516_vm13, %v2514_v33, %v2518_v22  ;;  %v2530_v53 = vadd.f32 %v2529_v4, %v2478_v14  ;;  %v2568_v63 = vsub.s32 %v2565_v19, %v2567_v61 }
 0x2a4   :  { %v2524_v46 = vmul.f32 %v2523_v35, %v2520_v0  ;;  %vm2533_vm14 = vcmp.ge.f32.partialorder %v2531_v48, 0.0  ;;  %v2535_v10 = vmul.f32 0.2, %v2531_v48 }
 0x2a5   :  { %v2527_v32 = vadd.f32 %v2525_v44, %v2511_v30  ;;  %vm2532_vm15 = vcmp.ge.f32.partialorder %v2530_v53, 0.0  ;;  %v2534_v23 = vmul.f32 0.2, %v2530_v53 }
 0x2a6   :  { %v2526_v15 = vadd.f32 %v2524_v46, %v2510_v12  ;;  %v2537_v34 = vsel %vm2533_vm14, %v2531_v48, %v2535_v10 }
 0x2a7   :  { %v2541_v38 = vmul.f32 %v2539_v26, %v2537_v34  ;;  %v2536_v42 = vsel %vm2532_vm15, %v2530_v53, %v2534_v23 }
 0x2a8   :  { %v2540_v58 = vmul.f32 %v2539_v26, %v2536_v42 }
 0x2a9   :  { %v2543_v1 = vadd.f32 %v2541_v38, %v2527_v32 }
 0x2aa   :  { %v2542_v50 = vadd.f32 %v2540_v58, %v2526_v15 }
 0x2ab   :  { %v2547_v24 = vadd.f32 %v2545_v11, %v2543_v1 }
 0x2ac   :  { %v2546_v4 = vadd.f32 %v2545_v11, %v2542_v50 }
 0x2ad   :  { %v2740_v47 = vmul.f32 -1.442695, %v2547_v24 }
 0x2ae   :  { %v2739_v51 = vmul.f32 -1.442695, %v2546_v4 }
 0x2af   :  { %2753 = vpow2.f32 %v2740_v47 }
 0x2b0   :  { %2755 = vpow2.f32 %v2739_v51 }
 0x2b9   :  { %v2754_v36 = vpop.eup %2753 }
 0x2ba   :  { %v2756_v27 = vpop.eup %2755  ;;  %v2555_v20 = vadd.f32 1.0, %v2754_v36 }
 0x2bb   :  { %v2554_v3 = vadd.f32 1.0, %v2756_v27 }
 0x2bc   :  { %2757 = vrcp.f32 %v2555_v20 }
 0x2bd   :  { %2759 = vrcp.f32 %v2554_v3 }
 0x2c6   :  { %v2758_v7 = vpop.eup %2757 }
 0x2c7   :  { %v2760_v6 = vpop.eup %2759 }
 0x2c8   :  { %v2562_v57 = vcombine.low %v2760_v6, %v2758_v7 }
 0x2ca   :  { %v2569_v41 = vrot.slane %v2562_v57, %v2568_v63 }
 0x2cc   :  { %2576 = vst.msk [vmem:[%s4979_s5] sm:$0x3f] %vm2575_vm4, %v2569_v41 }
 0x2cd   :  { %2581 = vsyncpa [#allocation4], 1 }
 0x2ce   :  { %2582 = vsyncpa [#allocation6], 1 }

</bundles_post_ra>
